<compile_context>
chip_gen: v6e
topology: v6e:2x2x1
jax: 0.10.0
libtpu: 0.0.40
codegen_flags: <defaults>
</compile_context>

<pallas_src>
import math
import functools

import jax
import jax.numpy as jnp
from jax import lax
from jax.experimental import pallas as pl
from jax.experimental.pallas import tpu as pltpu


# ------------------------------ fused kernel ------------------------------- #

def _esm2_fused_kernel(cw_ref, cb_ref,                       # scalar prefetch (SMEM)
                       tok_ref, embed_ref,
                       ln1_g_ref, ln1_b_ref, wqkv_ref, bqkv_ref, wo_ref, bo_ref,
                       ln2_g_ref, ln2_b_ref, w1_ref, b1_ref, w2_ref, b2_ref,
                       lnf_g_ref, lnf_b_ref,
                       reps_ref, contact_ref,
                       *, batch, seq_t, num_layers, num_heads, head_dim, vocab):
    T = seq_t
    D = num_heads * head_dim
    R = batch * T                                            # all samples stacked into rows
    scale = 1.0 / math.sqrt(head_dim)

    def layer_norm(x, g, b):
        mu = jnp.mean(x, axis=-1, keepdims=True)
        var = jnp.mean((x - mu) ** 2, axis=-1, keepdims=True)
        return (x - mu) * lax.rsqrt(var + 1e-5) * g + b

    def mm(a_f32, w_bf16):       # activations cast once; weights already bf16 from host
        return jnp.dot(a_f32.astype(jnp.bfloat16), w_bf16,
                       preferred_element_type=jnp.float32)

    # --- fused token-embedding gather: one-hot matmul on the MXU -----------------
    tok = tok_ref[...]                                                    # [R, 1] int32
    onehot = (tok == lax.broadcasted_iota(jnp.int32, (R, vocab), 1)).astype(jnp.bfloat16)
    h = jnp.dot(onehot, embed_ref[...], preferred_element_type=jnp.float32)   # [R, D] f32

    # --- BOS/EOS crop hoisted to one 0/1 mask (built once, outside all loops) ----
    ri = lax.broadcasted_iota(jnp.int32, (T, T), 0)
    ci = lax.broadcasted_iota(jnp.int32, (T, T), 1)
    cmask = ((ri > 0) & (ri < T - 1) & (ci > 0) & (ci < T - 1)).astype(jnp.float32)

    contacts0 = tuple(jnp.zeros((T, T), jnp.float32) for _ in range(batch))

    def layer_body(l, carry):
        h, contacts = carry
        contacts = list(contacts)

        # --- self-attention block (pre-LN) ---
        hn = layer_norm(h, ln1_g_ref[l], ln1_b_ref[l])
        qkv = mm(hn, wqkv_ref[l]) + bqkv_ref[l]               # [R, 3D], single fused matmul
        q = (qkv[:, :D] * scale).astype(jnp.bfloat16)         # fold 1/sqrt(Dh) into q
        k = qkv[:, D:2 * D].astype(jnp.bfloat16)
        v = qkv[:, 2 * D:].astype(jnp.bfloat16)
        wo_l = wo_ref[l]                                      # [D, D] bf16

        attn_blocks = []
        for b in range(batch):                                # per-sample softmax / APC
            r0 = b * T
            qb, kb, vb = q[r0:r0 + T], k[r0:r0 + T], v[r0:r0 + T]
            attn_b = jnp.zeros((T, D), jnp.float32)
            for hi in range(num_heads):
                c0 = hi * head_dim
                qh = qb[:, c0:c0 + head_dim]
                kh = kb[:, c0:c0 + head_dim]
                vh = vb[:, c0:c0 + head_dim]
                # bf16 MXU, f32 accumulation; contract last dims (no explicit k.T)
                s = lax.dot_general(qh, kh, (((1,), (1,)), ((), ())),
                                    preferred_element_type=jnp.float32)   # [T, T]
                s = s - jnp.max(s, axis=-1, keepdims=True)
                p = jnp.exp(s)
                p = p / jnp.sum(p, axis=-1, keepdims=True)     # exact divide (numerics)
                ctx = jnp.dot(p.astype(jnp.bfloat16), vh,
                              preferred_element_type=jnp.float32)          # [T, Dh]
                # per-head output projection accumulation: no head concatenate
                attn_b = attn_b + jnp.dot(ctx.astype(jnp.bfloat16),
                                          wo_l[c0:c0 + head_dim, :],
                                          preferred_element_type=jnp.float32)

                # contact-head contribution: masked (crop-equivalent) symmetrize + APC
                a = (p + p.T) * cmask
                row = jnp.sum(a, axis=-1, keepdims=True)
                col = jnp.sum(a, axis=-2, keepdims=True)
                tot = jnp.sum(a)                               # strictly > 0
                apc = a - (row * col) / tot
                contacts[b] = contacts[b] + cw_ref[l * num_heads + hi] * apc
            attn_blocks.append(attn_b)

        attn = attn_blocks[0] if batch == 1 else jnp.concatenate(attn_blocks, axis=0)
        h = h + attn + bo_ref[l]

        # --- feed-forward block (pre-LN) ---
        hn = layer_norm(h, ln2_g_ref[l], ln2_b_ref[l])
        f = mm(hn, w1_ref[l]) + b1_ref[l]
        # TODO(synk): PyTorch ESM2 uses exact erf GELU; tanh approximation used here.
        f = jax.nn.gelu(f, approximate=True)
        h = h + mm(f, w2_ref[l]) + b2_ref[l]
        return h, tuple(contacts)

    h, contacts = lax.fori_loop(0, num_layers, layer_body, (h, contacts0))

    # representations at layer L (repr_layers=[5]): final LN, drop BOS/EOS tokens.
    # NOTE: output last dims (D=32, Tc=8) are lane-sparse; fine at this size.
    hf = layer_norm(h, lnf_g_ref[...], lnf_b_ref[...])
    for b in range(batch):
        r0 = b * T
        reps_ref[b] = hf[r0 + 1: r0 + T - 1, :].astype(reps_ref.dtype)
        logits = contacts[b][1:-1, 1:-1] + cb_ref[0]          # crop applied exactly once
        contact_ref[b] = jax.nn.sigmoid(logits).astype(contact_ref.dtype)


# --------------------------- parameters & forward --------------------------- #

def init_params(key, vocab, D, H, L, ffn):
    keys = iter(jax.random.split(key, 8 * L + 4))
    nk = lambda: next(keys)
    s = 1.0 / math.sqrt(D)
    bf = jnp.bfloat16
    params = {
        # matmul weights pre-cast to bf16 on the host (halves weight DMA / VMEM,
        # removes in-kernel f32->bf16 casts). Biases / LN / contact head stay f32.
        "embed": (jax.random.normal(nk(), (vocab, D), jnp.float32) * 0.02).astype(bf),
        "lnf_g": jnp.ones((1, D), jnp.float32),
        "lnf_b": jnp.zeros((1, D), jnp.float32),
        "contact_w": jax.random.normal(nk(), (L * H,), jnp.float32) * 0.1,
        "contact_b": jnp.zeros((1,), jnp.float32),
    }
    wqkv, bqkv, wo, bo = [], [], [], []
    ln1_g, ln1_b, ln2_g, ln2_b = [], [], [], []
    w1, b1, w2, b2 = [], [], [], []
    for _ in range(L):
        wq = jax.random.normal(nk(), (D, D), jnp.float32) * s
        wk = jax.random.normal(nk(), (D, D), jnp.float32) * s
        wv = jax.random.normal(nk(), (D, D), jnp.float32) * s
        wqkv.append(jnp.concatenate([wq, wk, wv], axis=1).astype(bf))     # fused [D, 3D]
        bqkv.append(jnp.zeros((1, 3 * D), jnp.float32))
        wo.append((jax.random.normal(nk(), (D, D), jnp.float32) * s).astype(bf))
        bo.append(jnp.zeros((1, D), jnp.float32))
        ln1_g.append(jnp.ones((1, D), jnp.float32))
        ln1_b.append(jnp.zeros((1, D), jnp.float32))
        ln2_g.append(jnp.ones((1, D), jnp.float32))
        ln2_b.append(jnp.zeros((1, D), jnp.float32))
        w1.append((jax.random.normal(nk(), (D, ffn), jnp.float32) * s).astype(bf))
        b1.append(jnp.zeros((1, ffn), jnp.float32))
        w2.append((jax.random.normal(nk(), (ffn, D), jnp.float32)
                   * (1.0 / math.sqrt(ffn))).astype(bf))
        b2.append(jnp.zeros((1, D), jnp.float32))
    stack = lambda xs: jnp.stack(xs, axis=0)
    params.update(
        wqkv=stack(wqkv), bqkv=stack(bqkv), wo=stack(wo), bo=stack(bo),
        ln1_g=stack(ln1_g), ln1_b=stack(ln1_b), ln2_g=stack(ln2_g), ln2_b=stack(ln2_b),
        w1=stack(w1), b1=stack(b1), w2=stack(w2), b2=stack(b2))
    return params


def finetune_esm2_forward(tokens, params, H):
    """Returns (peptide_representations [B, T-2, D], contact_map [B, T-2, T-2])."""
    B, T = tokens.shape
    vocab, D = params["embed"].shape
    L = params["wqkv"].shape[0]
    FFN = params["w1"].shape[-1]
    Dh = D // H
    Tc = T - 2

    tok2d = tokens.reshape(B * T, 1).astype(jnp.int32)        # rows stacked for the kernel

    def full(shape):
        n = len(shape)
        # whole array VMEM-resident; same (only) block for the single grid step
        return pl.BlockSpec(shape, lambda *_: (0,) * n)

    grid_spec = pltpu.PrefetchScalarGridSpec(
        num_scalar_prefetch=2,                                # contact_w, contact_b -> SMEM
        grid=(1,),                                            # one step, whole batch stacked
        in_specs=[
            full((B * T, 1)),                                 # tokens (int32)
            full((vocab, D)),                                 # embedding table (bf16)
            full((L, 1, D)), full((L, 1, D)),                 # ln1 g/b
            full((L, D, 3 * D)), full((L, 1, 3 * D)),         # wqkv (bf16), bqkv
            full((L, D, D)), full((L, 1, D)),                 # wo (bf16), bo
            full((L, 1, D)), full((L, 1, D)),                 # ln2 g/b
            full((L, D, FFN)), full((L, 1, FFN)),             # w1 (bf16), b1
            full((L, FFN, D)), full((L, 1, D)),               # w2 (bf16), b2
            full((1, D)), full((1, D)),                       # lnf g/b
        ],
        out_specs=(full((B, Tc, D)), full((B, Tc, Tc))),
    )

    kernel = functools.partial(_esm2_fused_kernel, batch=B, seq_t=T,
                               num_layers=L, num_heads=H, head_dim=Dh, vocab=vocab)
    reps, contacts = pl.pallas_call(
        kernel,
        grid_spec=grid_spec,
        out_shape=(jax.ShapeDtypeStruct((B, Tc, D), jnp.float32),
                   jax.ShapeDtypeStruct((B, Tc, Tc), jnp.float32)),
        compiler_params=pltpu.CompilerParams(
            dimension_semantics=("arbitrary",)),
    )(params["contact_w"], params["contact_b"],
      tok2d, params["embed"],
      params["ln1_g"], params["ln1_b"], params["wqkv"], params["bqkv"],
      params["wo"], params["bo"], params["ln2_g"], params["ln2_b"],
      params["w1"], params["b1"], params["w2"], params["b2"],
      params["lnf_g"], params["lnf_b"])
    return reps, contacts


# ----------------------------------- main ----------------------------------- #

if __name__ == "__main__":
    key = jax.random.PRNGKey(0)
    k_tok, k_param = jax.random.split(key)

    B, seq_len = 2, 8                 # peptides of 8 residues
    VOCAB, D, H, L, FFN = 33, 32, 4, 5, 128
    T = seq_len + 2                   # + BOS/CLS and EOS

    # deterministic "tokenized" peptides: <cls>=0, residues in [4, 24), <eos>=2
    residues = jax.random.randint(k_tok, (B, seq_len), 4, 24, dtype=jnp.int32)
    cls_col = jnp.zeros((B, 1), jnp.int32)
    eos_col = jnp.full((B, 1), 2, jnp.int32)
    tokens = jnp.concatenate([cls_col, residues, eos_col], axis=1)   # [B, T]

    params = init_params(k_param, VOCAB, D, H, L, FFN)

    reps, contacts = finetune_esm2_forward(tokens, params, H)
    jax.block_until_ready((reps, contacts))

    assert reps.shape == (B, seq_len, D), reps.shape
    assert contacts.shape == (B, seq_len, seq_len), contacts.shape
    assert bool(jnp.all(jnp.isfinite(reps))) and bool(jnp.all(jnp.isfinite(contacts)))
    print("KERNEL_OK")
</pallas_src>

<mosaic_0001>
module attributes {stable_mosaic.version = 11 : i64} {
  func.func @_esm2_fused_kernel(%arg0: i32, %arg1: memref<20xf32, #tpu.memory_space<smem>>, %arg2: memref<1xf32, #tpu.memory_space<smem>>, %arg3: memref<20x1xi32, #tpu.memory_space<vmem>>, %arg4: memref<33x32xbf16, #tpu.memory_space<vmem>>, %arg5: memref<5x1x32xf32, #tpu.memory_space<vmem>>, %arg6: memref<5x1x32xf32, #tpu.memory_space<vmem>>, %arg7: memref<5x32x96xbf16, #tpu.memory_space<vmem>>, %arg8: memref<5x1x96xf32, #tpu.memory_space<vmem>>, %arg9: memref<5x32x32xbf16, #tpu.memory_space<vmem>>, %arg10: memref<5x1x32xf32, #tpu.memory_space<vmem>>, %arg11: memref<5x1x32xf32, #tpu.memory_space<vmem>>, %arg12: memref<5x1x32xf32, #tpu.memory_space<vmem>>, %arg13: memref<5x32x128xbf16, #tpu.memory_space<vmem>>, %arg14: memref<5x1x128xf32, #tpu.memory_space<vmem>>, %arg15: memref<5x128x32xbf16, #tpu.memory_space<vmem>>, %arg16: memref<5x1x32xf32, #tpu.memory_space<vmem>>, %arg17: memref<1x32xf32, #tpu.memory_space<vmem>>, %arg18: memref<1x32xf32, #tpu.memory_space<vmem>>, %arg19: memref<2x8x32xf32, #tpu.memory_space<vmem>>, %arg20: memref<2x8x8xf32, #tpu.memory_space<vmem>>) attributes {dimension_semantics = [#tpu.dimension_semantics<arbitrary>], iteration_bounds = array<i64: 1>, scalar_prefetch = 2 : i64, scratch_operands = 0 : i64, tpu.core_type = #tpu.core_type<tc>, window_params = [{pipeline_mode = #tpu.pipeline_mode<synchronous>, transform_indices = @transform_0, window_bounds = array<i64: 20, 1>}, {pipeline_mode = #tpu.pipeline_mode<synchronous>, transform_indices = @transform_1, window_bounds = array<i64: 33, 32>}, {pipeline_mode = #tpu.pipeline_mode<synchronous>, transform_indices = @transform_2, window_bounds = array<i64: 5, 1, 32>}, {pipeline_mode = #tpu.pipeline_mode<synchronous>, transform_indices = @transform_3, window_bounds = array<i64: 5, 1, 32>}, {pipeline_mode = #tpu.pipeline_mode<synchronous>, transform_indices = @transform_4, window_bounds = array<i64: 5, 32, 96>}, {pipeline_mode = #tpu.pipeline_mode<synchronous>, transform_indices = @transform_5, window_bounds = array<i64: 5, 1, 96>}, {pipeline_mode = #tpu.pipeline_mode<synchronous>, transform_indices = @transform_6, window_bounds = array<i64: 5, 32, 32>}, {pipeline_mode = #tpu.pipeline_mode<synchronous>, transform_indices = @transform_7, window_bounds = array<i64: 5, 1, 32>}, {pipeline_mode = #tpu.pipeline_mode<synchronous>, transform_indices = @transform_8, window_bounds = array<i64: 5, 1, 32>}, {pipeline_mode = #tpu.pipeline_mode<synchronous>, transform_indices = @transform_9, window_bounds = array<i64: 5, 1, 32>}, {pipeline_mode = #tpu.pipeline_mode<synchronous>, transform_indices = @transform_10, window_bounds = array<i64: 5, 32, 128>}, {pipeline_mode = #tpu.pipeline_mode<synchronous>, transform_indices = @transform_11, window_bounds = array<i64: 5, 1, 128>}, {pipeline_mode = #tpu.pipeline_mode<synchronous>, transform_indices = @transform_12, window_bounds = array<i64: 5, 128, 32>}, {pipeline_mode = #tpu.pipeline_mode<synchronous>, transform_indices = @transform_13, window_bounds = array<i64: 5, 1, 32>}, {pipeline_mode = #tpu.pipeline_mode<synchronous>, transform_indices = @transform_14, window_bounds = array<i64: 1, 32>}, {pipeline_mode = #tpu.pipeline_mode<synchronous>, transform_indices = @transform_15, window_bounds = array<i64: 1, 32>}, {pipeline_mode = #tpu.pipeline_mode<synchronous>, transform_indices = @transform_16, window_bounds = array<i64: 2, 8, 32>}, {pipeline_mode = #tpu.pipeline_mode<synchronous>, transform_indices = @transform_17, window_bounds = array<i64: 2, 8, 8>}]} {
    %c0 = arith.constant 0 : index
    %c0_0 = arith.constant 0 : index
    %0 = vector.load %arg3[%c0, %c0_0] : memref<20x1xi32, #tpu.memory_space<vmem>>, vector<20x1xi32>
    %1 = tpu.iota {dimensions = array<i32: 1>} : vector<20x33xi32>
    %2 = vector.broadcast %0 : vector<20x1xi32> to vector<20x33xi32>
    %3 = arith.cmpi eq, %2, %1 : vector<20x33xi32>
    %4 = arith.extui %3 : vector<20x33xi1> to vector<20x33xi32>
    %5 = arith.sitofp %4 : vector<20x33xi32> to vector<20x33xf32>
    %6 = arith.truncf %5 : vector<20x33xf32> to vector<20x33xbf16>
    %c0_1 = arith.constant 0 : index
    %c0_2 = arith.constant 0 : index
    %7 = vector.load %arg4[%c0_1, %c0_2] : memref<33x32xbf16, #tpu.memory_space<vmem>>, vector<33x32xbf16>
    %cst = arith.constant dense<0.000000e+00> : vector<20x32xf32>
    %8 = tpu.matmul %6, %7, %cst {dimension_numbers = #tpu.dot_dimension_numbers<[1], [0], [0], [1], [0, 0, 1, 1], [], []>} : vector<20x33xbf16>, vector<33x32xbf16>, vector<20x32xf32> -> vector<20x32xf32>
    %9 = tpu.iota {dimensions = array<i32: 0>} : vector<10x10xi32>
    %10 = tpu.iota {dimensions = array<i32: 1>} : vector<10x10xi32>
    %c0_i32 = arith.constant 0 : i32
    %11 = vector.broadcast %c0_i32 : i32 to vector<10x10xi32>
    %12 = arith.cmpi sgt, %9, %11 : vector<10x10xi32>
    %c9_i32 = arith.constant 9 : i32
    %13 = vector.broadcast %c9_i32 : i32 to vector<10x10xi32>
    %14 = arith.cmpi slt, %9, %13 : vector<10x10xi32>
    %15 = arith.andi %12, %14 : vector<10x10xi1>
    %c0_i32_3 = arith.constant 0 : i32
    %16 = vector.broadcast %c0_i32_3 : i32 to vector<10x10xi32>
    %17 = arith.cmpi sgt, %10, %16 : vector<10x10xi32>
    %18 = arith.andi %15, %17 : vector<10x10xi1>
    %c9_i32_4 = arith.constant 9 : i32
    %19 = vector.broadcast %c9_i32_4 : i32 to vector<10x10xi32>
    %20 = arith.cmpi slt, %10, %19 : vector<10x10xi32>
    %21 = arith.andi %18, %20 : vector<10x10xi1>
    %22 = arith.extui %21 : vector<10x10xi1> to vector<10x10xi32>
    %23 = arith.sitofp %22 : vector<10x10xi32> to vector<10x10xf32>
    %cst_5 = arith.constant 0.000000e+00 : f32
    %24 = vector.broadcast %cst_5 : f32 to vector<10x10xf32>
    %cst_6 = arith.constant 0.000000e+00 : f32
    %25 = vector.broadcast %cst_6 : f32 to vector<10x10xf32>
    %c0_i32_7 = arith.constant 0 : i32
    %c5_i32 = arith.constant 5 : i32
    %26 = arith.addi %c0_i32_7, %c5_i32 : i32
    %c1_i32 = arith.constant 1 : i32
    %27:3 = scf.for %arg21 = %c0_i32_7 to %26 step %c1_i32 iter_args(%arg22 = %8, %arg23 = %24, %arg24 = %25) -> (vector<20x32xf32>, vector<10x10xf32>, vector<10x10xf32>)  : i32 {
      %84 = arith.index_cast %arg21 : i32 to index
      %c0_33 = arith.constant 0 : index
      %c0_34 = arith.constant 0 : index
      %85 = vector.load %arg5[%84, %c0_33, %c0_34] : memref<5x1x32xf32, #tpu.memory_space<vmem>>, vector<1x1x32xf32>
      %86 = vector.shape_cast %85 : vector<1x1x32xf32> to vector<1x32xf32>
      %87 = arith.index_cast %arg21 : i32 to index
      %c0_35 = arith.constant 0 : index
      %c0_36 = arith.constant 0 : index
      %88 = vector.load %arg6[%87, %c0_35, %c0_36] : memref<5x1x32xf32, #tpu.memory_space<vmem>>, vector<1x1x32xf32>
      %89 = vector.shape_cast %88 : vector<1x1x32xf32> to vector<1x32xf32>
      %cst_37 = arith.constant dense<0.000000e+00> : vector<20xf32>
      %90 = vector.multi_reduction <add>, %arg22, %cst_37 [1] : vector<20x32xf32> to vector<20xf32>
      %91 = vector.shape_cast %90 : vector<20xf32> to vector<20x1xf32>
      %cst_38 = arith.constant 3.200000e+01 : f32
      %92 = vector.broadcast %cst_38 : f32 to vector<20x1xf32>
      %93 = arith.divf %91, %92 : vector<20x1xf32>
      %94 = vector.broadcast %93 : vector<20x1xf32> to vector<20x32xf32>
      %95 = arith.subf %arg22, %94 : vector<20x32xf32>
      %96 = arith.mulf %95, %95 : vector<20x32xf32>
      %cst_39 = arith.constant dense<0.000000e+00> : vector<20xf32>
      %97 = vector.multi_reduction <add>, %96, %cst_39 [1] : vector<20x32xf32> to vector<20xf32>
      %98 = vector.shape_cast %97 : vector<20xf32> to vector<20x1xf32>
      %cst_40 = arith.constant 3.200000e+01 : f32
      %99 = vector.broadcast %cst_40 : f32 to vector<20x1xf32>
      %100 = arith.divf %98, %99 : vector<20x1xf32>
      %101 = vector.broadcast %93 : vector<20x1xf32> to vector<20x32xf32>
      %102 = arith.subf %arg22, %101 : vector<20x32xf32>
      %cst_41 = arith.constant 9.99999974E-6 : f32
      %103 = vector.broadcast %cst_41 : f32 to vector<20x1xf32>
      %104 = arith.addf %100, %103 : vector<20x1xf32>
      %105 = math.rsqrt %104 : vector<20x1xf32>
      %106 = vector.broadcast %105 : vector<20x1xf32> to vector<20x32xf32>
      %107 = arith.mulf %102, %106 : vector<20x32xf32>
      %108 = vector.broadcast %86 : vector<1x32xf32> to vector<20x32xf32>
      %109 = arith.mulf %107, %108 : vector<20x32xf32>
      %110 = vector.broadcast %89 : vector<1x32xf32> to vector<20x32xf32>
      %111 = arith.addf %109, %110 : vector<20x32xf32>
      %112 = arith.index_cast %arg21 : i32 to index
      %c0_42 = arith.constant 0 : index
      %c0_43 = arith.constant 0 : index
      %113 = vector.load %arg7[%112, %c0_42, %c0_43] : memref<5x32x96xbf16, #tpu.memory_space<vmem>>, vector<1x32x96xbf16>
      %114 = vector.shape_cast %113 : vector<1x32x96xbf16> to vector<32x96xbf16>
      %115 = arith.truncf %111 : vector<20x32xf32> to vector<20x32xbf16>
      %cst_44 = arith.constant dense<0.000000e+00> : vector<20x96xf32>
      %116 = tpu.matmul %115, %114, %cst_44 {dimension_numbers = #tpu.dot_dimension_numbers<[1], [0], [0], [1], [0, 0, 1, 1], [], []>} : vector<20x32xbf16>, vector<32x96xbf16>, vector<20x96xf32> -> vector<20x96xf32>
      %117 = arith.index_cast %arg21 : i32 to index
      %c0_45 = arith.constant 0 : index
      %c0_46 = arith.constant 0 : index
      %118 = vector.load %arg8[%117, %c0_45, %c0_46] : memref<5x1x96xf32, #tpu.memory_space<vmem>>, vector<1x1x96xf32>
      %119 = vector.shape_cast %118 : vector<1x1x96xf32> to vector<1x96xf32>
      %120 = vector.broadcast %119 : vector<1x96xf32> to vector<20x96xf32>
      %121 = arith.addf %116, %120 : vector<20x96xf32>
      %122 = vector.extract_strided_slice %121 {offsets = [0, 0], sizes = [20, 32], strides = [1, 1]} : vector<20x96xf32> to vector<20x32xf32>
      %cst_47 = arith.constant 0.353553385 : f32
      %123 = vector.broadcast %cst_47 : f32 to vector<20x32xf32>
      %124 = arith.mulf %122, %123 : vector<20x32xf32>
      %125 = arith.truncf %124 : vector<20x32xf32> to vector<20x32xbf16>
      %126 = vector.extract_strided_slice %121 {offsets = [0, 32], sizes = [20, 32], strides = [1, 1]} : vector<20x96xf32> to vector<20x32xf32>
      %127 = arith.truncf %126 : vector<20x32xf32> to vector<20x32xbf16>
      %128 = vector.extract_strided_slice %121 {offsets = [0, 64], sizes = [20, 32], strides = [1, 1]} : vector<20x96xf32> to vector<20x32xf32>
      %129 = arith.truncf %128 : vector<20x32xf32> to vector<20x32xbf16>
      %130 = arith.index_cast %arg21 : i32 to index
      %c0_48 = arith.constant 0 : index
      %c0_49 = arith.constant 0 : index
      %131 = vector.load %arg9[%130, %c0_48, %c0_49] : memref<5x32x32xbf16, #tpu.memory_space<vmem>>, vector<1x32x32xbf16>
      %132 = vector.shape_cast %131 : vector<1x32x32xbf16> to vector<32x32xbf16>
      %133 = vector.extract_strided_slice %125 {offsets = [0, 0], sizes = [10, 32], strides = [1, 1]} : vector<20x32xbf16> to vector<10x32xbf16>
      %134 = vector.extract_strided_slice %127 {offsets = [0, 0], sizes = [10, 32], strides = [1, 1]} : vector<20x32xbf16> to vector<10x32xbf16>
      %135 = vector.extract_strided_slice %129 {offsets = [0, 0], sizes = [10, 32], strides = [1, 1]} : vector<20x32xbf16> to vector<10x32xbf16>
      %cst_50 = arith.constant 0.000000e+00 : f32
      %136 = vector.broadcast %cst_50 : f32 to vector<10x32xf32>
      %137 = vector.extract_strided_slice %133 {offsets = [0, 0], sizes = [10, 8], strides = [1, 1]} : vector<10x32xbf16> to vector<10x8xbf16>
      %138 = vector.extract_strided_slice %134 {offsets = [0, 0], sizes = [10, 8], strides = [1, 1]} : vector<10x32xbf16> to vector<10x8xbf16>
      %139 = vector.extract_strided_slice %135 {offsets = [0, 0], sizes = [10, 8], strides = [1, 1]} : vector<10x32xbf16> to vector<10x8xbf16>
      %cst_51 = arith.constant dense<0.000000e+00> : vector<10x10xf32>
      %140 = tpu.matmul %137, %138, %cst_51 {dimension_numbers = #tpu.dot_dimension_numbers<[1], [1], [0], [0], [0, 0, 1, 0], [], []>} : vector<10x8xbf16>, vector<10x8xbf16>, vector<10x10xf32> -> vector<10x10xf32>
      %cst_52 = arith.constant dense<0xFF800000> : vector<10xf32>
      %141 = vector.multi_reduction <maximumf>, %140, %cst_52 [1] : vector<10x10xf32> to vector<10xf32>
      %142 = vector.shape_cast %141 : vector<10xf32> to vector<10x1xf32>
      %143 = vector.broadcast %142 : vector<10x1xf32> to vector<10x10xf32>
      %144 = arith.subf %140, %143 : vector<10x10xf32>
      %145 = math.exp %144 : vector<10x10xf32>
      %cst_53 = arith.constant dense<0.000000e+00> : vector<10xf32>
      %146 = vector.multi_reduction <add>, %145, %cst_53 [1] : vector<10x10xf32> to vector<10xf32>
      %147 = vector.shape_cast %146 : vector<10xf32> to vector<10x1xf32>
      %148 = vector.broadcast %147 : vector<10x1xf32> to vector<10x10xf32>
      %149 = arith.divf %145, %148 : vector<10x10xf32>
      %150 = arith.truncf %149 : vector<10x10xf32> to vector<10x10xbf16>
      %cst_54 = arith.constant dense<0.000000e+00> : vector<10x8xf32>
      %151 = tpu.matmul %150, %139, %cst_54 {dimension_numbers = #tpu.dot_dimension_numbers<[1], [0], [0], [1], [0, 0, 1, 1], [], []>} : vector<10x10xbf16>, vector<10x8xbf16>, vector<10x8xf32> -> vector<10x8xf32>
      %152 = arith.truncf %151 : vector<10x8xf32> to vector<10x8xbf16>
      %153 = vector.extract_strided_slice %132 {offsets = [0, 0], sizes = [8, 32], strides = [1, 1]} : vector<32x32xbf16> to vector<8x32xbf16>
      %cst_55 = arith.constant dense<0.000000e+00> : vector<10x32xf32>
      %154 = tpu.matmul %152, %153, %cst_55 {dimension_numbers = #tpu.dot_dimension_numbers<[1], [0], [0], [1], [0, 0, 1, 1], [], []>} : vector<10x8xbf16>, vector<8x32xbf16>, vector<10x32xf32> -> vector<10x32xf32>
      %155 = arith.addf %136, %154 : vector<10x32xf32>
      %156 = tpu.transpose %149, [1, 0] : vector<10x10xf32> -> vector<10x10xf32>
      %157 = arith.addf %149, %156 : vector<10x10xf32>
      %158 = arith.mulf %157, %23 : vector<10x10xf32>
      %cst_56 = arith.constant dense<0.000000e+00> : vector<10xf32>
      %159 = vector.multi_reduction <add>, %158, %cst_56 [1] : vector<10x10xf32> to vector<10xf32>
      %160 = vector.shape_cast %159 : vector<10xf32> to vector<10x1xf32>
      %cst_57 = arith.constant dense<0.000000e+00> : vector<10xf32>
      %161 = vector.multi_reduction <add>, %158, %cst_57 [0] : vector<10x10xf32> to vector<10xf32>
      %162 = vector.shape_cast %161 : vector<10xf32> to vector<1x10xf32>
      %163 = vector.shape_cast %158 : vector<10x10xf32> to vector<1x10x10xf32>
      %cst_58 = arith.constant dense<0.000000e+00> : vector<1xf32>
      %164 = vector.multi_reduction <add>, %163, %cst_58 [1, 2] : vector<1x10x10xf32> to vector<1xf32>
      %165 = vector.shape_cast %164 : vector<1xf32> to vector<1x1x1xf32>
      %166 = vector.extract %165[0, 0, 0] : f32 from vector<1x1x1xf32>
      %167 = vector.broadcast %160 : vector<10x1xf32> to vector<10x10xf32>
      %168 = vector.broadcast %162 : vector<1x10xf32> to vector<10x10xf32>
      %169 = arith.mulf %167, %168 : vector<10x10xf32>
      %170 = vector.broadcast %166 : f32 to vector<10x10xf32>
      %171 = arith.divf %169, %170 : vector<10x10xf32>
      %172 = arith.subf %158, %171 : vector<10x10xf32>
      %c4_i32 = arith.constant 4 : i32
      %173 = arith.muli %arg21, %c4_i32 : i32
      %c0_i32_59 = arith.constant 0 : i32
      %174 = arith.addi %173, %c0_i32_59 : i32
      %175 = arith.index_cast %174 : i32 to index
      %176 = memref.load %arg1[%175] : memref<20xf32, #tpu.memory_space<smem>>
      %177 = vector.broadcast %176 : f32 to vector<10x10xf32>
      %178 = arith.mulf %177, %172 : vector<10x10xf32>
      %179 = arith.addf %arg23, %178 : vector<10x10xf32>
      %180 = vector.extract_strided_slice %133 {offsets = [0, 8], sizes = [10, 8], strides = [1, 1]} : vector<10x32xbf16> to vector<10x8xbf16>
      %181 = vector.extract_strided_slice %134 {offsets = [0, 8], sizes = [10, 8], strides = [1, 1]} : vector<10x32xbf16> to vector<10x8xbf16>
      %182 = vector.extract_strided_slice %135 {offsets = [0, 8], sizes = [10, 8], strides = [1, 1]} : vector<10x32xbf16> to vector<10x8xbf16>
      %cst_60 = arith.constant dense<0.000000e+00> : vector<10x10xf32>
      %183 = tpu.matmul %180, %181, %cst_60 {dimension_numbers = #tpu.dot_dimension_numbers<[1], [1], [0], [0], [0, 0, 1, 0], [], []>} : vector<10x8xbf16>, vector<10x8xbf16>, vector<10x10xf32> -> vector<10x10xf32>
      %cst_61 = arith.constant dense<0xFF800000> : vector<10xf32>
      %184 = vector.multi_reduction <maximumf>, %183, %cst_61 [1] : vector<10x10xf32> to vector<10xf32>
      %185 = vector.shape_cast %184 : vector<10xf32> to vector<10x1xf32>
      %186 = vector.broadcast %185 : vector<10x1xf32> to vector<10x10xf32>
      %187 = arith.subf %183, %186 : vector<10x10xf32>
      %188 = math.exp %187 : vector<10x10xf32>
      %cst_62 = arith.constant dense<0.000000e+00> : vector<10xf32>
      %189 = vector.multi_reduction <add>, %188, %cst_62 [1] : vector<10x10xf32> to vector<10xf32>
      %190 = vector.shape_cast %189 : vector<10xf32> to vector<10x1xf32>
      %191 = vector.broadcast %190 : vector<10x1xf32> to vector<10x10xf32>
      %192 = arith.divf %188, %191 : vector<10x10xf32>
      %193 = arith.truncf %192 : vector<10x10xf32> to vector<10x10xbf16>
      %cst_63 = arith.constant dense<0.000000e+00> : vector<10x8xf32>
      %194 = tpu.matmul %193, %182, %cst_63 {dimension_numbers = #tpu.dot_dimension_numbers<[1], [0], [0], [1], [0, 0, 1, 1], [], []>} : vector<10x10xbf16>, vector<10x8xbf16>, vector<10x8xf32> -> vector<10x8xf32>
      %195 = arith.truncf %194 : vector<10x8xf32> to vector<10x8xbf16>
      %196 = vector.extract_strided_slice %132 {offsets = [8, 0], sizes = [8, 32], strides = [1, 1]} : vector<32x32xbf16> to vector<8x32xbf16>
      %cst_64 = arith.constant dense<0.000000e+00> : vector<10x32xf32>
      %197 = tpu.matmul %195, %196, %cst_64 {dimension_numbers = #tpu.dot_dimension_numbers<[1], [0], [0], [1], [0, 0, 1, 1], [], []>} : vector<10x8xbf16>, vector<8x32xbf16>, vector<10x32xf32> -> vector<10x32xf32>
      %198 = arith.addf %155, %197 : vector<10x32xf32>
      %199 = tpu.transpose %192, [1, 0] : vector<10x10xf32> -> vector<10x10xf32>
      %200 = arith.addf %192, %199 : vector<10x10xf32>
      %201 = arith.mulf %200, %23 : vector<10x10xf32>
      %cst_65 = arith.constant dense<0.000000e+00> : vector<10xf32>
      %202 = vector.multi_reduction <add>, %201, %cst_65 [1] : vector<10x10xf32> to vector<10xf32>
      %203 = vector.shape_cast %202 : vector<10xf32> to vector<10x1xf32>
      %cst_66 = arith.constant dense<0.000000e+00> : vector<10xf32>
      %204 = vector.multi_reduction <add>, %201, %cst_66 [0] : vector<10x10xf32> to vector<10xf32>
      %205 = vector.shape_cast %204 : vector<10xf32> to vector<1x10xf32>
      %206 = vector.shape_cast %201 : vector<10x10xf32> to vector<1x10x10xf32>
      %cst_67 = arith.constant dense<0.000000e+00> : vector<1xf32>
      %207 = vector.multi_reduction <add>, %206, %cst_67 [1, 2] : vector<1x10x10xf32> to vector<1xf32>
      %208 = vector.shape_cast %207 : vector<1xf32> to vector<1x1x1xf32>
      %209 = vector.extract %208[0, 0, 0] : f32 from vector<1x1x1xf32>
      %210 = vector.broadcast %203 : vector<10x1xf32> to vector<10x10xf32>
      %211 = vector.broadcast %205 : vector<1x10xf32> to vector<10x10xf32>
      %212 = arith.mulf %210, %211 : vector<10x10xf32>
      %213 = vector.broadcast %209 : f32 to vector<10x10xf32>
      %214 = arith.divf %212, %213 : vector<10x10xf32>
      %215 = arith.subf %201, %214 : vector<10x10xf32>
      %c4_i32_68 = arith.constant 4 : i32
      %216 = arith.muli %arg21, %c4_i32_68 : i32
      %c1_i32_69 = arith.constant 1 : i32
      %217 = arith.addi %216, %c1_i32_69 : i32
      %218 = arith.index_cast %217 : i32 to index
      %219 = memref.load %arg1[%218] : memref<20xf32, #tpu.memory_space<smem>>
      %220 = vector.broadcast %219 : f32 to vector<10x10xf32>
      %221 = arith.mulf %220, %215 : vector<10x10xf32>
      %222 = arith.addf %179, %221 : vector<10x10xf32>
      %223 = vector.extract_strided_slice %133 {offsets = [0, 16], sizes = [10, 8], strides = [1, 1]} : vector<10x32xbf16> to vector<10x8xbf16>
      %224 = vector.extract_strided_slice %134 {offsets = [0, 16], sizes = [10, 8], strides = [1, 1]} : vector<10x32xbf16> to vector<10x8xbf16>
      %225 = vector.extract_strided_slice %135 {offsets = [0, 16], sizes = [10, 8], strides = [1, 1]} : vector<10x32xbf16> to vector<10x8xbf16>
      %cst_70 = arith.constant dense<0.000000e+00> : vector<10x10xf32>
      %226 = tpu.matmul %223, %224, %cst_70 {dimension_numbers = #tpu.dot_dimension_numbers<[1], [1], [0], [0], [0, 0, 1, 0], [], []>} : vector<10x8xbf16>, vector<10x8xbf16>, vector<10x10xf32> -> vector<10x10xf32>
      %cst_71 = arith.constant dense<0xFF800000> : vector<10xf32>
      %227 = vector.multi_reduction <maximumf>, %226, %cst_71 [1] : vector<10x10xf32> to vector<10xf32>
      %228 = vector.shape_cast %227 : vector<10xf32> to vector<10x1xf32>
      %229 = vector.broadcast %228 : vector<10x1xf32> to vector<10x10xf32>
      %230 = arith.subf %226, %229 : vector<10x10xf32>
      %231 = math.exp %230 : vector<10x10xf32>
      %cst_72 = arith.constant dense<0.000000e+00> : vector<10xf32>
      %232 = vector.multi_reduction <add>, %231, %cst_72 [1] : vector<10x10xf32> to vector<10xf32>
      %233 = vector.shape_cast %232 : vector<10xf32> to vector<10x1xf32>
      %234 = vector.broadcast %233 : vector<10x1xf32> to vector<10x10xf32>
      %235 = arith.divf %231, %234 : vector<10x10xf32>
      %236 = arith.truncf %235 : vector<10x10xf32> to vector<10x10xbf16>
      %cst_73 = arith.constant dense<0.000000e+00> : vector<10x8xf32>
      %237 = tpu.matmul %236, %225, %cst_73 {dimension_numbers = #tpu.dot_dimension_numbers<[1], [0], [0], [1], [0, 0, 1, 1], [], []>} : vector<10x10xbf16>, vector<10x8xbf16>, vector<10x8xf32> -> vector<10x8xf32>
      %238 = arith.truncf %237 : vector<10x8xf32> to vector<10x8xbf16>
      %239 = vector.extract_strided_slice %132 {offsets = [16, 0], sizes = [8, 32], strides = [1, 1]} : vector<32x32xbf16> to vector<8x32xbf16>
      %cst_74 = arith.constant dense<0.000000e+00> : vector<10x32xf32>
      %240 = tpu.matmul %238, %239, %cst_74 {dimension_numbers = #tpu.dot_dimension_numbers<[1], [0], [0], [1], [0, 0, 1, 1], [], []>} : vector<10x8xbf16>, vector<8x32xbf16>, vector<10x32xf32> -> vector<10x32xf32>
      %241 = arith.addf %198, %240 : vector<10x32xf32>
      %242 = tpu.transpose %235, [1, 0] : vector<10x10xf32> -> vector<10x10xf32>
      %243 = arith.addf %235, %242 : vector<10x10xf32>
      %244 = arith.mulf %243, %23 : vector<10x10xf32>
      %cst_75 = arith.constant dense<0.000000e+00> : vector<10xf32>
      %245 = vector.multi_reduction <add>, %244, %cst_75 [1] : vector<10x10xf32> to vector<10xf32>
      %246 = vector.shape_cast %245 : vector<10xf32> to vector<10x1xf32>
      %cst_76 = arith.constant dense<0.000000e+00> : vector<10xf32>
      %247 = vector.multi_reduction <add>, %244, %cst_76 [0] : vector<10x10xf32> to vector<10xf32>
      %248 = vector.shape_cast %247 : vector<10xf32> to vector<1x10xf32>
      %249 = vector.shape_cast %244 : vector<10x10xf32> to vector<1x10x10xf32>
      %cst_77 = arith.constant dense<0.000000e+00> : vector<1xf32>
      %250 = vector.multi_reduction <add>, %249, %cst_77 [1, 2] : vector<1x10x10xf32> to vector<1xf32>
      %251 = vector.shape_cast %250 : vector<1xf32> to vector<1x1x1xf32>
      %252 = vector.extract %251[0, 0, 0] : f32 from vector<1x1x1xf32>
      %253 = vector.broadcast %246 : vector<10x1xf32> to vector<10x10xf32>
      %254 = vector.broadcast %248 : vector<1x10xf32> to vector<10x10xf32>
      %255 = arith.mulf %253, %254 : vector<10x10xf32>
      %256 = vector.broadcast %252 : f32 to vector<10x10xf32>
      %257 = arith.divf %255, %256 : vector<10x10xf32>
      %258 = arith.subf %244, %257 : vector<10x10xf32>
      %c4_i32_78 = arith.constant 4 : i32
      %259 = arith.muli %arg21, %c4_i32_78 : i32
      %c2_i32 = arith.constant 2 : i32
      %260 = arith.addi %259, %c2_i32 : i32
      %261 = arith.index_cast %260 : i32 to index
      %262 = memref.load %arg1[%261] : memref<20xf32, #tpu.memory_space<smem>>
      %263 = vector.broadcast %262 : f32 to vector<10x10xf32>
      %264 = arith.mulf %263, %258 : vector<10x10xf32>
      %265 = arith.addf %222, %264 : vector<10x10xf32>
      %266 = vector.extract_strided_slice %133 {offsets = [0, 24], sizes = [10, 8], strides = [1, 1]} : vector<10x32xbf16> to vector<10x8xbf16>
      %267 = vector.extract_strided_slice %134 {offsets = [0, 24], sizes = [10, 8], strides = [1, 1]} : vector<10x32xbf16> to vector<10x8xbf16>
      %268 = vector.extract_strided_slice %135 {offsets = [0, 24], sizes = [10, 8], strides = [1, 1]} : vector<10x32xbf16> to vector<10x8xbf16>
      %cst_79 = arith.constant dense<0.000000e+00> : vector<10x10xf32>
      %269 = tpu.matmul %266, %267, %cst_79 {dimension_numbers = #tpu.dot_dimension_numbers<[1], [1], [0], [0], [0, 0, 1, 0], [], []>} : vector<10x8xbf16>, vector<10x8xbf16>, vector<10x10xf32> -> vector<10x10xf32>
      %cst_80 = arith.constant dense<0xFF800000> : vector<10xf32>
      %270 = vector.multi_reduction <maximumf>, %269, %cst_80 [1] : vector<10x10xf32> to vector<10xf32>
      %271 = vector.shape_cast %270 : vector<10xf32> to vector<10x1xf32>
      %272 = vector.broadcast %271 : vector<10x1xf32> to vector<10x10xf32>
      %273 = arith.subf %269, %272 : vector<10x10xf32>
      %274 = math.exp %273 : vector<10x10xf32>
      %cst_81 = arith.constant dense<0.000000e+00> : vector<10xf32>
      %275 = vector.multi_reduction <add>, %274, %cst_81 [1] : vector<10x10xf32> to vector<10xf32>
      %276 = vector.shape_cast %275 : vector<10xf32> to vector<10x1xf32>
      %277 = vector.broadcast %276 : vector<10x1xf32> to vector<10x10xf32>
      %278 = arith.divf %274, %277 : vector<10x10xf32>
      %279 = arith.truncf %278 : vector<10x10xf32> to vector<10x10xbf16>
      %cst_82 = arith.constant dense<0.000000e+00> : vector<10x8xf32>
      %280 = tpu.matmul %279, %268, %cst_82 {dimension_numbers = #tpu.dot_dimension_numbers<[1], [0], [0], [1], [0, 0, 1, 1], [], []>} : vector<10x10xbf16>, vector<10x8xbf16>, vector<10x8xf32> -> vector<10x8xf32>
      %281 = arith.truncf %280 : vector<10x8xf32> to vector<10x8xbf16>
      %282 = vector.extract_strided_slice %132 {offsets = [24, 0], sizes = [8, 32], strides = [1, 1]} : vector<32x32xbf16> to vector<8x32xbf16>
      %cst_83 = arith.constant dense<0.000000e+00> : vector<10x32xf32>
      %283 = tpu.matmul %281, %282, %cst_83 {dimension_numbers = #tpu.dot_dimension_numbers<[1], [0], [0], [1], [0, 0, 1, 1], [], []>} : vector<10x8xbf16>, vector<8x32xbf16>, vector<10x32xf32> -> vector<10x32xf32>
      %284 = arith.addf %241, %283 : vector<10x32xf32>
      %285 = tpu.transpose %278, [1, 0] : vector<10x10xf32> -> vector<10x10xf32>
      %286 = arith.addf %278, %285 : vector<10x10xf32>
      %287 = arith.mulf %286, %23 : vector<10x10xf32>
      %cst_84 = arith.constant dense<0.000000e+00> : vector<10xf32>
      %288 = vector.multi_reduction <add>, %287, %cst_84 [1] : vector<10x10xf32> to vector<10xf32>
      %289 = vector.shape_cast %288 : vector<10xf32> to vector<10x1xf32>
      %cst_85 = arith.constant dense<0.000000e+00> : vector<10xf32>
      %290 = vector.multi_reduction <add>, %287, %cst_85 [0] : vector<10x10xf32> to vector<10xf32>
      %291 = vector.shape_cast %290 : vector<10xf32> to vector<1x10xf32>
      %292 = vector.shape_cast %287 : vector<10x10xf32> to vector<1x10x10xf32>
      %cst_86 = arith.constant dense<0.000000e+00> : vector<1xf32>
      %293 = vector.multi_reduction <add>, %292, %cst_86 [1, 2] : vector<1x10x10xf32> to vector<1xf32>
      %294 = vector.shape_cast %293 : vector<1xf32> to vector<1x1x1xf32>
      %295 = vector.extract %294[0, 0, 0] : f32 from vector<1x1x1xf32>
      %296 = vector.broadcast %289 : vector<10x1xf32> to vector<10x10xf32>
      %297 = vector.broadcast %291 : vector<1x10xf32> to vector<10x10xf32>
      %298 = arith.mulf %296, %297 : vector<10x10xf32>
      %299 = vector.broadcast %295 : f32 to vector<10x10xf32>
      %300 = arith.divf %298, %299 : vector<10x10xf32>
      %301 = arith.subf %287, %300 : vector<10x10xf32>
      %c4_i32_87 = arith.constant 4 : i32
      %302 = arith.muli %arg21, %c4_i32_87 : i32
      %c3_i32 = arith.constant 3 : i32
      %303 = arith.addi %302, %c3_i32 : i32
      %304 = arith.index_cast %303 : i32 to index
      %305 = memref.load %arg1[%304] : memref<20xf32, #tpu.memory_space<smem>>
      %306 = vector.broadcast %305 : f32 to vector<10x10xf32>
      %307 = arith.mulf %306, %301 : vector<10x10xf32>
      %308 = arith.addf %265, %307 : vector<10x10xf32>
      %309 = vector.extract_strided_slice %125 {offsets = [10, 0], sizes = [10, 32], strides = [1, 1]} : vector<20x32xbf16> to vector<10x32xbf16>
      %310 = vector.extract_strided_slice %127 {offsets = [10, 0], sizes = [10, 32], strides = [1, 1]} : vector<20x32xbf16> to vector<10x32xbf16>
      %311 = vector.extract_strided_slice %129 {offsets = [10, 0], sizes = [10, 32], strides = [1, 1]} : vector<20x32xbf16> to vector<10x32xbf16>
      %cst_88 = arith.constant 0.000000e+00 : f32
      %312 = vector.broadcast %cst_88 : f32 to vector<10x32xf32>
      %313 = vector.extract_strided_slice %309 {offsets = [0, 0], sizes = [10, 8], strides = [1, 1]} : vector<10x32xbf16> to vector<10x8xbf16>
      %314 = vector.extract_strided_slice %310 {offsets = [0, 0], sizes = [10, 8], strides = [1, 1]} : vector<10x32xbf16> to vector<10x8xbf16>
      %315 = vector.extract_strided_slice %311 {offsets = [0, 0], sizes = [10, 8], strides = [1, 1]} : vector<10x32xbf16> to vector<10x8xbf16>
      %cst_89 = arith.constant dense<0.000000e+00> : vector<10x10xf32>
      %316 = tpu.matmul %313, %314, %cst_89 {dimension_numbers = #tpu.dot_dimension_numbers<[1], [1], [0], [0], [0, 0, 1, 0], [], []>} : vector<10x8xbf16>, vector<10x8xbf16>, vector<10x10xf32> -> vector<10x10xf32>
      %cst_90 = arith.constant dense<0xFF800000> : vector<10xf32>
      %317 = vector.multi_reduction <maximumf>, %316, %cst_90 [1] : vector<10x10xf32> to vector<10xf32>
      %318 = vector.shape_cast %317 : vector<10xf32> to vector<10x1xf32>
      %319 = vector.broadcast %318 : vector<10x1xf32> to vector<10x10xf32>
      %320 = arith.subf %316, %319 : vector<10x10xf32>
      %321 = math.exp %320 : vector<10x10xf32>
      %cst_91 = arith.constant dense<0.000000e+00> : vector<10xf32>
      %322 = vector.multi_reduction <add>, %321, %cst_91 [1] : vector<10x10xf32> to vector<10xf32>
      %323 = vector.shape_cast %322 : vector<10xf32> to vector<10x1xf32>
      %324 = vector.broadcast %323 : vector<10x1xf32> to vector<10x10xf32>
      %325 = arith.divf %321, %324 : vector<10x10xf32>
      %326 = arith.truncf %325 : vector<10x10xf32> to vector<10x10xbf16>
      %cst_92 = arith.constant dense<0.000000e+00> : vector<10x8xf32>
      %327 = tpu.matmul %326, %315, %cst_92 {dimension_numbers = #tpu.dot_dimension_numbers<[1], [0], [0], [1], [0, 0, 1, 1], [], []>} : vector<10x10xbf16>, vector<10x8xbf16>, vector<10x8xf32> -> vector<10x8xf32>
      %328 = arith.truncf %327 : vector<10x8xf32> to vector<10x8xbf16>
      %329 = vector.extract_strided_slice %132 {offsets = [0, 0], sizes = [8, 32], strides = [1, 1]} : vector<32x32xbf16> to vector<8x32xbf16>
      %cst_93 = arith.constant dense<0.000000e+00> : vector<10x32xf32>
      %330 = tpu.matmul %328, %329, %cst_93 {dimension_numbers = #tpu.dot_dimension_numbers<[1], [0], [0], [1], [0, 0, 1, 1], [], []>} : vector<10x8xbf16>, vector<8x32xbf16>, vector<10x32xf32> -> vector<10x32xf32>
      %331 = arith.addf %312, %330 : vector<10x32xf32>
      %332 = tpu.transpose %325, [1, 0] : vector<10x10xf32> -> vector<10x10xf32>
      %333 = arith.addf %325, %332 : vector<10x10xf32>
      %334 = arith.mulf %333, %23 : vector<10x10xf32>
      %cst_94 = arith.constant dense<0.000000e+00> : vector<10xf32>
      %335 = vector.multi_reduction <add>, %334, %cst_94 [1] : vector<10x10xf32> to vector<10xf32>
      %336 = vector.shape_cast %335 : vector<10xf32> to vector<10x1xf32>
      %cst_95 = arith.constant dense<0.000000e+00> : vector<10xf32>
      %337 = vector.multi_reduction <add>, %334, %cst_95 [0] : vector<10x10xf32> to vector<10xf32>
      %338 = vector.shape_cast %337 : vector<10xf32> to vector<1x10xf32>
      %339 = vector.shape_cast %334 : vector<10x10xf32> to vector<1x10x10xf32>
      %cst_96 = arith.constant dense<0.000000e+00> : vector<1xf32>
      %340 = vector.multi_reduction <add>, %339, %cst_96 [1, 2] : vector<1x10x10xf32> to vector<1xf32>
      %341 = vector.shape_cast %340 : vector<1xf32> to vector<1x1x1xf32>
      %342 = vector.extract %341[0, 0, 0] : f32 from vector<1x1x1xf32>
      %343 = vector.broadcast %336 : vector<10x1xf32> to vector<10x10xf32>
      %344 = vector.broadcast %338 : vector<1x10xf32> to vector<10x10xf32>
      %345 = arith.mulf %343, %344 : vector<10x10xf32>
      %346 = vector.broadcast %342 : f32 to vector<10x10xf32>
      %347 = arith.divf %345, %346 : vector<10x10xf32>
      %348 = arith.subf %334, %347 : vector<10x10xf32>
      %c4_i32_97 = arith.constant 4 : i32
      %349 = arith.muli %arg21, %c4_i32_97 : i32
      %c0_i32_98 = arith.constant 0 : i32
      %350 = arith.addi %349, %c0_i32_98 : i32
      %351 = arith.index_cast %350 : i32 to index
      %352 = memref.load %arg1[%351] : memref<20xf32, #tpu.memory_space<smem>>
      %353 = vector.broadcast %352 : f32 to vector<10x10xf32>
      %354 = arith.mulf %353, %348 : vector<10x10xf32>
      %355 = arith.addf %arg24, %354 : vector<10x10xf32>
      %356 = vector.extract_strided_slice %309 {offsets = [0, 8], sizes = [10, 8], strides = [1, 1]} : vector<10x32xbf16> to vector<10x8xbf16>
      %357 = vector.extract_strided_slice %310 {offsets = [0, 8], sizes = [10, 8], strides = [1, 1]} : vector<10x32xbf16> to vector<10x8xbf16>
      %358 = vector.extract_strided_slice %311 {offsets = [0, 8], sizes = [10, 8], strides = [1, 1]} : vector<10x32xbf16> to vector<10x8xbf16>
      %cst_99 = arith.constant dense<0.000000e+00> : vector<10x10xf32>
      %359 = tpu.matmul %356, %357, %cst_99 {dimension_numbers = #tpu.dot_dimension_numbers<[1], [1], [0], [0], [0, 0, 1, 0], [], []>} : vector<10x8xbf16>, vector<10x8xbf16>, vector<10x10xf32> -> vector<10x10xf32>
      %cst_100 = arith.constant dense<0xFF800000> : vector<10xf32>
      %360 = vector.multi_reduction <maximumf>, %359, %cst_100 [1] : vector<10x10xf32> to vector<10xf32>
      %361 = vector.shape_cast %360 : vector<10xf32> to vector<10x1xf32>
      %362 = vector.broadcast %361 : vector<10x1xf32> to vector<10x10xf32>
      %363 = arith.subf %359, %362 : vector<10x10xf32>
      %364 = math.exp %363 : vector<10x10xf32>
      %cst_101 = arith.constant dense<0.000000e+00> : vector<10xf32>
      %365 = vector.multi_reduction <add>, %364, %cst_101 [1] : vector<10x10xf32> to vector<10xf32>
      %366 = vector.shape_cast %365 : vector<10xf32> to vector<10x1xf32>
      %367 = vector.broadcast %366 : vector<10x1xf32> to vector<10x10xf32>
      %368 = arith.divf %364, %367 : vector<10x10xf32>
      %369 = arith.truncf %368 : vector<10x10xf32> to vector<10x10xbf16>
      %cst_102 = arith.constant dense<0.000000e+00> : vector<10x8xf32>
      %370 = tpu.matmul %369, %358, %cst_102 {dimension_numbers = #tpu.dot_dimension_numbers<[1], [0], [0], [1], [0, 0, 1, 1], [], []>} : vector<10x10xbf16>, vector<10x8xbf16>, vector<10x8xf32> -> vector<10x8xf32>
      %371 = arith.truncf %370 : vector<10x8xf32> to vector<10x8xbf16>
      %372 = vector.extract_strided_slice %132 {offsets = [8, 0], sizes = [8, 32], strides = [1, 1]} : vector<32x32xbf16> to vector<8x32xbf16>
      %cst_103 = arith.constant dense<0.000000e+00> : vector<10x32xf32>
      %373 = tpu.matmul %371, %372, %cst_103 {dimension_numbers = #tpu.dot_dimension_numbers<[1], [0], [0], [1], [0, 0, 1, 1], [], []>} : vector<10x8xbf16>, vector<8x32xbf16>, vector<10x32xf32> -> vector<10x32xf32>
      %374 = arith.addf %331, %373 : vector<10x32xf32>
      %375 = tpu.transpose %368, [1, 0] : vector<10x10xf32> -> vector<10x10xf32>
      %376 = arith.addf %368, %375 : vector<10x10xf32>
      %377 = arith.mulf %376, %23 : vector<10x10xf32>
      %cst_104 = arith.constant dense<0.000000e+00> : vector<10xf32>
      %378 = vector.multi_reduction <add>, %377, %cst_104 [1] : vector<10x10xf32> to vector<10xf32>
      %379 = vector.shape_cast %378 : vector<10xf32> to vector<10x1xf32>
      %cst_105 = arith.constant dense<0.000000e+00> : vector<10xf32>
      %380 = vector.multi_reduction <add>, %377, %cst_105 [0] : vector<10x10xf32> to vector<10xf32>
      %381 = vector.shape_cast %380 : vector<10xf32> to vector<1x10xf32>
      %382 = vector.shape_cast %377 : vector<10x10xf32> to vector<1x10x10xf32>
      %cst_106 = arith.constant dense<0.000000e+00> : vector<1xf32>
      %383 = vector.multi_reduction <add>, %382, %cst_106 [1, 2] : vector<1x10x10xf32> to vector<1xf32>
      %384 = vector.shape_cast %383 : vector<1xf32> to vector<1x1x1xf32>
      %385 = vector.extract %384[0, 0, 0] : f32 from vector<1x1x1xf32>
      %386 = vector.broadcast %379 : vector<10x1xf32> to vector<10x10xf32>
      %387 = vector.broadcast %381 : vector<1x10xf32> to vector<10x10xf32>
      %388 = arith.mulf %386, %387 : vector<10x10xf32>
      %389 = vector.broadcast %385 : f32 to vector<10x10xf32>
      %390 = arith.divf %388, %389 : vector<10x10xf32>
      %391 = arith.subf %377, %390 : vector<10x10xf32>
      %c4_i32_107 = arith.constant 4 : i32
      %392 = arith.muli %arg21, %c4_i32_107 : i32
      %c1_i32_108 = arith.constant 1 : i32
      %393 = arith.addi %392, %c1_i32_108 : i32
      %394 = arith.index_cast %393 : i32 to index
      %395 = memref.load %arg1[%394] : memref<20xf32, #tpu.memory_space<smem>>
      %396 = vector.broadcast %395 : f32 to vector<10x10xf32>
      %397 = arith.mulf %396, %391 : vector<10x10xf32>
      %398 = arith.addf %355, %397 : vector<10x10xf32>
      %399 = vector.extract_strided_slice %309 {offsets = [0, 16], sizes = [10, 8], strides = [1, 1]} : vector<10x32xbf16> to vector<10x8xbf16>
      %400 = vector.extract_strided_slice %310 {offsets = [0, 16], sizes = [10, 8], strides = [1, 1]} : vector<10x32xbf16> to vector<10x8xbf16>
      %401 = vector.extract_strided_slice %311 {offsets = [0, 16], sizes = [10, 8], strides = [1, 1]} : vector<10x32xbf16> to vector<10x8xbf16>
      %cst_109 = arith.constant dense<0.000000e+00> : vector<10x10xf32>
      %402 = tpu.matmul %399, %400, %cst_109 {dimension_numbers = #tpu.dot_dimension_numbers<[1], [1], [0], [0], [0, 0, 1, 0], [], []>} : vector<10x8xbf16>, vector<10x8xbf16>, vector<10x10xf32> -> vector<10x10xf32>
      %cst_110 = arith.constant dense<0xFF800000> : vector<10xf32>
      %403 = vector.multi_reduction <maximumf>, %402, %cst_110 [1] : vector<10x10xf32> to vector<10xf32>
      %404 = vector.shape_cast %403 : vector<10xf32> to vector<10x1xf32>
      %405 = vector.broadcast %404 : vector<10x1xf32> to vector<10x10xf32>
      %406 = arith.subf %402, %405 : vector<10x10xf32>
      %407 = math.exp %406 : vector<10x10xf32>
      %cst_111 = arith.constant dense<0.000000e+00> : vector<10xf32>
      %408 = vector.multi_reduction <add>, %407, %cst_111 [1] : vector<10x10xf32> to vector<10xf32>
      %409 = vector.shape_cast %408 : vector<10xf32> to vector<10x1xf32>
      %410 = vector.broadcast %409 : vector<10x1xf32> to vector<10x10xf32>
      %411 = arith.divf %407, %410 : vector<10x10xf32>
      %412 = arith.truncf %411 : vector<10x10xf32> to vector<10x10xbf16>
      %cst_112 = arith.constant dense<0.000000e+00> : vector<10x8xf32>
      %413 = tpu.matmul %412, %401, %cst_112 {dimension_numbers = #tpu.dot_dimension_numbers<[1], [0], [0], [1], [0, 0, 1, 1], [], []>} : vector<10x10xbf16>, vector<10x8xbf16>, vector<10x8xf32> -> vector<10x8xf32>
      %414 = arith.truncf %413 : vector<10x8xf32> to vector<10x8xbf16>
      %415 = vector.extract_strided_slice %132 {offsets = [16, 0], sizes = [8, 32], strides = [1, 1]} : vector<32x32xbf16> to vector<8x32xbf16>
      %cst_113 = arith.constant dense<0.000000e+00> : vector<10x32xf32>
      %416 = tpu.matmul %414, %415, %cst_113 {dimension_numbers = #tpu.dot_dimension_numbers<[1], [0], [0], [1], [0, 0, 1, 1], [], []>} : vector<10x8xbf16>, vector<8x32xbf16>, vector<10x32xf32> -> vector<10x32xf32>
      %417 = arith.addf %374, %416 : vector<10x32xf32>
      %418 = tpu.transpose %411, [1, 0] : vector<10x10xf32> -> vector<10x10xf32>
      %419 = arith.addf %411, %418 : vector<10x10xf32>
      %420 = arith.mulf %419, %23 : vector<10x10xf32>
      %cst_114 = arith.constant dense<0.000000e+00> : vector<10xf32>
      %421 = vector.multi_reduction <add>, %420, %cst_114 [1] : vector<10x10xf32> to vector<10xf32>
      %422 = vector.shape_cast %421 : vector<10xf32> to vector<10x1xf32>
      %cst_115 = arith.constant dense<0.000000e+00> : vector<10xf32>
      %423 = vector.multi_reduction <add>, %420, %cst_115 [0] : vector<10x10xf32> to vector<10xf32>
      %424 = vector.shape_cast %423 : vector<10xf32> to vector<1x10xf32>
      %425 = vector.shape_cast %420 : vector<10x10xf32> to vector<1x10x10xf32>
      %cst_116 = arith.constant dense<0.000000e+00> : vector<1xf32>
      %426 = vector.multi_reduction <add>, %425, %cst_116 [1, 2] : vector<1x10x10xf32> to vector<1xf32>
      %427 = vector.shape_cast %426 : vector<1xf32> to vector<1x1x1xf32>
      %428 = vector.extract %427[0, 0, 0] : f32 from vector<1x1x1xf32>
      %429 = vector.broadcast %422 : vector<10x1xf32> to vector<10x10xf32>
      %430 = vector.broadcast %424 : vector<1x10xf32> to vector<10x10xf32>
      %431 = arith.mulf %429, %430 : vector<10x10xf32>
      %432 = vector.broadcast %428 : f32 to vector<10x10xf32>
      %433 = arith.divf %431, %432 : vector<10x10xf32>
      %434 = arith.subf %420, %433 : vector<10x10xf32>
      %c4_i32_117 = arith.constant 4 : i32
      %435 = arith.muli %arg21, %c4_i32_117 : i32
      %c2_i32_118 = arith.constant 2 : i32
      %436 = arith.addi %435, %c2_i32_118 : i32
      %437 = arith.index_cast %436 : i32 to index
      %438 = memref.load %arg1[%437] : memref<20xf32, #tpu.memory_space<smem>>
      %439 = vector.broadcast %438 : f32 to vector<10x10xf32>
      %440 = arith.mulf %439, %434 : vector<10x10xf32>
      %441 = arith.addf %398, %440 : vector<10x10xf32>
      %442 = vector.extract_strided_slice %309 {offsets = [0, 24], sizes = [10, 8], strides = [1, 1]} : vector<10x32xbf16> to vector<10x8xbf16>
      %443 = vector.extract_strided_slice %310 {offsets = [0, 24], sizes = [10, 8], strides = [1, 1]} : vector<10x32xbf16> to vector<10x8xbf16>
      %444 = vector.extract_strided_slice %311 {offsets = [0, 24], sizes = [10, 8], strides = [1, 1]} : vector<10x32xbf16> to vector<10x8xbf16>
      %cst_119 = arith.constant dense<0.000000e+00> : vector<10x10xf32>
      %445 = tpu.matmul %442, %443, %cst_119 {dimension_numbers = #tpu.dot_dimension_numbers<[1], [1], [0], [0], [0, 0, 1, 0], [], []>} : vector<10x8xbf16>, vector<10x8xbf16>, vector<10x10xf32> -> vector<10x10xf32>
      %cst_120 = arith.constant dense<0xFF800000> : vector<10xf32>
      %446 = vector.multi_reduction <maximumf>, %445, %cst_120 [1] : vector<10x10xf32> to vector<10xf32>
      %447 = vector.shape_cast %446 : vector<10xf32> to vector<10x1xf32>
      %448 = vector.broadcast %447 : vector<10x1xf32> to vector<10x10xf32>
      %449 = arith.subf %445, %448 : vector<10x10xf32>
      %450 = math.exp %449 : vector<10x10xf32>
      %cst_121 = arith.constant dense<0.000000e+00> : vector<10xf32>
      %451 = vector.multi_reduction <add>, %450, %cst_121 [1] : vector<10x10xf32> to vector<10xf32>
      %452 = vector.shape_cast %451 : vector<10xf32> to vector<10x1xf32>
      %453 = vector.broadcast %452 : vector<10x1xf32> to vector<10x10xf32>
      %454 = arith.divf %450, %453 : vector<10x10xf32>
      %455 = arith.truncf %454 : vector<10x10xf32> to vector<10x10xbf16>
      %cst_122 = arith.constant dense<0.000000e+00> : vector<10x8xf32>
      %456 = tpu.matmul %455, %444, %cst_122 {dimension_numbers = #tpu.dot_dimension_numbers<[1], [0], [0], [1], [0, 0, 1, 1], [], []>} : vector<10x10xbf16>, vector<10x8xbf16>, vector<10x8xf32> -> vector<10x8xf32>
      %457 = arith.truncf %456 : vector<10x8xf32> to vector<10x8xbf16>
      %458 = vector.extract_strided_slice %132 {offsets = [24, 0], sizes = [8, 32], strides = [1, 1]} : vector<32x32xbf16> to vector<8x32xbf16>
      %cst_123 = arith.constant dense<0.000000e+00> : vector<10x32xf32>
      %459 = tpu.matmul %457, %458, %cst_123 {dimension_numbers = #tpu.dot_dimension_numbers<[1], [0], [0], [1], [0, 0, 1, 1], [], []>} : vector<10x8xbf16>, vector<8x32xbf16>, vector<10x32xf32> -> vector<10x32xf32>
      %460 = arith.addf %417, %459 : vector<10x32xf32>
      %461 = tpu.transpose %454, [1, 0] : vector<10x10xf32> -> vector<10x10xf32>
      %462 = arith.addf %454, %461 : vector<10x10xf32>
      %463 = arith.mulf %462, %23 : vector<10x10xf32>
      %cst_124 = arith.constant dense<0.000000e+00> : vector<10xf32>
      %464 = vector.multi_reduction <add>, %463, %cst_124 [1] : vector<10x10xf32> to vector<10xf32>
      %465 = vector.shape_cast %464 : vector<10xf32> to vector<10x1xf32>
      %cst_125 = arith.constant dense<0.000000e+00> : vector<10xf32>
      %466 = vector.multi_reduction <add>, %463, %cst_125 [0] : vector<10x10xf32> to vector<10xf32>
      %467 = vector.shape_cast %466 : vector<10xf32> to vector<1x10xf32>
      %468 = vector.shape_cast %463 : vector<10x10xf32> to vector<1x10x10xf32>
      %cst_126 = arith.constant dense<0.000000e+00> : vector<1xf32>
      %469 = vector.multi_reduction <add>, %468, %cst_126 [1, 2] : vector<1x10x10xf32> to vector<1xf32>
      %470 = vector.shape_cast %469 : vector<1xf32> to vector<1x1x1xf32>
      %471 = vector.extract %470[0, 0, 0] : f32 from vector<1x1x1xf32>
      %472 = vector.broadcast %465 : vector<10x1xf32> to vector<10x10xf32>
      %473 = vector.broadcast %467 : vector<1x10xf32> to vector<10x10xf32>
      %474 = arith.mulf %472, %473 : vector<10x10xf32>
      %475 = vector.broadcast %471 : f32 to vector<10x10xf32>
      %476 = arith.divf %474, %475 : vector<10x10xf32>
      %477 = arith.subf %463, %476 : vector<10x10xf32>
      %c4_i32_127 = arith.constant 4 : i32
      %478 = arith.muli %arg21, %c4_i32_127 : i32
      %c3_i32_128 = arith.constant 3 : i32
      %479 = arith.addi %478, %c3_i32_128 : i32
      %480 = arith.index_cast %479 : i32 to index
      %481 = memref.load %arg1[%480] : memref<20xf32, #tpu.memory_space<smem>>
      %482 = vector.broadcast %481 : f32 to vector<10x10xf32>
      %483 = arith.mulf %482, %477 : vector<10x10xf32>
      %484 = arith.addf %441, %483 : vector<10x10xf32>
      %485 = tpu.concatenate %284, %460 in 0 : vector<10x32xf32>, vector<10x32xf32> -> vector<20x32xf32>
      %486 = arith.addf %arg22, %485 : vector<20x32xf32>
      %487 = arith.index_cast %arg21 : i32 to index
      %c0_129 = arith.constant 0 : index
      %c0_130 = arith.constant 0 : index
      %488 = vector.load %arg10[%487, %c0_129, %c0_130] : memref<5x1x32xf32, #tpu.memory_space<vmem>>, vector<1x1x32xf32>
      %489 = vector.shape_cast %488 : vector<1x1x32xf32> to vector<1x32xf32>
      %490 = vector.broadcast %489 : vector<1x32xf32> to vector<20x32xf32>
      %491 = arith.addf %486, %490 : vector<20x32xf32>
      %492 = arith.index_cast %arg21 : i32 to index
      %c0_131 = arith.constant 0 : index
      %c0_132 = arith.constant 0 : index
      %493 = vector.load %arg11[%492, %c0_131, %c0_132] : memref<5x1x32xf32, #tpu.memory_space<vmem>>, vector<1x1x32xf32>
      %494 = vector.shape_cast %493 : vector<1x1x32xf32> to vector<1x32xf32>
      %495 = arith.index_cast %arg21 : i32 to index
      %c0_133 = arith.constant 0 : index
      %c0_134 = arith.constant 0 : index
      %496 = vector.load %arg12[%495, %c0_133, %c0_134] : memref<5x1x32xf32, #tpu.memory_space<vmem>>, vector<1x1x32xf32>
      %497 = vector.shape_cast %496 : vector<1x1x32xf32> to vector<1x32xf32>
      %cst_135 = arith.constant dense<0.000000e+00> : vector<20xf32>
      %498 = vector.multi_reduction <add>, %491, %cst_135 [1] : vector<20x32xf32> to vector<20xf32>
      %499 = vector.shape_cast %498 : vector<20xf32> to vector<20x1xf32>
      %cst_136 = arith.constant 3.200000e+01 : f32
      %500 = vector.broadcast %cst_136 : f32 to vector<20x1xf32>
      %501 = arith.divf %499, %500 : vector<20x1xf32>
      %502 = vector.broadcast %501 : vector<20x1xf32> to vector<20x32xf32>
      %503 = arith.subf %491, %502 : vector<20x32xf32>
      %504 = arith.mulf %503, %503 : vector<20x32xf32>
      %cst_137 = arith.constant dense<0.000000e+00> : vector<20xf32>
      %505 = vector.multi_reduction <add>, %504, %cst_137 [1] : vector<20x32xf32> to vector<20xf32>
      %506 = vector.shape_cast %505 : vector<20xf32> to vector<20x1xf32>
      %cst_138 = arith.constant 3.200000e+01 : f32
      %507 = vector.broadcast %cst_138 : f32 to vector<20x1xf32>
      %508 = arith.divf %506, %507 : vector<20x1xf32>
      %509 = vector.broadcast %501 : vector<20x1xf32> to vector<20x32xf32>
      %510 = arith.subf %491, %509 : vector<20x32xf32>
      %cst_139 = arith.constant 9.99999974E-6 : f32
      %511 = vector.broadcast %cst_139 : f32 to vector<20x1xf32>
      %512 = arith.addf %508, %511 : vector<20x1xf32>
      %513 = math.rsqrt %512 : vector<20x1xf32>
      %514 = vector.broadcast %513 : vector<20x1xf32> to vector<20x32xf32>
      %515 = arith.mulf %510, %514 : vector<20x32xf32>
      %516 = vector.broadcast %494 : vector<1x32xf32> to vector<20x32xf32>
      %517 = arith.mulf %515, %516 : vector<20x32xf32>
      %518 = vector.broadcast %497 : vector<1x32xf32> to vector<20x32xf32>
      %519 = arith.addf %517, %518 : vector<20x32xf32>
      %520 = arith.index_cast %arg21 : i32 to index
      %c0_140 = arith.constant 0 : index
      %c0_141 = arith.constant 0 : index
      %521 = vector.load %arg13[%520, %c0_140, %c0_141] : memref<5x32x128xbf16, #tpu.memory_space<vmem>>, vector<1x32x128xbf16>
      %522 = vector.shape_cast %521 : vector<1x32x128xbf16> to vector<32x128xbf16>
      %523 = arith.truncf %519 : vector<20x32xf32> to vector<20x32xbf16>
      %cst_142 = arith.constant dense<0.000000e+00> : vector<20x128xf32>
      %524 = tpu.matmul %523, %522, %cst_142 {dimension_numbers = #tpu.dot_dimension_numbers<[1], [0], [0], [1], [0, 0, 1, 1], [], []>} : vector<20x32xbf16>, vector<32x128xbf16>, vector<20x128xf32> -> vector<20x128xf32>
      %525 = arith.index_cast %arg21 : i32 to index
      %c0_143 = arith.constant 0 : index
      %c0_144 = arith.constant 0 : index
      %526 = vector.load %arg14[%525, %c0_143, %c0_144] : memref<5x1x128xf32, #tpu.memory_space<vmem>>, vector<1x1x128xf32>
      %527 = vector.shape_cast %526 : vector<1x1x128xf32> to vector<1x128xf32>
      %528 = vector.broadcast %527 : vector<1x128xf32> to vector<20x128xf32>
      %529 = arith.addf %524, %528 : vector<20x128xf32>
      %530 = arith.mulf %529, %529 : vector<20x128xf32>
      %531 = arith.mulf %529, %530 : vector<20x128xf32>
      %cst_145 = arith.constant 4.471500e-02 : f32
      %532 = vector.broadcast %cst_145 : f32 to vector<20x128xf32>
      %533 = arith.mulf %532, %531 : vector<20x128xf32>
      %534 = arith.addf %529, %533 : vector<20x128xf32>
      %cst_146 = arith.constant 0.797884583 : f32
      %535 = vector.broadcast %cst_146 : f32 to vector<20x128xf32>
      %536 = arith.mulf %535, %534 : vector<20x128xf32>
      %537 = math.tanh %536 : vector<20x128xf32>
      %cst_147 = arith.constant 1.000000e+00 : f32
      %538 = vector.broadcast %cst_147 : f32 to vector<20x128xf32>
      %539 = arith.addf %538, %537 : vector<20x128xf32>
      %cst_148 = arith.constant 5.000000e-01 : f32
      %540 = vector.broadcast %cst_148 : f32 to vector<20x128xf32>
      %541 = arith.mulf %540, %539 : vector<20x128xf32>
      %542 = arith.mulf %529, %541 : vector<20x128xf32>
      %543 = arith.index_cast %arg21 : i32 to index
      %c0_149 = arith.constant 0 : index
      %c0_150 = arith.constant 0 : index
      %544 = vector.load %arg15[%543, %c0_149, %c0_150] : memref<5x128x32xbf16, #tpu.memory_space<vmem>>, vector<1x128x32xbf16>
      %545 = vector.shape_cast %544 : vector<1x128x32xbf16> to vector<128x32xbf16>
      %546 = arith.truncf %542 : vector<20x128xf32> to vector<20x128xbf16>
      %cst_151 = arith.constant dense<0.000000e+00> : vector<20x32xf32>
      %547 = tpu.matmul %546, %545, %cst_151 {dimension_numbers = #tpu.dot_dimension_numbers<[1], [0], [0], [1], [0, 0, 1, 1], [], []>} : vector<20x128xbf16>, vector<128x32xbf16>, vector<20x32xf32> -> vector<20x32xf32>
      %548 = arith.addf %491, %547 : vector<20x32xf32>
      %549 = arith.index_cast %arg21 : i32 to index
      %c0_152 = arith.constant 0 : index
      %c0_153 = arith.constant 0 : index
      %550 = vector.load %arg16[%549, %c0_152, %c0_153] : memref<5x1x32xf32, #tpu.memory_space<vmem>>, vector<1x1x32xf32>
      %551 = vector.shape_cast %550 : vector<1x1x32xf32> to vector<1x32xf32>
      %552 = vector.broadcast %551 : vector<1x32xf32> to vector<20x32xf32>
      %553 = arith.addf %548, %552 : vector<20x32xf32>
      scf.yield %553, %308, %484 : vector<20x32xf32>, vector<10x10xf32>, vector<10x10xf32>
    }
    %c5_i32_8 = arith.constant 5 : i32
    %c0_9 = arith.constant 0 : index
    %c0_10 = arith.constant 0 : index
    %28 = vector.load %arg17[%c0_9, %c0_10] : memref<1x32xf32, #tpu.memory_space<vmem>>, vector<1x32xf32>
    %c0_11 = arith.constant 0 : index
    %c0_12 = arith.constant 0 : index
    %29 = vector.load %arg18[%c0_11, %c0_12] : memref<1x32xf32, #tpu.memory_space<vmem>>, vector<1x32xf32>
    %cst_13 = arith.constant dense<0.000000e+00> : vector<20xf32>
    %30 = vector.multi_reduction <add>, %27#0, %cst_13 [1] : vector<20x32xf32> to vector<20xf32>
    %31 = vector.shape_cast %30 : vector<20xf32> to vector<20x1xf32>
    %cst_14 = arith.constant 3.200000e+01 : f32
    %32 = vector.broadcast %cst_14 : f32 to vector<20x1xf32>
    %33 = arith.divf %31, %32 : vector<20x1xf32>
    %34 = vector.broadcast %33 : vector<20x1xf32> to vector<20x32xf32>
    %35 = arith.subf %27#0, %34 : vector<20x32xf32>
    %36 = arith.mulf %35, %35 : vector<20x32xf32>
    %cst_15 = arith.constant dense<0.000000e+00> : vector<20xf32>
    %37 = vector.multi_reduction <add>, %36, %cst_15 [1] : vector<20x32xf32> to vector<20xf32>
    %38 = vector.shape_cast %37 : vector<20xf32> to vector<20x1xf32>
    %cst_16 = arith.constant 3.200000e+01 : f32
    %39 = vector.broadcast %cst_16 : f32 to vector<20x1xf32>
    %40 = arith.divf %38, %39 : vector<20x1xf32>
    %41 = vector.broadcast %33 : vector<20x1xf32> to vector<20x32xf32>
    %42 = arith.subf %27#0, %41 : vector<20x32xf32>
    %cst_17 = arith.constant 9.99999974E-6 : f32
    %43 = vector.broadcast %cst_17 : f32 to vector<20x1xf32>
    %44 = arith.addf %40, %43 : vector<20x1xf32>
    %45 = math.rsqrt %44 : vector<20x1xf32>
    %46 = vector.broadcast %45 : vector<20x1xf32> to vector<20x32xf32>
    %47 = arith.mulf %42, %46 : vector<20x32xf32>
    %48 = vector.broadcast %28 : vector<1x32xf32> to vector<20x32xf32>
    %49 = arith.mulf %47, %48 : vector<20x32xf32>
    %50 = vector.broadcast %29 : vector<1x32xf32> to vector<20x32xf32>
    %51 = arith.addf %49, %50 : vector<20x32xf32>
    %52 = vector.extract_strided_slice %51 {offsets = [1, 0], sizes = [8, 32], strides = [1, 1]} : vector<20x32xf32> to vector<8x32xf32>
    %c0_18 = arith.constant 0 : index
    %c0_19 = arith.constant 0 : index
    %c0_20 = arith.constant 0 : index
    %53 = vector.load %arg19[%c0_18, %c0_19, %c0_20] : memref<2x8x32xf32, #tpu.memory_space<vmem>>, vector<1x8x32xf32>
    %54 = vector.shape_cast %53 : vector<1x8x32xf32> to vector<8x32xf32>
    %55 = vector.shape_cast %52 : vector<8x32xf32> to vector<1x8x32xf32>
    tpu.vector_store %arg19[%c0_18, %c0_19, %c0_20], %55 {strides = array<i32>} : memref<2x8x32xf32, #tpu.memory_space<vmem>>, vector<1x8x32xf32>,
    %56 = vector.extract_strided_slice %27#1 {offsets = [1, 1], sizes = [8, 8], strides = [1, 1]} : vector<10x10xf32> to vector<8x8xf32>
    %c0_21 = arith.constant 0 : index
    %57 = memref.load %arg2[%c0_21] : memref<1xf32, #tpu.memory_space<smem>>
    %58 = vector.broadcast %57 : f32 to vector<8x8xf32>
    %59 = arith.addf %56, %58 : vector<8x8xf32>
    %60 = arith.negf %59 : vector<8x8xf32>
    %61 = math.exp %60 : vector<8x8xf32>
    %cst_22 = arith.constant 1.000000e+00 : f32
    %62 = vector.broadcast %cst_22 : f32 to vector<8x8xf32>
    %63 = arith.addf %62, %61 : vector<8x8xf32>
    %64 = arith.divf %62, %63 : vector<8x8xf32>
    %c0_23 = arith.constant 0 : index
    %c0_24 = arith.constant 0 : index
    %c0_25 = arith.constant 0 : index
    %65 = vector.load %arg20[%c0_23, %c0_24, %c0_25] : memref<2x8x8xf32, #tpu.memory_space<vmem>>, vector<1x8x8xf32>
    %66 = vector.shape_cast %65 : vector<1x8x8xf32> to vector<8x8xf32>
    %67 = vector.shape_cast %64 : vector<8x8xf32> to vector<1x8x8xf32>
    tpu.vector_store %arg20[%c0_23, %c0_24, %c0_25], %67 {strides = array<i32>} : memref<2x8x8xf32, #tpu.memory_space<vmem>>, vector<1x8x8xf32>,
    %68 = vector.extract_strided_slice %51 {offsets = [11, 0], sizes = [8, 32], strides = [1, 1]} : vector<20x32xf32> to vector<8x32xf32>
    %c1 = arith.constant 1 : index
    %c0_26 = arith.constant 0 : index
    %c0_27 = arith.constant 0 : index
    %69 = vector.load %arg19[%c1, %c0_26, %c0_27] : memref<2x8x32xf32, #tpu.memory_space<vmem>>, vector<1x8x32xf32>
    %70 = vector.shape_cast %69 : vector<1x8x32xf32> to vector<8x32xf32>
    %71 = vector.shape_cast %68 : vector<8x32xf32> to vector<1x8x32xf32>
    tpu.vector_store %arg19[%c1, %c0_26, %c0_27], %71 {strides = array<i32>} : memref<2x8x32xf32, #tpu.memory_space<vmem>>, vector<1x8x32xf32>,
    %72 = vector.extract_strided_slice %27#2 {offsets = [1, 1], sizes = [8, 8], strides = [1, 1]} : vector<10x10xf32> to vector<8x8xf32>
    %c0_28 = arith.constant 0 : index
    %73 = memref.load %arg2[%c0_28] : memref<1xf32, #tpu.memory_space<smem>>
    %74 = vector.broadcast %73 : f32 to vector<8x8xf32>
    %75 = arith.addf %72, %74 : vector<8x8xf32>
    %76 = arith.negf %75 : vector<8x8xf32>
    %77 = math.exp %76 : vector<8x8xf32>
    %cst_29 = arith.constant 1.000000e+00 : f32
    %78 = vector.broadcast %cst_29 : f32 to vector<8x8xf32>
    %79 = arith.addf %78, %77 : vector<8x8xf32>
    %80 = arith.divf %78, %79 : vector<8x8xf32>
    %c1_30 = arith.constant 1 : index
    %c0_31 = arith.constant 0 : index
    %c0_32 = arith.constant 0 : index
    %81 = vector.load %arg20[%c1_30, %c0_31, %c0_32] : memref<2x8x8xf32, #tpu.memory_space<vmem>>, vector<1x8x8xf32>
    %82 = vector.shape_cast %81 : vector<1x8x8xf32> to vector<8x8xf32>
    %83 = vector.shape_cast %80 : vector<8x8xf32> to vector<1x8x8xf32>
    tpu.vector_store %arg20[%c1_30, %c0_31, %c0_32], %83 {strides = array<i32>} : memref<2x8x8xf32, #tpu.memory_space<vmem>>, vector<1x8x8xf32>,
    return
  }
  func.func @transform_0(%arg0: i32, %arg1: memref<20xf32, #tpu.memory_space<smem>>, %arg2: memref<1xf32, #tpu.memory_space<smem>>) -> (i32, i32) {
    %c0_i32 = arith.constant 0 : i32
    %c0_i32_0 = arith.constant 0 : i32
    %c0_i32_1 = arith.constant 0 : i32
    return %c0_i32, %c0_i32_0 : i32, i32
  }
  func.func @transform_1(%arg0: i32, %arg1: memref<20xf32, #tpu.memory_space<smem>>, %arg2: memref<1xf32, #tpu.memory_space<smem>>) -> (i32, i32) {
    %c0_i32 = arith.constant 0 : i32
    %c0_i32_0 = arith.constant 0 : i32
    %c0_i32_1 = arith.constant 0 : i32
    return %c0_i32, %c0_i32_0 : i32, i32
  }
  func.func @transform_2(%arg0: i32, %arg1: memref<20xf32, #tpu.memory_space<smem>>, %arg2: memref<1xf32, #tpu.memory_space<smem>>) -> (i32, i32, i32) {
    %c0_i32 = arith.constant 0 : i32
    %c0_i32_0 = arith.constant 0 : i32
    %c0_i32_1 = arith.constant 0 : i32
    %c0_i32_2 = arith.constant 0 : i32
    return %c0_i32, %c0_i32_0, %c0_i32_1 : i32, i32, i32
  }
  func.func @transform_3(%arg0: i32, %arg1: memref<20xf32, #tpu.memory_space<smem>>, %arg2: memref<1xf32, #tpu.memory_space<smem>>) -> (i32, i32, i32) {
    %c0_i32 = arith.constant 0 : i32
    %c0_i32_0 = arith.constant 0 : i32
    %c0_i32_1 = arith.constant 0 : i32
    %c0_i32_2 = arith.constant 0 : i32
    return %c0_i32, %c0_i32_0, %c0_i32_1 : i32, i32, i32
  }
  func.func @transform_4(%arg0: i32, %arg1: memref<20xf32, #tpu.memory_space<smem>>, %arg2: memref<1xf32, #tpu.memory_space<smem>>) -> (i32, i32, i32) {
    %c0_i32 = arith.constant 0 : i32
    %c0_i32_0 = arith.constant 0 : i32
    %c0_i32_1 = arith.constant 0 : i32
    %c0_i32_2 = arith.constant 0 : i32
    return %c0_i32, %c0_i32_0, %c0_i32_1 : i32, i32, i32
  }
  func.func @transform_5(%arg0: i32, %arg1: memref<20xf32, #tpu.memory_space<smem>>, %arg2: memref<1xf32, #tpu.memory_space<smem>>) -> (i32, i32, i32) {
    %c0_i32 = arith.constant 0 : i32
    %c0_i32_0 = arith.constant 0 : i32
    %c0_i32_1 = arith.constant 0 : i32
    %c0_i32_2 = arith.constant 0 : i32
    return %c0_i32, %c0_i32_0, %c0_i32_1 : i32, i32, i32
  }
  func.func @transform_6(%arg0: i32, %arg1: memref<20xf32, #tpu.memory_space<smem>>, %arg2: memref<1xf32, #tpu.memory_space<smem>>) -> (i32, i32, i32) {
    %c0_i32 = arith.constant 0 : i32
    %c0_i32_0 = arith.constant 0 : i32
    %c0_i32_1 = arith.constant 0 : i32
    %c0_i32_2 = arith.constant 0 : i32
    return %c0_i32, %c0_i32_0, %c0_i32_1 : i32, i32, i32
  }
  func.func @transform_7(%arg0: i32, %arg1: memref<20xf32, #tpu.memory_space<smem>>, %arg2: memref<1xf32, #tpu.memory_space<smem>>) -> (i32, i32, i32) {
    %c0_i32 = arith.constant 0 : i32
    %c0_i32_0 = arith.constant 0 : i32
    %c0_i32_1 = arith.constant 0 : i32
    %c0_i32_2 = arith.constant 0 : i32
    return %c0_i32, %c0_i32_0, %c0_i32_1 : i32, i32, i32
  }
  func.func @transform_8(%arg0: i32, %arg1: memref<20xf32, #tpu.memory_space<smem>>, %arg2: memref<1xf32, #tpu.memory_space<smem>>) -> (i32, i32, i32) {
    %c0_i32 = arith.constant 0 : i32
    %c0_i32_0 = arith.constant 0 : i32
    %c0_i32_1 = arith.constant 0 : i32
    %c0_i32_2 = arith.constant 0 : i32
    return %c0_i32, %c0_i32_0, %c0_i32_1 : i32, i32, i32
  }
  func.func @transform_9(%arg0: i32, %arg1: memref<20xf32, #tpu.memory_space<smem>>, %arg2: memref<1xf32, #tpu.memory_space<smem>>) -> (i32, i32, i32) {
    %c0_i32 = arith.constant 0 : i32
    %c0_i32_0 = arith.constant 0 : i32
    %c0_i32_1 = arith.constant 0 : i32
    %c0_i32_2 = arith.constant 0 : i32
    return %c0_i32, %c0_i32_0, %c0_i32_1 : i32, i32, i32
  }
  func.func @transform_10(%arg0: i32, %arg1: memref<20xf32, #tpu.memory_space<smem>>, %arg2: memref<1xf32, #tpu.memory_space<smem>>) -> (i32, i32, i32) {
    %c0_i32 = arith.constant 0 : i32
    %c0_i32_0 = arith.constant 0 : i32
    %c0_i32_1 = arith.constant 0 : i32
    %c0_i32_2 = arith.constant 0 : i32
    return %c0_i32, %c0_i32_0, %c0_i32_1 : i32, i32, i32
  }
  func.func @transform_11(%arg0: i32, %arg1: memref<20xf32, #tpu.memory_space<smem>>, %arg2: memref<1xf32, #tpu.memory_space<smem>>) -> (i32, i32, i32) {
    %c0_i32 = arith.constant 0 : i32
    %c0_i32_0 = arith.constant 0 : i32
    %c0_i32_1 = arith.constant 0 : i32
    %c0_i32_2 = arith.constant 0 : i32
    return %c0_i32, %c0_i32_0, %c0_i32_1 : i32, i32, i32
  }
  func.func @transform_12(%arg0: i32, %arg1: memref<20xf32, #tpu.memory_space<smem>>, %arg2: memref<1xf32, #tpu.memory_space<smem>>) -> (i32, i32, i32) {
    %c0_i32 = arith.constant 0 : i32
    %c0_i32_0 = arith.constant 0 : i32
    %c0_i32_1 = arith.constant 0 : i32
    %c0_i32_2 = arith.constant 0 : i32
    return %c0_i32, %c0_i32_0, %c0_i32_1 : i32, i32, i32
  }
  func.func @transform_13(%arg0: i32, %arg1: memref<20xf32, #tpu.memory_space<smem>>, %arg2: memref<1xf32, #tpu.memory_space<smem>>) -> (i32, i32, i32) {
    %c0_i32 = arith.constant 0 : i32
    %c0_i32_0 = arith.constant 0 : i32
    %c0_i32_1 = arith.constant 0 : i32
    %c0_i32_2 = arith.constant 0 : i32
    return %c0_i32, %c0_i32_0, %c0_i32_1 : i32, i32, i32
  }
  func.func @transform_14(%arg0: i32, %arg1: memref<20xf32, #tpu.memory_space<smem>>, %arg2: memref<1xf32, #tpu.memory_space<smem>>) -> (i32, i32) {
    %c0_i32 = arith.constant 0 : i32
    %c0_i32_0 = arith.constant 0 : i32
    %c0_i32_1 = arith.constant 0 : i32
    return %c0_i32, %c0_i32_0 : i32, i32
  }
  func.func @transform_15(%arg0: i32, %arg1: memref<20xf32, #tpu.memory_space<smem>>, %arg2: memref<1xf32, #tpu.memory_space<smem>>) -> (i32, i32) {
    %c0_i32 = arith.constant 0 : i32
    %c0_i32_0 = arith.constant 0 : i32
    %c0_i32_1 = arith.constant 0 : i32
    return %c0_i32, %c0_i32_0 : i32, i32
  }
  func.func @transform_16(%arg0: i32, %arg1: memref<20xf32, #tpu.memory_space<smem>>, %arg2: memref<1xf32, #tpu.memory_space<smem>>) -> (i32, i32, i32) {
    %c0_i32 = arith.constant 0 : i32
    %c0_i32_0 = arith.constant 0 : i32
    %c0_i32_1 = arith.constant 0 : i32
    %c0_i32_2 = arith.constant 0 : i32
    return %c0_i32, %c0_i32_0, %c0_i32_1 : i32, i32, i32
  }
  func.func @transform_17(%arg0: i32, %arg1: memref<20xf32, #tpu.memory_space<smem>>, %arg2: memref<1xf32, #tpu.memory_space<smem>>) -> (i32, i32, i32) {
    %c0_i32 = arith.constant 0 : i32
    %c0_i32_0 = arith.constant 0 : i32
    %c0_i32_1 = arith.constant 0 : i32
    %c0_i32_2 = arith.constant 0 : i32
    return %c0_i32, %c0_i32_0, %c0_i32_1 : i32, i32, i32
  }
}

</mosaic_0001>

<bundles_post_ra>
// kernel: tpu_custom_call.1
= control target key start
LH: loop header
LB: loop body
LE: loop exit
PB: predicated region body
PF: predicated region fallthrough
CT: control target
= control target key end

     0   :  { %s4408_s0 = inlined_call_operand.vmem [shape: f32[20], index: 0, kind: input, shape index: {}]   ;;  %s4409_s1 = inlined_call_operand.<no memory space> [shape: f32[1], index: 1, kind: input, shape index: {}]   ;;  %s4410_s2 = inlined_call_operand.vmem [shape: s32[20,1], index: 2, kind: input, shape index: {}]   ;;  %s4411_s3 = inlined_call_operand.vmem [shape: bf16[33,32], index: 3, kind: input, shape index: {}]   ;;  %s4412_s4 = inlined_call_operand.vmem [shape: f32[5,1,32], index: 4, kind: input, shape index: {}]   ;;  %s4413_s5 = inlined_call_operand.vmem [shape: f32[5,1,32], index: 5, kind: input, shape index: {}]   ;;  %s4414_s6 = inlined_call_operand.vmem [shape: bf16[5,32,96], index: 6, kind: input, shape index: {}]   ;;  %s4415_s7 = inlined_call_operand.vmem [shape: f32[5,1,96], index: 7, kind: input, shape index: {}]   ;;  %s4416_s8 = inlined_call_operand.vmem [shape: bf16[5,32,32], index: 8, kind: input, shape index: {}]   ;;  %s4417_s9 = inlined_call_operand.vmem [shape: f32[5,1,32], index: 9, kind: input, shape index: {}]   ;;  %s4418_s10 = inlined_call_operand.vmem [shape: f32[5,1,32], index: 10, kind: input, shape index: {}]   ;;  %s4419_s11 = inlined_call_operand.vmem [shape: f32[5,1,32], index: 11, kind: input, shape index: {}]   ;;  %s4420_s12 = inlined_call_operand.vmem [shape: bf16[5,32,128], index: 12, kind: input, shape index: {}]   ;;  %s4421_s13 = inlined_call_operand.vmem [shape: f32[5,1,128], index: 13, kind: input, shape index: {}]   ;;  %s4422_s14 = inlined_call_operand.vmem [shape: bf16[5,128,32], index: 14, kind: input, shape index: {}]   ;;  %s4423_s15 = inlined_call_operand.vmem [shape: f32[5,1,32], index: 15, kind: input, shape index: {}]   ;;  %s4424_s16 = inlined_call_operand.vmem [shape: f32[1,32], index: 16, kind: input, shape index: {}]   ;;  %s4425_s17 = inlined_call_operand.vmem [shape: f32[1,32], index: 17, kind: input, shape index: {}]   ;;  %s4426_s18 = inlined_call_operand.hbm [shape: f32[2,8,32], index: 18, kind: output, shape index: {0}]   ;;  %s4427_s19 = inlined_call_operand.hbm [shape: f32[2,8,8], index: 19, kind: output, shape index: {1}]  }
   0x1   :  { %4434 = sst [smem:[#allocation16_spill]] %s4408_s0 }
   0x2   :  { %4435 = sst [smem:[#allocation17_spill]] %s4409_s1 }
   0x3   :  { %4436 = sst [smem:[#allocation18_spill]] %s4410_s2 }
   0x4   :  { %4437 = sst [smem:[#allocation19_spill]] %s4411_s3 }
   0x5   :  { %4438 = sst [smem:[#allocation20_spill]] %s4421_s13 }
   0x6   :  { %4439 = sst [smem:[#allocation21_spill]] %s4422_s14 }
   0x7   :  { %s4440_s20 = sld [smem:[#allocation16_spill]] }
   0x8   :  { %s4441_s14 = sld [smem:[#allocation17_spill]] }
   0xd   :  { %s25_s13 = sshll.u32 %s4440_s20, 4  ;;  %s26_s13 = int_to_ptr.vmem [resolvable:$true] %s25_s13 }
   0xe   :  { %29 = sst [smem:[#allocation4]] %s4441_s14  ;;  %s3409_s22 = scalar_lea.vmem %s26_s13, 16 }
   0xf   :  { %p3410_p0 = scmp.ne.s32.totalorder %s26_s13, %s3409_s22  ;;  %p3414_p1 = scmp.lt.s32.totalorder %s26_s13, %s26_s13 }
  0x10   :  { %p3415_p2 = scmp.lt.s32.totalorder %s3409_s22, %s3409_s22 }
  0x12   :  { %p3416_p3 = por %p3415_p2, %p3414_p1 }
  0x14   :  { %p3417_p4 = pnand %p3416_p3, %p3410_p0 }
  0x16   :  { %3420 = shalt.err (!%p3417_p4)  }
  0x17   :  { %s3531_s2 = smov [#allocation3]  }
  0x18   :  { %28 = dma.vmem_to_smem %s26_s13, 16, %s3531_s2, [#allocation2] }
  0x19   :  { %3493 = dma.done.wait [#allocation2], 16 }
  0x1a   :  { %3494 = vsyncadd [#allocation2], 4294967280 }
  0x1b   :  { %31 = sfence }
  0x1c   :  { %32 = vsyncpa [#allocation6], 0  ;;  %s4442_s25 = sld [smem:[#allocation18_spill]]  ;;  %vm119_vm0 = vcmask 1040384   ;;  %v70_v2 = vlaneseq  ;;  %v3532_v3 = vmov 0  }
  0x1d   :  { %3272 = vset.pattern.permute.xlu0 %v3532_v3  ;;  %3273 = vset.pattern.permute.xlu1 %v3532_v3 }
  0x22   :  { %v67_v0 = vld [vmem:[%s4442_s25] sm:$0xff]  ;;  %v69_v1 = vld [vmem:[%s4442_s25 + $0x10] sm:$0xf] }
  0x23   :  { %33 = vsyncpa [#allocation8], 0  ;;  %v121_v4 = vsel %vm119_vm0, 65535, %v3532_v3  ;;  %73 = vperm.xlu0 %3272, %v67_v0   ;;  %v68_v5 = vld [vmem:[%s4442_s25 + $0x8] sm:$0xff]  ;;  %79 = vperm.xlu1 %3273, %v69_v1   ;;  %s4443_s29 = sld [smem:[#allocation19_spill]]  ;;  %v71_v7 = vand.u32 127, %v70_v2 }
  0x24   :  { %v174_v8 = vshrl.u32 %v70_v2, 7  ;;  %v3533_v12 = vmov 0.0   ;;  %vm112_vm12 = vcmask 269312   ;;  %v3680_v28 = vmov 0.0   ;;  %s3694_s1 = smov 0  }
  0x25   :  { %vm182_vm2 = vcmp.gt.s32.totalorder %v71_v7, 0  ;;  %vm185_vm4 = vcmp.lt.s32.totalorder %v71_v7, 9  ;;  %v3682_v29 = vmov 0.0   ;;  %v3684_v30 = vmov 0.0  }
  0x26   :  { %v175_v10 = vadd.s32 8, %v174_v8  ;;  %vm176_vm1 = vcmp.gt.s32.totalorder %v174_v8, 0  ;;  %v3686_v31 = vmov 0.0  }
  0x27   :  { %vm183_vm3 = vmand %vm176_vm1, %vm182_vm2  ;;  %76 = vperm.xlu0 %3272, %v68_v5  }
  0x28   :  { %vm179_vm5 = vcmp.lt.s32.totalorder %v175_v10, 9  ;;  %vm186_vm6 = vmand %vm183_vm3, %vm185_vm4 }
  0x29   :  { %v3274_v6 = vld [vmem:[%s4443_s29 + $0x10] ss:$0 sps:$4 sm:$0x11]   ;;  %v3275_v11 = vld [vmem:[%s4443_s29 + $0x8] sm:$0xff]   ;;  %vm184_vm7 = vmand %vm179_vm5, %vm182_vm2  ;;  %v3673_v13 = vsel %vm186_vm6, 1.0, %v3533_v12 }
  0x2a   :  { %v123_v9 = vand.u32 %v3274_v6, %v121_v4  ;;  %4444 = vst [vmem:[#allocation12_spill] sm:$0xff] %v3673_v13  ;;  %vm187_vm8 = vmand %vm184_vm7, %vm185_vm4  ;;  %v3276_v14 = vld [vmem:[%s4443_s29] sm:$0xff]  }
  0x2b   :  { %v3678_v15 = vsel %vm187_vm8, 1.0, %v3533_v12 }
  0x2c   :  { %2981 = vmatprep.subr.bf16.mxu0 %v123_v9  ;;  %4445 = vst [vmem:[#allocation13_spill] sm:$0xff] %v3678_v15 }
  0x2d   :  { %2982 = vmatpush3.bf16.msra.mxu0 %v123_v9 }
  0x2e   :  { %2983 = vmatprep.subr.bf16.mxu0 %v3275_v11 }
  0x31   :  { %2984 = vmatpush3.bf16.msra.mxu0 %v3275_v11 }
  0x32   :  { %2985 = vmatprep.subr.bf16.mxu0 %v3276_v14 }
  0x35   :  { %2986 = vmatpush3.bf16.msra.mxu0 %v3276_v14 }
  0x9e   :  { %v74_v16 = vpop.permute.xlu0 %73  ;;  %v80_v17 = vpop.permute.xlu1 %79 }
  0x9f   :  { %vm83_vm9 = vcmp.eq.s32.totalorder %v80_v17, %v71_v7  ;;  %vm81_vm10 = vcmp.eq.s32.totalorder %v74_v16, %v71_v7 }
  0xa0   :  { %v2838_v18 = vsel %vm83_vm9, 1.0, %v3533_v12  ;;  %v2836_v20 = vsel %vm81_vm10, 1.0, %v3533_v12 }
  0xa1   :  { %v91_v22 = vpack.c.bf16 %v2838_v18, %v2838_v18 }
  0xa2   :  { %v77_v19 = vpop.permute.xlu0 %76 }
  0xa3   :  { %vm82_vm11 = vcmp.eq.s32.totalorder %v77_v19, %v71_v7 }
  0xa4   :  { %v2837_v21 = vsel %vm82_vm11, 1.0, %v3533_v12 }
  0xa5   :  { %v90_v23 = vpack.c.bf16 %v2837_v21, %v2836_v20 }
  0xa7   :  { %2987 = vmatprep.mubr.msk.bf16.mxu0 %vm112_vm12, %v90_v23 }
  0xa8   :  { %2988 = vmatmul.mubr.msk.bf16.vlgmr.msra.gmra.mxu0 %vm112_vm12, %v91_v22 }
 0x168   :  { %v2989_v24 = vpop.f32.mrf.mxu0  }
 0x16a   :  { %v159_v25 = vpop.f32.mrf.mxu0  }
 0x16c   :  { %v2990_v26 = vpop.f32.mrf.mxu0 }
 0x16e   :  { %v162_v27 = vpop.f32.mrf.mxu0  }
 0x16f LB: > { %v4446_v15 = vld [vmem:[#allocation13_spill] sm:$0xff]  ;;  %v4447_v13 = vld [vmem:[#allocation12_spill] sm:$0xff]  ;;  %vm209_vm13 = vcmask 261120   ;;  %vm216_vm14 = vcmask 257024   ;;  %s3733_s22 = sshll.u32 %s3529_s1, 4  ;;  %s205_s14 = scalar_lea.vmem %s4412_s4, %s3529_s1  ;;  %v3534_v16 = vmov 0.0   ;;  %v3505_v29 = vphi %v3682_v29, %v4459_v29   ;;  %v3501_v28 = vphi %v3680_v28, %v4458_v28   ;;  %s3529_s1 = sphi %s3694_s1, %s197_s1   ;;  %v3525_v25 = vphi %v159_v25, %v4464_v25   ;;  %v3521_v27 = vphi %v162_v27, %v4463_v27   ;;  %v3517_v24 = vphi %v2989_v24, %v4462_v24   ;;  %v3513_v31 = vphi %v3686_v31, %v4461_v31   ;;  %v3509_v30 = vphi %v3684_v30, %v4460_v30  }
 0x170   : > { %v210_v32 = vsel %vm209_vm13, %v3525_v25, 0.0  ;;  %v217_v33 = vsel %vm216_vm14, %v3517_v24, 0.0  ;;  %v213_v34 = vsel %vm209_vm13, %v3521_v27, 0.0  ;;  %s271_s24 = scalar_lea.vmem %s4414_s6, %s3733_s22  ;;  %v2846_v63 = vld [vmem:[%s205_s14] ss:$0 sm:$0xff]  ;;  %s207_s27 = scalar_lea.vmem %s4413_s5, %s3529_s1  ;;  %3017 = vmatprep.subr.bf16.mxu0 %v3534_v16  ;;  %vm3535_vm15 = vmmov 0  }
 0x171   : > { %211 = vadd.xlane.f32.xlu0 %v210_v32  ;;  %218 = vadd.xlane.f32.xlu1 %v217_v33  ;;  %v3277_v50 = vld [vmem:[%s271_s24 + $0x8] sm:$0xff]   ;;  %v3278_v51 = vld [vmem:[%s271_s24] sm:$0xff]   ;;  %s278_s0 = scalar_lea.vmem %s4415_s7, %s3529_s1  ;;  %s3536_s30 = smov 96   ;;  %vm368_vm0 = vcmask 64512   ;;  %vm416_vm1 = vcmask 80896   ;;  %vm420_vm2 = vcmask 74752  }
 0x172   : > { %2991 = vmatprep.subr.bf16.mxu1 %v3277_v50  ;;  %v2847_v4 = vld [vmem:[%s207_s27] ss:$0 sm:$0xff]  ;;  %3019 = vmatprep.mubr.msk.bf16.mxu0 %vm3535_vm15, %v3534_v16  ;;  %s3537_s20 = smov 88   ;;  %s3538_s21 = smov 120   ;;  %vm446_vm3 = vcmask 1044480   ;;  %vm692_vm4 = vcmask 1043456  }
 0x173   : > { %2992 = vmatpush3.bf16.msra.mxu1 %v3277_v50  ;;  %v2850_v14 = vld [vmem:[%s278_s0] ss:$0 sm:$0xff]  ;;  %s3539_s2 = smov 64   ;;  %s3540_s23 = smov 80   ;;  %vm1350_vm5 = vcmask 1042432   ;;  %vm2314_vm6 = vcmask 1041408  }
 0x174   : > { %2993 = vmatprep.subr.bf16.mxu1 %v3278_v51  ;;  %s3541_s24 = smov 112   ;;  %s3542_s25 = smov 56  }
 0x175   : > { %214 = vadd.xlane.f32.xlu0 %v213_v34  ;;  %s3815_s13 = scalar_lea.vmem %s4416_s8, %s3733_s22  ;;  %s3543_s26 = smov 48  }
 0x176   : > { %s3544_s27 = smov 104   ;;  %s3545_s28 = smov 72  }
 0x177   : > { %2994 = vmatpush3.bf16.msra.mxu1 %v3278_v51  ;;  %s3546_s29 = smov 40  }
 0x178   : > { %2999 = vmatprep.subr.bf16.mxu1 %v3534_v16 }
 0x1fa   : > { %v212_v35 = vpop.xlane.xlu0 %211  ;;  %v219_v36 = vpop.xlane.xlu1 %218 }
 0x1fb   : > { %v221_v37 = vmul.f32 0.03125, %v212_v35  ;;  %v223_v38 = vmul.f32 0.03125, %v219_v36 }
 0x1fd   : > { %v224_v39 = vsub.f32 %v3525_v25, %v221_v37  ;;  %v226_v40 = vsub.f32 %v3517_v24, %v223_v38 }
 0x1fe   : > { %v215_v41 = vpop.xlane.xlu0 %214 }
 0x1ff   : > { %v222_v42 = vmul.f32 0.03125, %v215_v41  ;;  %v227_v43 = vmul.f32 %v224_v39, %v224_v39  ;;  %v229_v44 = vmul.f32 %v226_v40, %v226_v40 }
 0x201   : > { %v225_v45 = vsub.f32 %v3521_v27, %v222_v42  ;;  %v230_v46 = vsel %vm209_vm13, %v227_v43, 0.0  ;;  %v236_v48 = vsel %vm216_vm14, %v229_v44, 0.0 }
 0x202   : > { %231 = vadd.xlane.f32.xlu1 %v230_v46 }
 0x203   : > { %v228_v47 = vmul.f32 %v225_v45, %v225_v45 }
 0x205   : > { %v233_v49 = vsel %vm209_vm13, %v228_v47, 0.0 }
 0x206   : > { %234 = vadd.xlane.f32.xlu0 %v233_v49  ;;  %237 = vadd.xlane.f32.xlu1 %v236_v48 }
 0x28b   : > { %v232_v52 = vpop.xlane.xlu1 %231 }
 0x28c   : > { %v239_v53 = vmul.f32 0.03125, %v232_v52 }
 0x28e   : > { %v242_v54 = vadd.f32 1e-05, %v239_v53 }
 0x28f   : > { %v235_v55 = vpop.xlane.xlu0 %234  ;;  %v238_v56 = vpop.xlane.xlu1 %237 }
 0x290   : > { %3289 = vrsqrt.f32 %v242_v54  ;;  %v240_v57 = vmul.f32 0.03125, %v235_v55  ;;  %v241_v58 = vmul.f32 0.03125, %v238_v56 }
 0x292   : > { %v243_v59 = vadd.f32 1e-05, %v240_v57  ;;  %v244_v60 = vadd.f32 1e-05, %v241_v58 }
 0x294   : > { %3291 = vrsqrt.f32 %v243_v59 }
 0x295   : > { %3293 = vrsqrt.f32 %v244_v60 }
 0x29d   : > { %v3290_v61 = vpop.eup %3289 }
 0x29e   : > { %v248_v62 = vmul.f32 %v3290_v61, %v224_v39 }
 0x2a0   : > { %v257_v3 = vmul.f32 %v2846_v63, %v248_v62 }
 0x2a1   : > { %v3292_v0 = vpop.eup %3291 }
 0x2a2   : > { %v3294_v1 = vpop.eup %3293  ;;  %v249_v2 = vmul.f32 %v3292_v0, %v225_v45  ;;  %v266_v8 = vadd.f32 %v2847_v4, %v257_v3 }
 0x2a3   : > { %v250_v5 = vmul.f32 %v3294_v1, %v226_v40 }
 0x2a4   : > { %v258_v6 = vmul.f32 %v2846_v63, %v249_v2 }
 0x2a5   : > { %v259_v7 = vmul.f32 %v2846_v63, %v250_v5 }
 0x2a6   : > { %v267_v9 = vadd.f32 %v2847_v4, %v258_v6 }
 0x2a7   : > { %v268_v10 = vadd.f32 %v2847_v4, %v259_v7 }
 0x2a8   : > { %v276_v11 = vpack.c.bf16 %v267_v9, %v266_v8 }
 0x2a9   : > { %v277_v12 = vpack.c.bf16 %v268_v10, %v268_v10 }
 0x2aa   : > { %2995 = vmatprep.mubr.msk.bf16.mxu1 %vm209_vm13, %v276_v11 }
 0x2ab   : > { %2996 = vmatmul.mubr.msk.bf16.vlgmr.msra.gmra.mxu1 %vm209_vm13, %v277_v12 }
 0x2ac   : > { %3001 = vmatprep.mubr.msk.bf16.mxu1 %vm3535_vm15, %v3534_v16 }
 0x36b   : > { %v2997_v17 = vpop.f32.mrf.mxu1 }
 0x36c   : > { %v3755_v18 = vadd.f32 %v2997_v17, %v2850_v14 }
 0x36d   : > { %v338_v19 = vpop.f32.mrf.mxu1 }
 0x36e   : > { %v339_v22 = vadd.f32 %v2850_v14, %v338_v19 }
 0x36f   : > { %v2998_v20 = vpop.f32.mrf.mxu1 }
 0x370   : > { %v352_v33 = vmul.f32 0.35355338, %v339_v22 }
 0x371   : > { %v341_v21 = vpop.f32.mrf.mxu1 }
 0x372   : > { %v342_v23 = vadd.f32 %v2850_v14, %v341_v21 }
 0x374   : > { %v3761_v26 = vpack.c.bf16 %v342_v23, %v339_v22  ;;  %v353_v32 = vmul.f32 0.35355338, %v342_v23 }
 0x376   : > { %366 = vrot.lane.b32.xlu0 %v3761_v26, %s3536_s30  ;;  %v3767_v34 = vpack.c.bf16 %v353_v32, %v352_v33 }
 0x37a   : > { %567 = vrot.lane.b32.xlu0 %v3761_v26, %s3537_s20 }
 0x37e   : > { %565 = vrot.lane.b32.xlu0 %v3767_v34, %s3538_s21 }
 0x3e8   : > { %v367_v35 = vpop.permute.xlu0 %366 }
 0x3e9   : > { %v373_v36 = vsel %vm368_vm0, %v367_v35, 0 }
 0x3ea   : > { %3000 = vmatpush3.bf16.xpose.msra.mxu1 %v373_v36 }
 0x3eb   : > { %3005 = vmatprep.subr.bf16.mxu1 %v3534_v16 }
 0x3ec   : > { %v568_v61 = vpop.permute.xlu0 %567 }
 0x3ed   : > { %v573_v63 = vsel %vm368_vm0, %v568_v61, 0 }
 0x3f0   : > { %v566_v0 = vpop.permute.xlu0 %565 }
 0x3f1   : > { %3002 = vmatmul.mubr.msk.bf16.vlgmr.msra.gmra.mxu1 %vm368_vm0, %v3767_v34 }
 0x3f2   : > { %3007 = vmatprep.mubr.msk.bf16.mxu1 %vm3535_vm15, %v3534_v16 }
 0x4b1   : > { %v409_v37 = vpop.f32.mrf.mxu1 }
 0x4b2   : > { %v417_v38 = vsel %vm416_vm1, %v409_v37, -inf }
 0x4b3   : > { %418 = vmax.xlane.f32.xlu1 %v417_v38  ;;  %v3003_v39 = vpop.f32.mrf.mxu1 }
 0x4b5   : > { %v412_v40 = vpop.f32.mrf.mxu1 }
 0x4b6   : > { %v421_v41 = vsel %vm420_vm2, %v412_v40, -inf }
 0x4b7   : > { %422 = vmax.xlane.f32.xlu1 %v421_v41  ;;  %v3004_v42 = vpop.f32.mrf.mxu1  ;;  %v361_v41 = vld [vmem:[%s3815_s13] sm:$0xf] }
 0x53c   : > { %v419_v43 = vpop.xlane.xlu1 %418 }
 0x53d   : > { %v424_v44 = vsub.f32 %v409_v37, %v419_v43 }
 0x53f   : > { %v426_v45 = vmul.f32 1.442695, %v424_v44 }
 0x540   : > { %v423_v46 = vpop.xlane.xlu1 %422 }
 0x541   : > { %3295 = vpow2.f32 %v426_v45  ;;  %v425_v47 = vsub.f32 %v412_v40, %v423_v46  ;;  %v3825_v45 = vsel %vm692_vm4, %v361_v41, 0  ;;  %v362_v46 = vld [vmem:[%s3815_s13 + $0x4] sm:$0xf] }
 0x543   : > { %v428_v48 = vmul.f32 1.442695, %v425_v47  ;;  %v3837_v47 = vsel %vm692_vm4, %v362_v46, 0  ;;  %v363_v46 = vld [vmem:[%s3815_s13 + $0x8] sm:$0xf] }
 0x545   : > { %3297 = vpow2.f32 %v428_v48 }
 0x54e   : > { %v3296_v49 = vpop.eup %3295 }
 0x54f   : > { %v430_v50 = vsel %vm416_vm1, %v3296_v49, 0.0 }
 0x550   : > { %431 = vadd.xlane.f32.xlu1 %v430_v50 }
 0x552   : > { %v3298_v51 = vpop.eup %3297 }
 0x553   : > { %v433_v52 = vsel %vm420_vm2, %v3298_v51, 0.0 }
 0x554   : > { %434 = vadd.xlane.f32.xlu1 %v433_v52 }
 0x565   : > { %441 = vrot.lane.b32.xlu1 %v3761_v26, %s3539_s2 }
 0x5d9   : > { %v432_v53 = vpop.xlane.xlu1 %431 }
 0x5da   : > { %3299 = vrcp.f32 %v432_v53 }
 0x5dd   : > { %v435_v54 = vpop.xlane.xlu1 %434 }
 0x5de   : > { %3301 = vrcp.f32 %v435_v54 }
 0x5e1   : > { %v442_v55 = vpop.permute.xlu1 %441 }
 0x5e2   : > { %v448_v56 = vsel %vm446_vm3, %v442_v55, 0 }
 0x5e3   : > { %3006 = vmatpush3.bf16.msra.mxu1 %v448_v56 }
 0x5e4   : > { %3011 = vmatprep.subr.bf16.mxu1 %v3534_v16 }
 0x5e7   : > { %v3300_v57 = vpop.eup %3299 }
 0x5e8   : > { %v3785_v59 = vmul.f32 %v3300_v57, %v3296_v49 }
 0x5eb   : > { %v3302_v58 = vpop.eup %3301 }
 0x5ec   : > { %v3787_v60 = vmul.f32 %v3302_v58, %v3298_v51 }
 0x5ee   : > { %v440_v62 = vpack.c.bf16 %v3787_v60, %v3785_v59 }
 0x5f0   : > { %3008 = vmatmul.mubr.msk.bf16.vlgmr.msra.gmra.mxu1 %vm416_vm1, %v440_v62 }
 0x5f1   : > { %3012 = vmatpush3.bf16.xpose.msra.mxu1 %v573_v63  ;;  %3013 = vmatprep.mubr.msk.bf16.mxu1 %vm3535_vm15, %v3534_v16 }
 0x5f2   : > { %3023 = vmatprep.subr.bf16.mxu1 %v3534_v16 }
 0x5f8   : > { %3014 = vmatmul.mubr.msk.bf16.vlgmr.msra.gmra.mxu1 %vm368_vm0, %v566_v0 }
 0x5f9   : > { %3025 = vmatprep.mubr.msk.bf16.mxu1 %vm3535_vm15, %v3534_v16  ;;  %3024 = vmatpush3.bf16.msra.mxu1 %v3837_v47 }
 0x5fa   : > { %3035 = vmatprep.subr.bf16.mxu1 %v3534_v16 }
 0x6b0   : > { %v484_v1 = vpop.f32.mrf.mxu1 }
 0x6b2   : > { %v3009_v2 = vpop.f32.mrf.mxu1 }
 0x6b4   : > { %v487_v3 = vpop.f32.mrf.mxu1 }
 0x6b5   : > { %v491_v4 = vpack.c.bf16 %v487_v3, %v484_v1 }
 0x6b6   : > { %v3010_v5 = vpop.f32.mrf.mxu1 }
 0x6b8   : > { %v609_v6 = vpop.f32.mrf.mxu1 }
 0x6b9   : > { %v616_v7 = vsel %vm416_vm1, %v609_v6, -inf }
 0x6ba   : > { %617 = vmax.xlane.f32.xlu0 %v616_v7  ;;  %v3015_v8 = vpop.f32.mrf.mxu1 }
 0x6bc   : > { %v612_v9 = vpop.f32.mrf.mxu1 }
 0x6bd   : > { %v619_v10 = vsel %vm420_vm2, %v612_v9, -inf }
 0x6be   : > { %620 = vmax.xlane.f32.xlu1 %v619_v10  ;;  %v3016_v11 = vpop.f32.mrf.mxu1 }
 0x6cf   : > { %859 = vrot.lane.b32.xlu1 %v3761_v26, %s3540_s23 }
 0x6d3   : > { %857 = vrot.lane.b32.xlu1 %v3767_v34, %s3541_s24 }
 0x743   : > { %v618_v12 = vpop.xlane.xlu0 %617 }
 0x744   : > { %v622_v14 = vsub.f32 %v609_v6, %v618_v12 }
 0x746   : > { %v624_v17 = vmul.f32 1.442695, %v622_v14 }
 0x747   : > { %v621_v19 = vpop.xlane.xlu1 %620 }
 0x748   : > { %3303 = vpow2.f32 %v624_v17  ;;  %v623_v20 = vsub.f32 %v612_v9, %v621_v19 }
 0x74a   : > { %v626_v21 = vmul.f32 1.442695, %v623_v20 }
 0x74b   : > { %v860_v50 = vpop.permute.xlu1 %859 }
 0x74c   : > { %3305 = vpow2.f32 %v626_v21  ;;  %v865_v54 = vsel %vm368_vm0, %v860_v50, 0 }
 0x74f   : > { %v858_v58 = vpop.permute.xlu1 %857 }
 0x755   : > { %v3304_v22 = vpop.eup %3303 }
 0x756   : > { %v628_v23 = vsel %vm416_vm1, %v3304_v22, 0.0 }
 0x757   : > { %629 = vadd.xlane.f32.xlu0 %v628_v23 }
 0x759   : > { %v3306_v32 = vpop.eup %3305 }
 0x75a   : > { %v631_v33 = vsel %vm420_vm2, %v3306_v32, 0.0 }
 0x75b   : > { %632 = vadd.xlane.f32.xlu0 %v631_v33 }
 0x771   : > { %639 = vrot.lane.b32.xlu0 %v3761_v26, %s3542_s25 }
 0x7e0   : > { %v630_v35 = vpop.xlane.xlu0 %629 }
 0x7e1   : > { %3307 = vrcp.f32 %v630_v35 }
 0x7e4   : > { %v633_v36 = vpop.xlane.xlu0 %632 }
 0x7e5   : > { %3309 = vrcp.f32 %v633_v36 }
 0x7e8   : > { %v640_v37 = vpop.permute.xlu0 %639 }
 0x7e9   : > { %v645_v38 = vsel %vm446_vm3, %v640_v37, 0 }
 0x7ea   : > { %3018 = vmatpush3.bf16.msra.mxu0 %v645_v38 }
 0x7eb   : > { %3029 = vmatprep.subr.bf16.mxu0 %v3534_v16 }
 0x7ee   : > { %v3308_v39 = vpop.eup %3307 }
 0x7ef   : > { %v3818_v42 = vmul.f32 %v3308_v39, %v3304_v22 }
 0x7f2   : > { %v3310_v40 = vpop.eup %3309 }
 0x7f3   : > { %v3820_v43 = vmul.f32 %v3310_v40, %v3306_v32 }
 0x7f5   : > { %v638_v44 = vpack.c.bf16 %v3820_v43, %v3818_v42 }
 0x7f7   : > { %3020 = vmatmul.mubr.msk.bf16.vlgmr.msra.gmra.mxu0 %vm416_vm1, %v638_v44 }
 0x7f8   : > { %3030 = vmatpush3.bf16.msra.mxu0 %v3825_v45  ;;  %3031 = vmatprep.mubr.msk.bf16.mxu0 %vm3535_vm15, %v3534_v16 }
 0x7f9   : > { %3041 = vmatprep.subr.bf16.mxu0 %v3534_v16 }
 0x7ff   : > { %3032 = vmatmul.mubr.msk.bf16.vlgmr.msra.gmra.mxu0 %vm368_vm0, %v491_v4 }
 0x800   : > { %3043 = vmatprep.mubr.msk.bf16.mxu0 %vm3535_vm15, %v3534_v16 }
 0x8b7   : > { %v681_v48 = vpop.f32.mrf.mxu0 }
 0x8b9   : > { %v3021_v49 = vpop.f32.mrf.mxu0 }
 0x8bb   : > { %v684_v51 = vpop.f32.mrf.mxu0 }
 0x8bc   : > { %v688_v52 = vpack.c.bf16 %v684_v51, %v681_v48  ;;  %v3885_v48 = vsel %vm692_vm4, %v363_v46, 0 }
 0x8bd   : > { %v3022_v53 = vpop.f32.mrf.mxu0 }
 0x8be   : > { %3026 = vmatmul.mubr.msk.bf16.vlgmr.msra.gmra.mxu1 %vm368_vm0, %v688_v52 }
 0x8bf   : > { %3036 = vmatpush3.bf16.xpose.msra.mxu1 %v865_v54  ;;  %v3843_v55 = vpop.f32.mrf.mxu0  ;;  %3037 = vmatprep.mubr.msk.bf16.mxu1 %vm3535_vm15, %v3534_v16 }
 0x8c0   : > { %3047 = vmatprep.subr.bf16.mxu1 %v3534_v16 }
 0x8c1   : > { %v3033_v56 = vpop.f32.mrf.mxu0 }
 0x8c3   : > { %v3848_v57 = vpop.f32.mrf.mxu0 }
 0x8c5   : > { %v3034_v61 = vpop.f32.mrf.mxu0 }
 0x8c6   : > { %3038 = vmatmul.mubr.msk.bf16.vlgmr.msra.gmra.mxu1 %vm368_vm0, %v858_v58 }
 0x8c7   : > { %3049 = vmatprep.mubr.msk.bf16.mxu1 %vm3535_vm15, %v3534_v16  ;;  %3048 = vmatpush3.bf16.msra.mxu1 %v3885_v48 }
 0x8c8   : > { %3059 = vmatprep.subr.bf16.mxu1 %v3534_v16 }
 0x97e   : > { %v3853_v62 = vpop.f32.mrf.mxu1 }
 0x980   : > { %v3027_v63 = vpop.f32.mrf.mxu1 }
 0x982   : > { %v3855_v0 = vpop.f32.mrf.mxu1 }
 0x984   : > { %v3028_v1 = vpop.f32.mrf.mxu1 }
 0x986   : > { %v901_v2 = vpop.f32.mrf.mxu1 }
 0x987   : > { %v908_v3 = vsel %vm416_vm1, %v901_v2, -inf }
 0x988   : > { %909 = vmax.xlane.f32.xlu1 %v908_v3  ;;  %v3039_v4 = vpop.f32.mrf.mxu1 }
 0x98a   : > { %v904_v5 = vpop.f32.mrf.mxu1 }
 0x98b   : > { %v911_v6 = vsel %vm420_vm2, %v904_v5, -inf }
 0x98c   : > { %912 = vmax.xlane.f32.xlu0 %v911_v6  ;;  %v3040_v7 = vpop.f32.mrf.mxu1 }
 0x999   : > { %931 = vrot.lane.b32.xlu1 %v3761_v26, %s3543_s26 }
 0x99d   : > { %1103 = vrot.lane.b32.xlu1 %v3767_v34, %s3544_s27 }
 0xa11   : > { %v910_v8 = vpop.xlane.xlu1 %909 }
 0xa12   : > { %v914_v9 = vsub.f32 %v901_v2, %v910_v8 }
 0xa14   : > { %v916_v10 = vmul.f32 1.442695, %v914_v9 }
 0xa15   : > { %v932_v11 = vpop.permute.xlu1 %931  ;;  %v913_v12 = vpop.xlane.xlu0 %912 }
 0xa16   : > { %3311 = vpow2.f32 %v916_v10  ;;  %v937_v14 = vsel %vm446_vm3, %v932_v11, 0  ;;  %v915_v17 = vsub.f32 %v904_v5, %v913_v12  ;;  %v358_v12 = vpack.c.bf16 %v3755_v18, %v3755_v18 }
 0xa17   : > { %3042 = vmatpush3.bf16.msra.mxu0 %v937_v14  ;;  %v1355_v14 = vrot.slane %v3761_v26, 5 }
 0xa18   : > { %v918_v19 = vmul.f32 1.442695, %v915_v17  ;;  %3053 = vmatprep.subr.bf16.mxu0 %v3534_v16  ;;  %v354_v17 = vmul.f32 0.35355338, %v3755_v18  ;;  %v778_v18 = vadd.f32 %v3843_v55, %v3853_v62 }
 0xa19   : > { %v1104_v44 = vpop.permute.xlu1 %1103 }
 0xa1a   : > { %3313 = vpow2.f32 %v918_v19  ;;  %v1356_v19 = vrot.slane %v358_v12, 5 }
 0xa23   : > { %v3312_v20 = vpop.eup %3311 }
 0xa24   : > { %v920_v21 = vsel %vm416_vm1, %v3312_v20, 0.0 }
 0xa25   : > { %921 = vadd.xlane.f32.xlu0 %v920_v21  ;;  %v356_v21 = vpack.c.bf16 %v354_v17, %v354_v17 }
 0xa27   : > { %v3314_v22 = vpop.eup %3313 }
 0xa28   : > { %v923_v23 = vsel %vm420_vm2, %v3314_v22, 0.0 }
 0xa29   : > { %924 = vadd.xlane.f32.xlu0 %v923_v23  ;;  %v1352_v23 = vrot.slane %v356_v21, 5 }
 0xa3f   : > { %1105 = vrot.lane.b32.xlu0 %v3761_v26, %s3545_s28 }
 0xaae   : > { %v922_v32 = vpop.xlane.xlu0 %921 }
 0xaaf   : > { %3315 = vrcp.f32 %v922_v32 }
 0xab2   : > { %v925_v33 = vpop.xlane.xlu0 %924 }
 0xab3   : > { %3317 = vrcp.f32 %v925_v33 }
 0xab6   : > { %v1106_v39 = vpop.permute.xlu0 %1105 }
 0xab7   : > { %v1111_v41 = vsel %vm368_vm0, %v1106_v39, 0 }
 0xabc   : > { %v3316_v35 = vpop.eup %3315 }
 0xabd   : > { %v3869_v37 = vmul.f32 %v3316_v35, %v3312_v20  ;;  %v3900_v20 = vsel %vm1350_vm5, %v1355_v14, %v1356_v19 }
 0xac0   : > { %v3318_v36 = vpop.eup %3317 }
 0xac1   : > { %v3871_v38 = vmul.f32 %v3318_v36, %v3314_v22  ;;  %v1351_v22 = vrot.slane %v3767_v34, 5 }
 0xac3   : > { %v930_v40 = vpack.c.bf16 %v3871_v38, %v3869_v37  ;;  %v3909_v32 = vsel %vm1350_vm5, %v1351_v22, %v1352_v23 }
 0xac5   : > { %3044 = vmatmul.mubr.msk.bf16.vlgmr.msra.gmra.mxu0 %vm416_vm1, %v930_v40 }
 0xac6   : > { %3054 = vmatpush3.bf16.xpose.msra.mxu0 %v1111_v41  ;;  %3055 = vmatprep.mubr.msk.bf16.mxu0 %vm3535_vm15, %v3534_v16 }
 0xac7   : > { %3065 = vmatprep.subr.bf16.mxu0 %v3534_v16 }
 0xacd   : > { %3056 = vmatmul.mubr.msk.bf16.vlgmr.msra.gmra.mxu0 %vm368_vm0, %v1104_v44 }
 0xace   : > { %3067 = vmatprep.mubr.msk.bf16.mxu0 %vm3535_vm15, %v3534_v16 }
 0xb85   : > { %v973_v49 = vpop.f32.mrf.mxu0 }
 0xb87   : > { %v3045_v50 = vpop.f32.mrf.mxu0 }
 0xb89   : > { %v976_v51 = vpop.f32.mrf.mxu0 }
 0xb8a   : > { %v980_v52 = vpack.c.bf16 %v976_v51, %v973_v49 }
 0xb8b   : > { %v3046_v53 = vpop.f32.mrf.mxu0 }
 0xb8c   : > { %3050 = vmatmul.mubr.msk.bf16.vlgmr.msra.gmra.mxu1 %vm368_vm0, %v980_v52 }
 0xb8d   : > { %v1147_v54 = vpop.f32.mrf.mxu0  ;;  %3061 = vmatprep.mubr.msk.bf16.mxu1 %vm3535_vm15, %v3534_v16 }
 0xb8e   : > { %v1154_v56 = vsel %vm416_vm1, %v1147_v54, -inf }
 0xb8f   : > { %1155 = vmax.xlane.f32.xlu1 %v1154_v56  ;;  %v3057_v58 = vpop.f32.mrf.mxu0 }
 0xb90   : > { %v364_v58 = vld [vmem:[%s3815_s13 + $0xc] sm:$0xf]  ;;  %s2337_s13 = scalar_lea.vmem %s4419_s11, %s3529_s1 }
 0xb91   : > { %v1150_v61 = vpop.f32.mrf.mxu0 }
 0xb92   : > { %v1157_v63 = vsel %vm420_vm2, %v1150_v61, -inf }
 0xb93   : > { %1158 = vmax.xlane.f32.xlu0 %v1157_v63  ;;  %v3058_v1 = vpop.f32.mrf.mxu0 }
 0xc18   : > { %v1156_v2 = vpop.xlane.xlu1 %1155 }
 0xc19   : > { %v1160_v3 = vsub.f32 %v1147_v54, %v1156_v2 }
 0xc1b   : > { %v1162_v4 = vmul.f32 1.442695, %v1160_v3 }
 0xc1c   : > { %v1159_v5 = vpop.xlane.xlu0 %1158 }
 0xc1d   : > { %3319 = vpow2.f32 %v1162_v4  ;;  %v1161_v6 = vsub.f32 %v1150_v61, %v1159_v5  ;;  %v3947_v61 = vsel %vm692_vm4, %v364_v58, 0 }
 0xc1e   : > { %3066 = vmatpush3.bf16.msra.mxu0 %v3947_v61 }
 0xc1f   : > { %v1164_v7 = vmul.f32 1.442695, %v1161_v6  ;;  %3077 = vmatprep.subr.bf16.mxu0 %v3534_v16 }
 0xc21   : > { %3321 = vpow2.f32 %v1164_v7 }
 0xc2a   : > { %v3320_v8 = vpop.eup %3319 }
 0xc2b   : > { %v1166_v9 = vsel %vm416_vm1, %v3320_v8, 0.0 }
 0xc2c   : > { %1167 = vadd.xlane.f32.xlu0 %v1166_v9 }
 0xc2e   : > { %v3322_v10 = vpop.eup %3321 }
 0xc2f   : > { %v1169_v11 = vsel %vm420_vm2, %v3322_v10, 0.0 }
 0xc30   : > { %1170 = vadd.xlane.f32.xlu1 %v1169_v11 }
 0xc41   : > { %1358 = vrot.lane.b32.xlu1 %v3900_v20, %s3536_s30 }
 0xc42   : > { %1177 = vrot.lane.b32.xlu0 %v3761_v26, %s3546_s29  ;;  %v781_v26 = vadd.f32 %v3848_v57, %v3855_v0 }
 0xc45   : > { %1552 = vrot.lane.b32.xlu1 %v3900_v20, %s3537_s20  ;;  %s2324_s20 = scalar_lea.vmem %s4417_s9, %s3529_s1 }
 0xc49   : > { %1550 = vrot.lane.b32.xlu1 %v3909_v32, %s3538_s21  ;;  %s4451_s21 = sld [smem:[#allocation20_spill]] }
 0xc4c   : > { %v1021_v33 = vpop.f32.mrf.mxu1 }
 0xc4d   : > { %v3915_v35 = vadd.f32 %v1021_v33, %v778_v18 }
 0xc4e   : > { %v3051_v36 = vpop.f32.mrf.mxu1 }
 0xc50   : > { %v1024_v34 = vpop.f32.mrf.mxu1 }
 0xc51   : > { %v3919_v39 = vadd.f32 %v1024_v34, %v781_v26 }
 0xc52   : > { %v3052_v40 = vpop.f32.mrf.mxu1 }
 0xcb5   : > { %v1168_v41 = vpop.xlane.xlu0 %1167 }
 0xcb6   : > { %3323 = vrcp.f32 %v1168_v41 }
 0xcb9   : > { %v1171_v44 = vpop.xlane.xlu1 %1170  ;;  %v1178_v46 = vpop.permute.xlu0 %1177 }
 0xcba   : > { %3325 = vrcp.f32 %v1171_v44  ;;  %v1183_v49 = vsel %vm446_vm3, %v1178_v46, 0 }
 0xcbb   : > { %3060 = vmatpush3.bf16.msra.mxu1 %v1183_v49 }
 0xcbc   : > { %3071 = vmatprep.subr.bf16.mxu1 %v3534_v16 }
 0xcbd   : > { %v1359_v57 = vpop.permute.xlu1 %1358 }
 0xcbe   : > { %v1364_v52 = vsel %vm368_vm0, %v1359_v57, 0 }
 0xcc1   : > { %v1553_v53 = vpop.permute.xlu1 %1552 }
 0xcc2   : > { %v1558_v54 = vsel %vm368_vm0, %v1553_v53, 0 }
 0xcc3   : > { %v3324_v55 = vpop.eup %3323 }
 0xcc4   : > { %v3923_v50 = vmul.f32 %v3324_v55, %v3320_v8 }
 0xcc5   : > { %v1551_v56 = vpop.permute.xlu1 %1550 }
 0xcc7   : > { %v3326_v62 = vpop.eup %3325 }
 0xcc8   : > { %v3925_v51 = vmul.f32 %v3326_v62, %v3322_v10 }
 0xcca   : > { %v1176_v0 = vpack.c.bf16 %v3925_v51, %v3923_v50 }
 0xccc   : > { %3062 = vmatmul.mubr.msk.bf16.vlgmr.msra.gmra.mxu1 %vm416_vm1, %v1176_v0 }
 0xccd   : > { %3072 = vmatpush3.bf16.xpose.msra.mxu1 %v1364_v52  ;;  %3073 = vmatprep.mubr.msk.bf16.mxu1 %vm3535_vm15, %v3534_v16 }
 0xcce   : > { %3083 = vmatprep.subr.bf16.mxu1 %v3534_v16 }
 0xcd4   : > { %3074 = vmatmul.mubr.msk.bf16.vlgmr.msra.gmra.mxu1 %vm368_vm0, %v3909_v32 }
 0xcd5   : > { %3084 = vmatpush3.bf16.xpose.msra.mxu1 %v1558_v54  ;;  %3085 = vmatprep.mubr.msk.bf16.mxu1 %vm3535_vm15, %v3534_v16 }
 0xcd6   : > { %3095 = vmatprep.subr.bf16.mxu1 %v3534_v16 }
 0xcdc   : > { %3086 = vmatmul.mubr.msk.bf16.vlgmr.msra.gmra.mxu1 %vm368_vm0, %v1551_v56 }
 0xcdd   : > { %3096 = vmatpush3.bf16.msra.mxu1 %v3837_v47  ;;  %3097 = vmatprep.mubr.msk.bf16.mxu1 %vm3535_vm15, %v3534_v16 }
 0xcde   : > { %3107 = vmatprep.subr.bf16.mxu1 %v3534_v16 }
 0xd8c   : > { %v1219_v63 = vpop.f32.mrf.mxu1 }
 0xd8e   : > { %v3063_v1 = vpop.f32.mrf.mxu1 }
 0xd90   : > { %v1222_v2 = vpop.f32.mrf.mxu1 }
 0xd91   : > { %v1226_v3 = vpack.c.bf16 %v1222_v2, %v1219_v63 }
 0xd92   : > { %v3064_v4 = vpop.f32.mrf.mxu1 }
 0xd93   : > { %3068 = vmatmul.mubr.msk.bf16.vlgmr.msra.gmra.mxu0 %vm368_vm0, %v1226_v3 }
 0xd94   : > { %v1400_v47 = vpop.f32.mrf.mxu1  ;;  %3079 = vmatprep.mubr.msk.bf16.mxu0 %vm3535_vm15, %v3534_v16 }
 0xd95   : > { %v1407_v5 = vsel %vm416_vm1, %v1400_v47, -inf }
 0xd96   : > { %1408 = vmax.xlane.f32.xlu0 %v1407_v5  ;;  %v3075_v6 = vpop.f32.mrf.mxu1 }
 0xd98   : > { %v1403_v7 = vpop.f32.mrf.mxu1 }
 0xd99   : > { %v1410_v8 = vsel %vm420_vm2, %v1403_v7, -inf }
 0xd9a   : > { %1411 = vmax.xlane.f32.xlu1 %v1410_v8  ;;  %v3076_v9 = vpop.f32.mrf.mxu1 }
 0xd9c   : > { %v1594_v10 = vpop.f32.mrf.mxu1 }
 0xd9d   : > { %v1601_v11 = vsel %vm416_vm1, %v1594_v10, -inf }
 0xd9e   : > { %1602 = vmax.xlane.f32.xlu0 %v1601_v11  ;;  %v3087_v12 = vpop.f32.mrf.mxu1 }
 0xda0   : > { %v1597_v14 = vpop.f32.mrf.mxu1 }
 0xda1   : > { %v1604_v17 = vsel %vm420_vm2, %v1597_v14, -inf }
 0xda2   : > { %1605 = vmax.xlane.f32.xlu0 %v1604_v17  ;;  %v3088_v19 = vpop.f32.mrf.mxu1 }
 0xe1f   : > { %v1409_v21 = vpop.xlane.xlu0 %1408 }
 0xe20   : > { %v1413_v22 = vsub.f32 %v1400_v47, %v1409_v21 }
 0xe22   : > { %v1415_v23 = vmul.f32 1.442695, %v1413_v22 }
 0xe23   : > { %v1412_v18 = vpop.xlane.xlu1 %1411 }
 0xe24   : > { %3327 = vpow2.f32 %v1415_v23  ;;  %v1414_v33 = vsub.f32 %v1403_v7, %v1412_v18 }
 0xe26   : > { %v1417_v36 = vmul.f32 1.442695, %v1414_v33 }
 0xe27   : > { %v1603_v26 = vpop.xlane.xlu0 %1602 }
 0xe28   : > { %3329 = vpow2.f32 %v1417_v36  ;;  %v1607_v34 = vsub.f32 %v1594_v10, %v1603_v26 }
 0xe2a   : > { %v1609_v40 = vmul.f32 1.442695, %v1607_v34 }
 0xe2b   : > { %v1606_v41 = vpop.xlane.xlu0 %1605 }
 0xe2c   : > { %3331 = vpow2.f32 %v1609_v40  ;;  %v1608_v44 = vsub.f32 %v1597_v14, %v1606_v41 }
 0xe2e   : > { %v1611_v46 = vmul.f32 1.442695, %v1608_v44 }
 0xe30   : > { %3333 = vpow2.f32 %v1611_v46 }
 0xe31   : > { %v3328_v49 = vpop.eup %3327 }
 0xe32   : > { %v1419_v55 = vsel %vm416_vm1, %v3328_v49, 0.0 }
 0xe33   : > { %1420 = vadd.xlane.f32.xlu0 %v1419_v55 }
 0xe35   : > { %v3330_v62 = vpop.eup %3329 }
 0xe36   : > { %v1422_v57 = vsel %vm420_vm2, %v3330_v62, 0.0 }
 0xe37   : > { %1423 = vadd.xlane.f32.xlu1 %v1422_v57 }
 0xe39   : > { %v3332_v0 = vpop.eup %3331 }
 0xe3a   : > { %v1613_v52 = vsel %vm416_vm1, %v3332_v0, 0.0 }
 0xe3b   : > { %1614 = vadd.xlane.f32.xlu0 %v1613_v52 }
 0xe3d   : > { %v3334_v53 = vpop.eup %3333 }
 0xe3e   : > { %v1616_v54 = vsel %vm420_vm2, %v3334_v53, 0.0 }
 0xe3f   : > { %1617 = vadd.xlane.f32.xlu1 %v1616_v54 }
 0xe50   : > { %1624 = vrot.lane.b32.xlu1 %v3900_v20, %s3542_s25  ;;  %s2335_s25 = scalar_lea.vmem %s4418_s10, %s3529_s1 }
 0xe51   : > { %1430 = vrot.lane.b32.xlu0 %v3900_v20, %s3539_s2  ;;  %s2404_s2 = scalar_lea.vmem %s4451_s21, %s3529_s1 }
 0xe53   : > { %v1267_v56 = vpop.f32.mrf.mxu0 }
 0xe54   : > { %v3967_v58 = vadd.f32 %v1267_v56, %v3915_v35  ;;  %1834 = vrot.lane.b32.xlu1 %v3900_v20, %s3540_s23  ;;  %s2397_s23 = scalar_lea.vmem %s4420_s12, %s3733_s22 }
 0xe55   : > { %v3069_v63 = vpop.f32.mrf.mxu0 }
 0xe57   : > { %v1270_v1 = vpop.f32.mrf.mxu0 }
 0xe58   : > { %v3972_v2 = vadd.f32 %v1270_v1, %v3919_v39  ;;  %1832 = vrot.lane.b32.xlu1 %v3909_v32, %s3541_s24  ;;  %s4281_s24 = sshll.u32 %s3529_s1, 2 }
 0xe59   : > { %v3070_v3 = vpop.f32.mrf.mxu0  ;;  %s850_s3 = sadd.s32 1, %s4281_s24 }
 0xe5a   : > { %s851_s14 = sld [smem:[#allocation3 + %s850_s3]] }
 0xebc   : > { %v1421_v4 = vpop.xlane.xlu0 %1420 }
 0xebd   : > { %3335 = vrcp.f32 %v1421_v4 }
 0xec0   : > { %v1424_v47 = vpop.xlane.xlu1 %1423 }
 0xec1   : > { %3337 = vrcp.f32 %v1424_v47 }
 0xec4   : > { %v1615_v5 = vpop.xlane.xlu0 %1614 }
 0xec5   : > { %3339 = vrcp.f32 %v1615_v5 }
 0xec8   : > { %v1618_v35 = vpop.xlane.xlu1 %1617  ;;  %v1431_v6 = vpop.permute.xlu0 %1430 }
 0xec9   : > { %3341 = vrcp.f32 %v1618_v35  ;;  %v1436_v7 = vsel %vm446_vm3, %v1431_v6, 0 }
 0xeca   : > { %3078 = vmatpush3.bf16.msra.mxu0 %v1436_v7  ;;  %v3336_v39 = vpop.eup %3335 }
 0xecb   : > { %3089 = vmatprep.subr.bf16.mxu0 %v3534_v16  ;;  %v3978_v9 = vmul.f32 %v3336_v39, %v3328_v49 }
 0xecc   : > { %v1625_v11 = vpop.permute.xlu1 %1624 }
 0xecd   : > { %v1630_v14 = vsel %vm446_vm3, %v1625_v11, 0 }
 0xece   : > { %v3338_v8 = vpop.eup %3337 }
 0xecf   : > { %v3980_v10 = vmul.f32 %v3338_v8, %v3330_v62 }
 0xed0   : > { %v1835_v44 = vpop.permute.xlu1 %1834 }
 0xed1   : > { %v1429_v12 = vpack.c.bf16 %v3980_v10, %v3978_v9  ;;  %v1840_v55 = vsel %vm368_vm0, %v1835_v44, 0 }
 0xed2   : > { %v3340_v17 = vpop.eup %3339 }
 0xed3   : > { %3080 = vmatmul.mubr.msk.bf16.vlgmr.msra.gmra.mxu0 %vm416_vm1, %v1429_v12  ;;  %v3989_v21 = vmul.f32 %v3340_v17, %v3332_v0 }
 0xed4   : > { %3090 = vmatpush3.bf16.msra.mxu0 %v1630_v14  ;;  %3091 = vmatprep.mubr.msk.bf16.mxu0 %vm3535_vm15, %v3534_v16  ;;  %v1833_v62 = vpop.permute.xlu1 %1832 }
 0xed5   : > { %3101 = vmatprep.subr.bf16.mxu0 %v3534_v16 }
 0xed6   : > { %v3342_v19 = vpop.eup %3341 }
 0xed7   : > { %v3991_v22 = vmul.f32 %v3342_v19, %v3334_v53 }
 0xed9   : > { %v1623_v23 = vpack.c.bf16 %v3991_v22, %v3989_v21 }
 0xedb   : > { %3092 = vmatmul.mubr.msk.bf16.vlgmr.msra.gmra.mxu0 %vm416_vm1, %v1623_v23 }
 0xedc   : > { %3102 = vmatpush3.bf16.msra.mxu0 %v3825_v45  ;;  %3103 = vmatprep.mubr.msk.bf16.mxu0 %vm3535_vm15, %v3534_v16 }
 0xedd   : > { %3113 = vmatprep.subr.bf16.mxu0 %v3534_v16 }
 0xf93   : > { %v1472_v18 = vpop.f32.mrf.mxu0 }
 0xf95   : > { %v3081_v33 = vpop.f32.mrf.mxu0 }
 0xf97   : > { %v1475_v36 = vpop.f32.mrf.mxu0 }
 0xf98   : > { %v1479_v26 = vpack.c.bf16 %v1475_v36, %v1472_v18 }
 0xf99   : > { %v3082_v34 = vpop.f32.mrf.mxu0 }
 0xf9a   : > { %3104 = vmatmul.mubr.msk.bf16.vlgmr.msra.gmra.mxu0 %vm368_vm0, %v1479_v26 }
 0xf9b   : > { %v1666_v40 = vpop.f32.mrf.mxu0  ;;  %3115 = vmatprep.mubr.msk.bf16.mxu0 %vm3535_vm15, %v3534_v16 }
 0xf9d   : > { %v3093_v41 = vpop.f32.mrf.mxu0 }
 0xf9f   : > { %v1669_v46 = vpop.f32.mrf.mxu0 }
 0xfa0   : > { %v1673_v45 = vpack.c.bf16 %v1669_v46, %v1666_v40 }
 0xfa1   : > { %v3094_v49 = vpop.f32.mrf.mxu0 }
 0xfa2   : > { %3098 = vmatmul.mubr.msk.bf16.vlgmr.msra.gmra.mxu1 %vm368_vm0, %v1673_v45 }
 0xfa3   : > { %3108 = vmatpush3.bf16.xpose.msra.mxu1 %v1840_v55  ;;  %3109 = vmatprep.mubr.msk.bf16.mxu1 %vm3535_vm15, %v3534_v16 }
 0xfa4   : > { %3119 = vmatprep.subr.bf16.mxu1 %v3534_v16 }
 0xfaa   : > { %3110 = vmatmul.mubr.msk.bf16.vlgmr.msra.gmra.mxu1 %vm368_vm0, %v1833_v62 }
 0xfab   : > { %3120 = vmatpush3.bf16.msra.mxu1 %v3885_v48  ;;  %3121 = vmatprep.mubr.msk.bf16.mxu1 %vm3535_vm15, %v3534_v16 }
 0xfac   : > { %3131 = vmatprep.subr.bf16.mxu1 %v3534_v16 }
0x105a   : > { %v1755_v57 = vpop.f32.mrf.mxu0 }
0x105c   : > { %v3105_v0 = vpop.f32.mrf.mxu0 }
0x105e   : > { %v1758_v52 = vpop.f32.mrf.mxu0 }
0x1060   : > { %v3106_v53 = vpop.f32.mrf.mxu0 }
0x1062   : > { %v1711_v54 = vpop.f32.mrf.mxu1 }
0x1063   : > { %v4013_v56 = vadd.f32 %v1755_v57, %v1711_v54 }
0x1064   : > { %v3099_v63 = vpop.f32.mrf.mxu1 }
0x1066   : > { %v1714_v1 = vpop.f32.mrf.mxu1 }
0x1067   : > { %v4015_v3 = vadd.f32 %v1758_v52, %v1714_v1 }
0x1068   : > { %v3100_v4 = vpop.f32.mrf.mxu1 }
0x106a   : > { %v1876_v47 = vpop.f32.mrf.mxu1 }
0x106b   : > { %v1883_v48 = vsel %vm416_vm1, %v1876_v47, -inf }
0x106c   : > { %1884 = vmax.xlane.f32.xlu0 %v1883_v48  ;;  %v3111_v5 = vpop.f32.mrf.mxu1 }
0x106e   : > { %v1879_v35 = vpop.f32.mrf.mxu1 }
0x106f   : > { %v1886_v6 = vsel %vm420_vm2, %v1879_v35, -inf }
0x1070   : > { %1887 = vmax.xlane.f32.xlu1 %v1886_v6  ;;  %v3112_v7 = vpop.f32.mrf.mxu1 }
0x1081   : > { %2074 = vrot.lane.b32.xlu1 %v3900_v20, %s3545_s28  ;;  %s1096_s28 = sadd.s32 2, %s4281_s24 }
0x1085   : > { %2072 = vrot.lane.b32.xlu1 %v3909_v32, %s3544_s27 }
0x10f5   : > { %v1885_v39 = vpop.xlane.xlu0 %1884 }
0x10f6   : > { %v1889_v8 = vsub.f32 %v1876_v47, %v1885_v39 }
0x10f8   : > { %v1891_v11 = vmul.f32 1.442695, %v1889_v8 }
0x10f9   : > { %v1888_v12 = vpop.xlane.xlu1 %1887 }
0x10fa   : > { %3343 = vpow2.f32 %v1891_v11  ;;  %v1890_v14 = vsub.f32 %v1879_v35, %v1888_v12 }
0x10fc   : > { %v1893_v17 = vmul.f32 1.442695, %v1890_v14 }
0x10fd   : > { %v2075_v45 = vpop.permute.xlu1 %2074 }
0x10fe   : > { %3345 = vpow2.f32 %v1893_v17  ;;  %v2080_v55 = vsel %vm368_vm0, %v2075_v45, 0  ;;  %v2880_v17 = vld [vmem:[%s2324_s20] ss:$0 sm:$0xff] }
0x1101   : > { %v2073_v62 = vpop.permute.xlu1 %2072 }
0x1107   : > { %v3344_v19 = vpop.eup %3343 }
0x1108   : > { %v1895_v23 = vsel %vm416_vm1, %v3344_v19, 0.0 }
0x1109   : > { %1896 = vadd.xlane.f32.xlu0 %v1895_v23 }
0x110b   : > { %v3346_v18 = vpop.eup %3345 }
0x110c   : > { %v1898_v33 = vsel %vm420_vm2, %v3346_v18, 0.0 }
0x110d   : > { %1899 = vadd.xlane.f32.xlu0 %v1898_v33 }
0x1123   : > { %1906 = vrot.lane.b32.xlu0 %v3900_v20, %s3543_s26  ;;  %s2909_s26 = sshll.u32 %s3529_s1, 6 }
0x1192   : > { %v1897_v32 = vpop.xlane.xlu0 %1896 }
0x1193   : > { %3347 = vrcp.f32 %v1897_v32 }
0x1196   : > { %v1900_v36 = vpop.xlane.xlu0 %1899 }
0x1197   : > { %3349 = vrcp.f32 %v1900_v36 }
0x119a   : > { %v1907_v26 = vpop.permute.xlu0 %1906 }
0x119b   : > { %v1912_v34 = vsel %vm446_vm3, %v1907_v26, 0 }
0x119c   : > { %3114 = vmatpush3.bf16.msra.mxu0 %v1912_v34 }
0x119d   : > { %3125 = vmatprep.subr.bf16.mxu0 %v3534_v16 }
0x11a0   : > { %v3348_v40 = vpop.eup %3347 }
0x11a1   : > { %v4029_v44 = vmul.f32 %v3348_v40, %v3344_v19 }
0x11a4   : > { %v3350_v41 = vpop.eup %3349 }
0x11a5   : > { %v4031_v46 = vmul.f32 %v3350_v41, %v3346_v18 }
0x11a7   : > { %v1905_v49 = vpack.c.bf16 %v4031_v46, %v4029_v44 }
0x11a9   : > { %3116 = vmatmul.mubr.msk.bf16.vlgmr.msra.gmra.mxu0 %vm416_vm1, %v1905_v49 }
0x11aa   : > { %3126 = vmatpush3.bf16.xpose.msra.mxu0 %v2080_v55  ;;  %3127 = vmatprep.mubr.msk.bf16.mxu0 %vm3535_vm15, %v3534_v16 }
0x11ab   : > { %3137 = vmatprep.subr.bf16.mxu0 %v3534_v16 }
0x11b1   : > { %3128 = vmatmul.mubr.msk.bf16.vlgmr.msra.gmra.mxu0 %vm368_vm0, %v2073_v62 }
0x11b2   : > { %3138 = vmatpush3.bf16.msra.mxu0 %v3947_v61  ;;  %3139 = vmatprep.mubr.msk.bf16.mxu0 %vm3535_vm15, %v3534_v16 }
0x1269   : > { %v1948_v57 = vpop.f32.mrf.mxu0 }
0x126b   : > { %v3117_v0 = vpop.f32.mrf.mxu0 }
0x126d   : > { %v1951_v52 = vpop.f32.mrf.mxu0 }
0x126e   : > { %v1955_v53 = vpack.c.bf16 %v1951_v52, %v1948_v57 }
0x126f   : > { %v3118_v54 = vpop.f32.mrf.mxu0 }
0x1270   : > { %3122 = vmatmul.mubr.msk.bf16.vlgmr.msra.gmra.mxu1 %vm368_vm0, %v1955_v53 }
0x1271   : > { %v2116_v63 = vpop.f32.mrf.mxu0  ;;  %3133 = vmatprep.mubr.msk.bf16.mxu1 %vm3535_vm15, %v3534_v16 }
0x1272   : > { %v2123_v1 = vsel %vm416_vm1, %v2116_v63, -inf }
0x1273   : > { %2124 = vmax.xlane.f32.xlu1 %v2123_v1  ;;  %v3129_v4 = vpop.f32.mrf.mxu0 }
0x1275   : > { %v2119_v47 = vpop.f32.mrf.mxu0 }
0x1276   : > { %v2126_v61 = vsel %vm420_vm2, %v2119_v47, -inf }
0x1277   : > { %2127 = vmax.xlane.f32.xlu0 %v2126_v61  ;;  %v3130_v48 = vpop.f32.mrf.mxu0 }
0x1284   : > { %2146 = vrot.lane.b32.xlu1 %v3900_v20, %s3546_s29  ;;  %v2321_v20 = vadd.f32 %v3525_v25, %v3967_v58  ;;  %s4450_s29 = sld [smem:[#allocation21_spill]] }
0x1286   : > { %v4059_v23 = vadd.f32 %v2880_v17, %v2321_v20 }
0x1288   : > { %4448 = vst [vmem:[#allocation14_spill] sm:$0xff] %v4059_v23  ;;  %v2339_v33 = vsel %vm209_vm13, %v4059_v23, 0.0 }
0x128a   : > { %s2507_s0 = scalar_lea.vmem %s4450_s29, %s2909_s26  ;;  %s1342_s29 = sadd.s32 3, %s4281_s24 }
0x128b   : > { %s1343_s30 = sld [smem:[#allocation3 + %s1342_s29]] }
0x12fc   : > { %v2125_v5 = vpop.xlane.xlu1 %2124 }
0x12fd   : > { %v2129_v35 = vsub.f32 %v2116_v63, %v2125_v5 }
0x12ff   : > { %v2131_v6 = vmul.f32 1.442695, %v2129_v35 }
0x1300   : > { %v2147_v7 = vpop.permute.xlu1 %2146  ;;  %v2128_v39 = vpop.xlane.xlu0 %2127 }
0x1301   : > { %3351 = vpow2.f32 %v2131_v6  ;;  %v2152_v16 = vsel %vm446_vm3, %v2147_v7, 0  ;;  %v2130_v8 = vsub.f32 %v2119_v47, %v2128_v39 }
0x1302   : > { %3132 = vmatpush3.bf16.msra.mxu1 %v2152_v16 }
0x1303   : > { %v2133_v11 = vmul.f32 1.442695, %v2130_v8 }
0x1305   : > { %3353 = vpow2.f32 %v2133_v11 }
0x130e   : > { %v3352_v12 = vpop.eup %3351 }
0x130f   : > { %v2135_v14 = vsel %vm416_vm1, %v3352_v12, 0.0 }
0x1310   : > { %2136 = vadd.xlane.f32.xlu0 %v2135_v14 }
0x1312   : > { %v3354_v19 = vpop.eup %3353 }
0x1313   : > { %v2138_v18 = vsel %vm420_vm2, %v3354_v19, 0.0 }
0x1314   : > { %2139 = vadd.xlane.f32.xlu0 %v2138_v18 }
0x1318   : > { %2340 = vadd.xlane.f32.xlu0 %v2339_v33 }
0x1330   : > { %v1993_v32 = vpop.f32.mrf.mxu1 }
0x1331   : > { %v2000_v36 = vadd.f32 %v1993_v32, %v4013_v56 }
0x1332   : > { %v3123_v26 = vpop.f32.mrf.mxu1 }
0x1334   : > { %v1996_v34 = vpop.f32.mrf.mxu1 }
0x1335   : > { %v2001_v25 = vadd.f32 %v1996_v34, %v4015_v3 }
0x1336   : > { %v3124_v58 = vpop.f32.mrf.mxu1 }
0x1399   : > { %v2137_v40 = vpop.xlane.xlu0 %2136 }
0x139a   : > { %3355 = vrcp.f32 %v2137_v40  ;;  %v3279_v40 = vld [vmem:[%s2397_s23 + $0x8] sm:$0xff]  }
0x139b   : > { %3143 = vmatprep.subr.bf16.mxu1 %v3279_v40 }
0x139d   : > { %v2140_v41 = vpop.xlane.xlu0 %2139 }
0x139e   : > { %3357 = vrcp.f32 %v2140_v41  ;;  %v3280_v41 = vld [vmem:[%s2397_s23] sm:$0xff]  }
0x13a1   : > { %v2341_v4 = vpop.xlane.xlu0 %2340 }
0x13a2   : > { %v2348_v35 = vmul.f32 0.03125, %v2341_v4  ;;  %v2881_v4 = vld [vmem:[%s2335_s25] ss:$0 sm:$0xff]  ;;  %s558_s25 = sld [smem:[#allocation3 + %s4281_s24]]  ;;  %s2625_s24 = scalar_lea.vmem %s4423_s15, %s3529_s1 }
0x13a3   : > { %s197_s1 = sadd.s32 1, %s3529_s1  }
0x13a4   : > { %v2351_v11 = vsub.f32 %v4059_v23, %v2348_v35  ;;  %p194_p5 = scmp.ge.s32.totalorder %s197_s1, 5  }
0x13a5   :  { %s3547_s4 = smov (%p194_p5), 127   ;;  %vm2728_vm7 = vcmask (%p194_p5), 57344   ;;  %vm2726_vm8 = vcmask (%p194_p5), 64513   ;;  %vm2698_vm9 = vcmask (%p194_p5), 261121   ;;  %vm2700_vm10 = vcmask (%p194_p5), 253952   ;;  %s3548_s9 = smov (%p194_p5), [#allocation7]  }
0x13a6   :  { %vm2731_vm11 = vcmask (%p194_p5), 261123   ;;  %s2779_s10 = sshll.u32 (%p194_p5), %s3548_s9, 4  ;;  %s2780_s10 = int_to_ptr.vmem [resolvable:$true] %s2779_s10 }
0x13a7   : > { %v3356_v45 = vpop.eup %3355  ;;  %s3421_s11 = scalar_lea.vmem (%p194_p5), %s2780_s10, 256  ;;  %p3426_p7 = scmp.lt.s32.totalorder (%p194_p5), %s2780_s10, %s2780_s10 }
0x13a8   : > { %v4066_v55 = vmul.f32 %v3356_v45, %v3352_v12  ;;  %p3422_p6 = scmp.ne.s32.totalorder (%p194_p5), %s2780_s10, %s3421_s11  ;;  %p3427_p8 = scmp.lt.s32.totalorder (%p194_p5), %s3421_s11, %s3421_s11 }
0x13aa   :  { %p3428_p9 = por (%p194_p5), %p3427_p8, %p3426_p7 }
0x13ab   : > { %v3358_v49 = vpop.eup %3357 }
0x13ac   : > { %v4068_v62 = vmul.f32 %v3358_v49, %v3354_v19  ;;  %v2354_v19 = vmul.f32 %v2351_v11, %v2351_v11  ;;  %p3429_p10 = pnand (%p194_p5), %p3428_p9, %p3422_p6 }
0x13ae   : > { %v2145_v57 = vpack.c.bf16 %v4068_v62, %v4066_v55 }
0x13b0   : > { %3134 = vmatmul.mubr.msk.bf16.vlgmr.msra.gmra.mxu1 %vm416_vm1, %v2145_v57 }
0x13b1   : > { %3144 = vmatpush3.bf16.msra.mxu1 %v3279_v40 }
0x13b2   : > { %3145 = vmatprep.subr.bf16.mxu1 %v3280_v41 }
0x13b5   : > { %3146 = vmatpush3.bf16.msra.mxu1 %v3280_v41 }
0x1470   : > { %v2188_v56 = vpop.f32.mrf.mxu1 }
0x1472   : > { %v3135_v0 = vpop.f32.mrf.mxu1 }
0x1474   : > { %v2191_v52 = vpop.f32.mrf.mxu1 }
0x1475   : > { %v2195_v3 = vpack.c.bf16 %v2191_v52, %v2188_v56 }
0x1476   : > { %v3136_v53 = vpop.f32.mrf.mxu1 }
0x1477   : > { %3140 = vmatmul.mubr.msk.bf16.vlgmr.msra.gmra.mxu0 %vm368_vm0, %v2195_v3 }
0x1537   : > { %v2233_v54 = vpop.f32.mrf.mxu0 }
0x1538   : > { %v2240_v63 = vadd.f32 %v2233_v54, %v2000_v36 }
0x1539   : > { %v3141_v1 = vpop.f32.mrf.mxu0 }
0x153a   : > { %v2315_v47 = vrot.slane %v2240_v63, 6 }
0x153b   : > { %v2236_v61 = vpop.f32.mrf.mxu0 }
0x153c   : > { %v2320_v48 = vsel %vm2314_vm6, %v3972_v2, %v2315_v47  ;;  %v2241_v5 = vadd.f32 %v2236_v61, %v2001_v25 }
0x153d   : > { %v2322_v6 = vadd.f32 %v3521_v27, %v2320_v48  ;;  %v3142_v7 = vpop.f32.mrf.mxu0  ;;  %v2357_v27 = vsel %vm209_vm13, %v2354_v19, 0.0 }
0x153e   : > { %v2316_v39 = vrot.slane %v2241_v5, 6  ;;  %v2882_v5 = vld [vmem:[%s2337_s13] ss:$0 sm:$0xff] }
0x153f   : > { %v4076_v16 = vadd.f32 %v2880_v17, %v2322_v6 }
0x1540   : > { %v2317_v8 = vsel %vm2314_vm6, %v2315_v47, %v2316_v39 }
0x1541   : > { %4449 = vst [vmem:[#allocation15_spill] sm:$0xff] %v4076_v16  ;;  %v2323_v12 = vadd.f32 %v3517_v24, %v2317_v8  ;;  %v2342_v20 = vsel %vm209_vm13, %v4076_v16, 0.0 }
0x1542   : > { %2343 = vadd.xlane.f32.xlu0 %v2342_v20 }
0x1543   : > { %v4082_v14 = vadd.f32 %v2880_v17, %v2323_v12 }
0x1545   : > { %v2345_v2 = vsel %vm216_vm14, %v4082_v14, 0.0 }
0x1546   : > { %2346 = vadd.xlane.f32.xlu0 %v2345_v2 }
0x154a   : > { %2358 = vadd.xlane.f32.xlu0 %v2357_v27 }
0x15cb   : > { %v2344_v18 = vpop.xlane.xlu0 %2343 }
0x15cc   : > { %v2349_v33 = vmul.f32 0.03125, %v2344_v18 }
0x15ce   : > { %v2352_v32 = vsub.f32 %v4076_v16, %v2349_v33 }
0x15cf   : > { %v2347_v24 = vpop.xlane.xlu0 %2346 }
0x15d0   : > { %v2350_v36 = vmul.f32 0.03125, %v2347_v24  ;;  %v2355_v26 = vmul.f32 %v2352_v32, %v2352_v32 }
0x15d2   : > { %v2353_v34 = vsub.f32 %v4082_v14, %v2350_v36  ;;  %v2360_v17 = vsel %vm209_vm13, %v2355_v26, 0.0 }
0x15d3   : > { %2361 = vadd.xlane.f32.xlu1 %v2360_v17  ;;  %v2359_v45 = vpop.xlane.xlu0 %2358 }
0x15d4   : > { %v2356_v25 = vmul.f32 %v2353_v34, %v2353_v34  ;;  %v2366_v49 = vmul.f32 0.03125, %v2359_v45 }
0x15d6   : > { %v2363_v58 = vsel %vm216_vm14, %v2356_v25, 0.0  ;;  %v2369_v57 = vadd.f32 1e-05, %v2366_v49 }
0x15d7   : > { %2364 = vadd.xlane.f32.xlu0 %v2363_v58 }
0x15d8   : > { %3359 = vrsqrt.f32 %v2369_v57 }
0x15e5   : > { %v3360_v63 = vpop.eup %3359 }
0x15e6   : > { %v2375_v1 = vmul.f32 %v3360_v63, %v2351_v11 }
0x15e8   : > { %v2384_v48 = vmul.f32 %v2881_v4, %v2375_v1 }
0x15ea   : > { %v2393_v39 = vadd.f32 %v2882_v5, %v2384_v48 }
0x1604   : > { %492 = vxpose.xlu0.b32.start [1/2] (short) (narrow) %v3785_v59, 16 }
0x1606   : > { %784 = vxpose.xlu1.b32.start [1/2] (short) (narrow) %v3818_v42, 16 }
0x1608   : > { %493 = vxpose.xlu0.b32.end [2/2] (short) (narrow) %v3787_v60, 16 }
0x160a   : > { %785 = vxpose.xlu1.b32.end [2/2] (short) (narrow) %v3820_v43, 16 }
0x160c   : > { %1030 = vxpose.xlu0.b32.start [1/2] (short) (narrow) %v3869_v37, 16 }
0x160e   : > { %1480 = vxpose.xlu1.b32.start [1/2] (short) (narrow) %v3978_v9, 16 }
0x1610   : > { %1031 = vxpose.xlu0.b32.end [2/2] (short) (narrow) %v3871_v38, 16 }
0x1612   : > { %1481 = vxpose.xlu1.b32.end [2/2] (short) (narrow) %v3980_v10, 16 }
0x1614   : > { %1276 = vxpose.xlu0.b32.start [1/2] (short) (narrow) %v3923_v50, 16 }
0x1616   : > { %2002 = vxpose.xlu1.b32.start [1/2] (short) (narrow) %v4029_v44, 16 }
0x1618   : > { %1277 = vxpose.xlu0.b32.end [2/2] (short) (narrow) %v3925_v51, 16 }
0x161a   : > { %2003 = vxpose.xlu1.b32.end [2/2] (short) (narrow) %v4031_v46, 16 }
0x161c   : > { %1762 = vxpose.xlu0.b32.start [1/2] (short) (narrow) %v3989_v21, 16 }
0x161e   : > { %2242 = vxpose.xlu1.b32.start [1/2] (short) (narrow) %v4066_v55, 16 }
0x1620   : > { %1763 = vxpose.xlu0.b32.end [2/2] (short) (narrow) %v3991_v22, 16 }
0x1622   : > { %2243 = vxpose.xlu1.b32.end [2/2] (short) (narrow) %v4068_v62, 16 }
0x165c   : > { %v2362_v56 = vpop.xlane.xlu1 %2361 }
0x165d   : > { %v2367_v0 = vmul.f32 0.03125, %v2362_v56 }
0x165f   : > { %v2370_v52 = vadd.f32 1e-05, %v2367_v0 }
0x1660   : > { %v2365_v3 = vpop.xlane.xlu0 %2364 }
0x1661   : > { %3361 = vrsqrt.f32 %v2370_v52  ;;  %v2368_v53 = vmul.f32 0.03125, %v2365_v3 }
0x1663   : > { %v2371_v54 = vadd.f32 1e-05, %v2368_v53 }
0x1665   : > { %3363 = vrsqrt.f32 %v2371_v54 }
0x166e   : > { %v3362_v47 = vpop.eup %3361 }
0x166f   : > { %v2376_v61 = vmul.f32 %v3362_v47, %v2352_v32 }
0x1671   : > { %v2385_v35 = vmul.f32 %v2881_v4, %v2376_v61 }
0x1672   : > { %v3364_v6 = vpop.eup %3363 }
0x1673   : > { %v2377_v7 = vmul.f32 %v3364_v6, %v2353_v34  ;;  %v2394_v8 = vadd.f32 %v2882_v5, %v2385_v35 }
0x1675   : > { %v2402_v12 = vpack.c.bf16 %v2394_v8, %v2393_v39  ;;  %v2386_v20 = vmul.f32 %v2881_v4, %v2377_v7 }
0x1677   : > { %3147 = vmatprep.mubr.msk.bf16.mxu1 %vm209_vm13, %v2402_v12  ;;  %v2395_v2 = vadd.f32 %v2882_v5, %v2386_v20 }
0x1679   : > { %v2403_v11 = vpack.c.bf16 %v2395_v2, %v2395_v2 }
0x167b   : > { %3148 = vmatmul.mubr.msk.bf16.vlgmr.msra.gmra.mxu1 %vm209_vm13, %v2403_v11 }
0x1680   : > { %v508_v19 = vpop.trf.xlu0 }
0x1681   : > { %v524_v27 = vadd.f32 %v508_v19, %v3785_v59 }
0x1682   : > { %v800_v18 = vpop.trf.xlu1 }
0x1683   : > { %v4123_v33 = vmul.f32 %v4447_v13, %v524_v27  ;;  %v816_v32 = vadd.f32 %v800_v18, %v3818_v42 }
0x1684   : > { %v509_v24 = vpop.trf.xlu0 }
0x1685   : > { %v4127_v36 = vmul.f32 %v4447_v13, %v816_v32  ;;  %v525_v26 = vadd.f32 %v509_v24, %v3787_v60  ;;  %v528_v34 = vsel %vm416_vm1, %v4123_v33, 0.0 }
0x1686   : > { %v801_v17 = vpop.trf.xlu1  ;;  %529 = vadd.xlane.f32.xlu1 %v528_v34 }
0x1687   : > { %v4133_v25 = vmul.f32 %v4446_v15, %v525_v26  ;;  %v817_v59 = vadd.f32 %v801_v17, %v3820_v43  ;;  %v820_v58 = vsel %vm416_vm1, %v4127_v36, 0.0 }
0x1688   : > { %821 = vadd.xlane.f32.xlu0 %v820_v58  ;;  %v1046_v42 = vpop.trf.xlu0 }
0x1689   : > { %v4139_v40 = vmul.f32 %v4446_v15, %v817_v59  ;;  %v531_v60 = vsel %vm420_vm2, %v4133_v25, 0.0  ;;  %v1062_v57 = vadd.f32 %v1046_v42, %v3869_v37 }
0x168a   : > { %v1496_v41 = vpop.trf.xlu1  ;;  %532 = vadd.xlane.f32.xlu1 %v531_v60  ;;  %v4145_v49 = vadd.f32 %v531_v60, %v528_v34 }
0x168b   : > { %v823_v45 = vsel %vm420_vm2, %v4139_v40, 0.0  ;;  %v4152_v3 = vmul.f32 %v4447_v13, %v1062_v57  ;;  %v1512_v37 = vadd.f32 %v1496_v41, %v3978_v9 }
0x168c   : > { %824 = vadd.xlane.f32.xlu0 %v823_v45  ;;  %v1047_v43 = vpop.trf.xlu0  ;;  %v4149_v0 = vadd.f32 %v823_v45, %v820_v58 }
0x168d   : > { %v1063_v53 = vadd.f32 %v1047_v43, %v3871_v38  ;;  %v1066_v38 = vsel %vm416_vm1, %v4152_v3, 0.0  ;;  %v4175_v35 = vmul.f32 %v4447_v13, %v1512_v37  ;;  %v3286_v37 = vld [vmem:[%s2507_s0 + $0x10] sm:$0xff]  }
0x168e   : > { %v1497_v56 = vpop.trf.xlu1  ;;  %541 = vadd.xlane.f32.xlu1 %v4145_v49 }
0x168f   : > { %v1513_v1 = vadd.f32 %v1497_v56, %v3980_v10  ;;  %v4160_v47 = vmul.f32 %v4446_v15, %v1063_v53  ;;  %v1516_v11 = vsel %vm416_vm1, %v4175_v35, 0.0  ;;  %v3282_v53 = vld [vmem:[%s2507_s0 + $0x30] sm:$0xff]  }
0x1690   : > { %v1292_v52 = vpop.trf.xlu0 }
0x1691   : > { %v1308_v54 = vadd.f32 %v1292_v52, %v3923_v50  ;;  %v4169_v5 = vmul.f32 %v4446_v15, %v1513_v1  ;;  %v1069_v7 = vsel %vm420_vm2, %v4160_v47, 0.0  ;;  %v3281_v52 = vld [vmem:[%s2507_s0 + $0x38] sm:$0xff]  }
0x1692   : > { %v2018_v63 = vpop.trf.xlu1  ;;  %833 = vadd.xlane.f32.xlu1 %v4149_v0  ;;  %v4188_v2 = vadd.f32 %v1069_v7, %v1066_v38  ;;  %3151 = vmatprep.subr.bf16.mxu0 %v3281_v52  ;;  %v3285_v1 = vld [vmem:[%s2507_s0 + $0x18] sm:$0xff]  }
0x1693   : > { %v4163_v61 = vmul.f32 %v4447_v13, %v1308_v54  ;;  %v1519_v12 = vsel %vm420_vm2, %v4169_v5, 0.0  ;;  %v2034_v59 = vadd.f32 %v2018_v63, %v4029_v44  ;;  %3152 = vmatpush3.bf16.msra.mxu0 %v3281_v52  ;;  %v3283_v54 = vld [vmem:[%s2507_s0 + $0x28] sm:$0xff]   ;;  %v3284_v63 = vld [vmem:[%s2507_s0 + $0x20] sm:$0xff]  }
0x1694   : > { %v1293_v4 = vpop.trf.xlu0  ;;  %v4194_v27 = vadd.f32 %v1519_v12, %v1516_v11  ;;  %3153 = vmatprep.subr.bf16.mxu0 %v3282_v53 }
0x1695   : > { %v1309_v48 = vadd.f32 %v1293_v4, %v3925_v51  ;;  %v1312_v6 = vsel %vm416_vm1, %v4163_v61, 0.0  ;;  %v3287_v4 = vld [vmem:[%s2507_s0 + $0x8] sm:$0xff]  }
0x1696   : > { %v2019_v50 = vpop.trf.xlu1  ;;  %1067 = vadd.xlane.f32.xlu1 %v1066_v38  ;;  %v535_v38 = vrot.slane %v4145_v49, 4 }
0x1697   : > { %v4172_v10 = vmul.f32 %v4446_v15, %v1309_v48  ;;  %v2035_v26 = vadd.f32 %v2019_v50, %v4031_v46  ;;  %v4219_v46 = vmul.f32 %v4447_v13, %v2034_v59  ;;  %3154 = vmatpush3.bf16.msra.mxu0 %v3282_v53  ;;  %v3288_v48 = vld [vmem:[%s2507_s0] sm:$0xff]   ;;  %v827_v50 = vrot.slane %v4149_v0, 4  ;;  %s1097_s0 = sld [smem:[#allocation3 + %s1096_s28]] }
0x1698   : > { %v1778_v9 = vpop.trf.xlu0  ;;  %3155 = vmatprep.subr.bf16.mxu0 %v3283_v54 }
0x1699   : > { %v1315_v51 = vsel %vm420_vm2, %v4172_v10, 0.0 }
0x169a   : > { %v2258_v39 = vpop.trf.xlu1  ;;  %1070 = vadd.xlane.f32.xlu1 %v1069_v7  ;;  %v4183_v8 = vadd.f32 %v1315_v51, %v1312_v6 }
0x169b   : > { %v2274_v20 = vadd.f32 %v2258_v39, %v4066_v55  ;;  %v1794_v55 = vadd.f32 %v1778_v9, %v3989_v21  ;;  %3156 = vmatpush3.bf16.msra.mxu0 %v3283_v54  ;;  %v536_v9 = vadd.f32 %v535_v38, %v4145_v49 }
0x169c   : > { %1325 = vadd.xlane.f32.xlu0 %v4183_v8  ;;  %v1779_v19 = vpop.trf.xlu0  ;;  %3157 = vmatprep.subr.bf16.mxu0 %v3284_v63 }
0x169d   : > { %v4197_v18 = vmul.f32 %v4447_v13, %v2274_v20  ;;  %v1795_v32 = vadd.f32 %v1779_v19, %v3991_v22  ;;  %v4210_v58 = vmul.f32 %v4447_v13, %v1794_v55  ;;  %v4213_v22 = vmul.f32 %v4446_v15, %v2035_v26 }
0x169e   : > { %1079 = vadd.xlane.f32.xlu1 %v4188_v2  ;;  %v2259_v17 = vpop.trf.xlu1  ;;  %v1073_v20 = vrot.slane %v4188_v2, 4 }
0x169f   : > { %v2278_v24 = vsel %vm416_vm1, %v4197_v18, 0.0  ;;  %v4206_v34 = vmul.f32 %v4446_v15, %v1795_v32  ;;  %v2275_v42 = vadd.f32 %v2259_v17, %v4068_v62  ;;  %v1798_v60 = vsel %vm416_vm1, %v4210_v58, 0.0  ;;  %3158 = vmatpush3.bf16.msra.mxu0 %v3284_v63 }
0x16a0   : > { %1529 = vadd.xlane.f32.xlu0 %v4194_v27  ;;  %v2041_v41 = vsel %vm420_vm2, %v4213_v22, 0.0  ;;  %v2038_v62 = vsel %vm416_vm1, %v4219_v46, 0.0  ;;  %3159 = vmatprep.subr.bf16.mxu0 %v3285_v1  ;;  %v1074_v32 = vadd.f32 %v1073_v20, %v4188_v2 }
0x16a1   : > { %v1801_v21 = vsel %vm420_vm2, %v4206_v34, 0.0  ;;  %v4228_v45 = vmul.f32 %v4446_v15, %v2275_v42  ;;  %v4233_v43 = vadd.f32 %v2041_v41, %v2038_v62 }
0x16a2   : > { %1313 = vadd.xlane.f32.xlu1 %v1312_v6  ;;  %v4223_v44 = vadd.f32 %v1801_v21, %v1798_v60  ;;  %v828_v6 = vadd.f32 %v827_v50, %v4149_v0  ;;  %v1075_v49 = vrot.slane %v1074_v32, 2 }
0x16a3   : > { %v2281_v57 = vsel %vm420_vm2, %v4228_v45, 0.0  ;;  %3160 = vmatpush3.bf16.msra.mxu0 %v3285_v1 }
0x16a4   : > { %2279 = vadd.xlane.f32.xlu0 %v2278_v24  ;;  %v4238_v56 = vadd.f32 %v2281_v57, %v2278_v24  ;;  %3161 = vmatprep.subr.bf16.mxu0 %v3286_v37  ;;  %v829_v7 = vrot.slane %v828_v6, 2 }
0x16a6   : > { %1316 = vadd.xlane.f32.xlu1 %v1315_v51  ;;  %v537_v51 = vrot.slane %v536_v9, 2 }
0x16a7   : > { %3162 = vmatpush3.bf16.msra.mxu0 %v3286_v37 }
0x16a8   : > { %3163 = vmatprep.subr.bf16.mxu0 %v3287_v4  ;;  %v538_v39 = vadd.f32 %v537_v51, %v536_v9 }
0x16aa   : > { %1517 = vadd.xlane.f32.xlu1 %v1516_v11  ;;  %v539_v11 = vrot.slane %v538_v39, 1 }
0x16ab   : > { %3164 = vmatpush3.bf16.msra.mxu0 %v3287_v4 }
0x16ac   : > { %3165 = vmatprep.subr.bf16.mxu0 %v3288_v48  ;;  %v540_v55 = vadd.f32 %v539_v11, %v538_v39 }
0x16ae   : > { %1811 = vadd.xlane.f32.xlu1 %v4223_v44 }
0x16af   : > { %3166 = vmatpush3.bf16.msra.mxu0 %v3288_v48  ;;  %v1523_v48 = vrot.slane %v4194_v27, 4 }
0x16b1   : > { %v1524_v20 = vadd.f32 %v1523_v48, %v4194_v27 }
0x16b2   : > { %2051 = vadd.xlane.f32.xlu1 %v4233_v43 }
0x16b6   : > { %2291 = vadd.xlane.f32.xlu1 %v4238_v56 }
0x16ba   : > { %1520 = vadd.xlane.f32.xlu1 %v1519_v12  ;;  %v830_v12 = vadd.f32 %v829_v7, %v828_v6 }
0x16bc   : > { %v831_v19 = vrot.slane %v830_v12, 1 }
0x16be   : > { %1799 = vadd.xlane.f32.xlu1 %v1798_v60  ;;  %v832_v17 = vadd.f32 %v831_v19, %v830_v12 }
0x16c2   : > { %1802 = vadd.xlane.f32.xlu1 %v1801_v21 }
0x16c6   : > { %2039 = vadd.xlane.f32.xlu1 %v2038_v62  ;;  %v1076_v62 = vadd.f32 %v1075_v49, %v1074_v32 }
0x16c8   : > { %v1077_v54 = vrot.slane %v1076_v62, 1 }
0x16ca   : > { %2042 = vadd.xlane.f32.xlu1 %v2041_v41  ;;  %v1078_v50 = vadd.f32 %v1077_v54, %v1076_v62 }
0x16ce   : > { %2282 = vadd.xlane.f32.xlu1 %v2281_v57  ;;  %v1319_v57 = vrot.slane %v4183_v8, 4 }
0x16d0   : > { %v1320_v63 = vadd.f32 %v1319_v57, %v4183_v8 }
0x16d2   : > { %v1321_v6 = vrot.slane %v1320_v63, 2 }
0x16d4   : > { %v1322_v32 = vadd.f32 %v1321_v6, %v1320_v63 }
0x170f   : > { %v530_v24 = vpop.xlane.xlu1 %529 }
0x1710   : > { %v4251_v26 = vmul.f32 %v540_v55, %v530_v24 }
0x1711   : > { %v822_v59 = vpop.xlane.xlu0 %821 }
0x1712   : > { %v4253_v21 = vmul.f32 %v832_v17, %v822_v59  ;;  %v1525_v59 = vrot.slane %v1524_v20, 2 }
0x1713   : > { %v533_v0 = vpop.xlane.xlu1 %532 }
0x1714   : > { %v4255_v42 = vmul.f32 %v540_v55, %v533_v0 }
0x1715   : > { %v825_v60 = vpop.xlane.xlu0 %824 }
0x1716   : > { %v4257_v41 = vmul.f32 %v832_v17, %v825_v60  ;;  %v1323_v60 = vrot.slane %v1322_v32, 1 }
0x1717   : > { %v542_v52 = vpop.xlane.xlu1 %541 }
0x1718   : > { %v543_v2 = vrot.slane %v542_v52, 4  ;;  %v1324_v63 = vadd.f32 %v1323_v60, %v1322_v32 }
0x171a   : > { %v544_v53 = vadd.f32 %v543_v2, %v542_v52 }
0x171b   : > { %v834_v1 = vpop.xlane.xlu1 %833 }
0x171c   : > { %v545_v37 = vrot.slane %v544_v53, 2  ;;  %v835_v4 = vrot.slane %v834_v1, 4 }
0x171e   : > { %v836_v38 = vadd.f32 %v835_v4, %v834_v1  ;;  %v546_v9 = vadd.f32 %v545_v37, %v544_v53  ;;  %v1526_v53 = vadd.f32 %v1525_v59, %v1524_v20 }
0x171f   : > { %v1068_v51 = vpop.xlane.xlu1 %1067 }
0x1720   : > { %v837_v7 = vrot.slane %v836_v38, 2  ;;  %v4262_v39 = vmul.f32 %v1078_v50, %v1068_v51  ;;  %v547_v12 = vrot.slane %v546_v9, 1  ;;  %v1527_v6 = vrot.slane %v1526_v53, 1 }
0x1722   : > { %v548_v11 = vadd.f32 %v547_v12, %v546_v9  ;;  %v838_v19 = vadd.f32 %v837_v7, %v836_v38 }
0x1723   : > { %v1071_v8 = vpop.xlane.xlu1 %1070 }
0x1724   : > { %v4265_v55 = vmul.f32 %v1078_v50, %v1071_v8  ;;  %3171 = vpush %v548_v11  ;;  %v839_v24 = vrot.slane %v838_v19, 1  ;;  %v4271_v8 = vadd.f32 %v1527_v6, %v1526_v53 }
0x1725   : > { %v1326_v17 = vpop.xlane.xlu0 %1325 }
0x1726   : > { %v1327_v49 = vrot.slane %v1326_v17, 4  ;;  %v840_v0 = vadd.f32 %v839_v24, %v838_v19 }
0x1727   : > { %v1080_v62 = vpop.xlane.xlu1 %1079 }
0x1728   : > { %v1328_v57 = vadd.f32 %v1327_v49, %v1326_v17  ;;  %v1081_v52 = vrot.slane %v1080_v62, 4  ;;  %3173 = vpush %v840_v0 }
0x1729   : > { %v1530_v2 = vpop.xlane.xlu0 %1529 }
0x172a   : > { %v1329_v27 = vrot.slane %v1328_v57, 2  ;;  %v1082_v54 = vadd.f32 %v1081_v52, %v1080_v62  ;;  %v1531_v1 = vrot.slane %v1530_v2, 4 }
0x172b   : > { %v1314_v37 = vpop.xlane.xlu1 %1313 }
0x172c   : > { %v1083_v4 = vrot.slane %v1082_v54, 2  ;;  %v1532_v48 = vadd.f32 %v1531_v1, %v1530_v2  ;;  %v4267_v38 = vmul.f32 %v1324_v63, %v1314_v37  ;;  %v1330_v50 = vadd.f32 %v1329_v27, %v1328_v57  ;;  %v2884_v57 = vld [vmem:[%s2404_s2] ss:$0 sm:$0xff] }
0x172e   : > { %v1533_v9 = vrot.slane %v1532_v48, 2  ;;  %v1084_v51 = vadd.f32 %v1083_v4, %v1082_v54  ;;  %v1331_v12 = vrot.slane %v1330_v50, 1 }
0x172f   : > { %v1317_v7 = vpop.xlane.xlu1 %1316 }
0x1730   : > { %v4269_v11 = vmul.f32 %v1324_v63, %v1317_v7  ;;  %v1085_v19 = vrot.slane %v1084_v51, 1  ;;  %v1534_v20 = vadd.f32 %v1533_v9, %v1532_v48  ;;  %v1332_v59 = vadd.f32 %v1331_v12, %v1330_v50 }
0x1732   : > { %v1086_v24 = vadd.f32 %v1085_v19, %v1084_v51  ;;  %v1535_v32 = vrot.slane %v1534_v20, 1 }
0x1733   : > { %v1518_v17 = vpop.xlane.xlu1 %1517 }
0x1734   : > { %v4274_v49 = vmul.f32 %v4271_v8, %v1518_v17  ;;  %3175 = vpush %v1086_v24  ;;  %v1536_v0 = vadd.f32 %v1535_v32, %v1534_v20 }
0x1735   : > { %3177 = vpush %v1332_v59 }
0x1736   : > { %3179 = vpush %v1536_v0 }
0x1737   : > { %v1812_v60 = vpop.xlane.xlu1 %1811 }
0x1738   : > { %v1813_v62 = vrot.slane %v1812_v60, 4 }
0x173a   : > { %v1814_v52 = vadd.f32 %v1813_v62, %v1812_v60 }
0x173b   : > { %v2052_v2 = vpop.xlane.xlu1 %2051  ;;  %v3149_v53 = vpop.f32.mrf.mxu1 }
0x173c   : > { %v1815_v27 = vrot.slane %v1814_v52, 2  ;;  %v2053_v54 = vrot.slane %v2052_v2, 4  ;;  %v2473_v1 = vadd.f32 %v3149_v53, %v2884_v57 }
0x173d   : > { %v2464_v63 = vpop.f32.mrf.mxu1 }
0x173e   : > { %v2054_v37 = vadd.f32 %v2053_v54, %v2052_v2  ;;  %v2480_v4 = vmul.f32 %v2473_v1, %v2473_v1  ;;  %v2465_v48 = vadd.f32 %v2884_v57, %v2464_v63  ;;  %v1816_v50 = vadd.f32 %v1815_v27, %v1814_v52 }
0x173f   : > { %v2292_v9 = vpop.xlane.xlu1 %2291  ;;  %v3150_v6 = vpop.f32.mrf.mxu1 }
0x1740   : > { %v2055_v51 = vrot.slane %v2054_v37, 2  ;;  %v2483_v7 = vmul.f32 %v2480_v4, %v2473_v1  ;;  %v2478_v12 = vmul.f32 %v2465_v48, %v2465_v48  ;;  %v2293_v19 = vrot.slane %v2292_v9, 4 }
0x1741   : > { %v2467_v20 = vpop.f32.mrf.mxu1  ;;  %v1817_v24 = vrot.slane %v1816_v50, 1 }
0x1742   : > { %v2486_v32 = vmul.f32 0.044715, %v2483_v7  ;;  %v2481_v17 = vmul.f32 %v2478_v12, %v2465_v48  ;;  %v2294_v59 = vadd.f32 %v2293_v19, %v2292_v9  ;;  %v2468_v0 = vadd.f32 %v2884_v57, %v2467_v20 }
0x1743   : > { %v1818_v60 = vadd.f32 %v1817_v24, %v1816_v50  ;;  %v2056_v62 = vadd.f32 %v2055_v51, %v2054_v37 }
0x1744   : > { %v2489_v53 = vadd.f32 %v2486_v32, %v2473_v1  ;;  %v2484_v13 = vmul.f32 0.044715, %v2481_v17  ;;  %v2295_v2 = vrot.slane %v2294_v59, 2  ;;  %v2479_v54 = vmul.f32 %v2468_v0, %v2468_v0 }
0x1745   : > { %3181 = vpush %v1818_v60  ;;  %v2057_v52 = vrot.slane %v2056_v62, 1 }
0x1746   : > { %v2492_v27 = vmul.f32 0.7978846, %v2489_v53  ;;  %v2487_v63 = vadd.f32 %v2484_v13, %v2465_v48  ;;  %v2482_v6 = vmul.f32 %v2479_v54, %v2468_v0  ;;  %v2296_v4 = vadd.f32 %v2295_v2, %v2294_v59 }
0x1747   : > { %v2058_v15 = vadd.f32 %v2057_v52, %v2056_v62 }
0x1748   : > { %3365 = vtanh.f32 %v2492_v27  ;;  %v2490_v16 = vmul.f32 0.7978846, %v2487_v63  ;;  %v2485_v23 = vmul.f32 0.044715, %v2482_v6  ;;  %v2297_v7 = vrot.slane %v2296_v4, 1 }
0x1749   : > { %3183 = vpush %v2058_v15  ;;  %v4287_v27 = vstv %s558_s25  ;;  %s2702_s25 = sld [smem:[#allocation4]] (%p194_p5) }
0x174a   : > { %3367 = vtanh.f32 %v2490_v16  ;;  %v2488_v57 = vadd.f32 %v2485_v23, %v2468_v0  ;;  %v2298_v37 = vadd.f32 %v2297_v7, %v2296_v4 }
0x174c   : > { %v2491_v50 = vmul.f32 0.7978846, %v2488_v57  ;;  %3185 = vpush %v2298_v37  ;;  %v4295_v57 = vstv %s851_s14  ;;  %v1521_v37 = vpop.xlane.xlu1 %1520 }
0x174e   : > { %3369 = vtanh.f32 %v2491_v50 }
0x1755   : > { %v3366_v9 = vpop.eup %3365  ;;  %s3172_s23 = spop %3171 }
0x1756   : > { %v552_v51 = vstv %s3172_s23  ;;  %v2498_v13 = vadd.f32 1.0, %v3366_v9 }
0x1757   : > { %v3368_v12 = vpop.eup %3367  ;;  %3371 = vrcp.f32 %v552_v51 }
0x1758   : > { %v2496_v19 = vadd.f32 1.0, %v3368_v12  ;;  %v2501_v15 = vmul.f32 0.5, %v2498_v13 }
0x1759   : > { %s3174_s22 = spop %3173 }
0x175a   : > { %v844_v20 = vstv %s3174_s22  ;;  %v2499_v16 = vmul.f32 0.5, %v2496_v19  ;;  %v2504_v17 = vmul.f32 %v2501_v15, %v2473_v1 }
0x175b   : > { %v3370_v24 = vpop.eup %3369  ;;  %3373 = vrcp.f32 %v844_v20 }
0x175c   : > { %v2497_v23 = vadd.f32 1.0, %v3370_v24  ;;  %v2502_v59 = vmul.f32 %v2499_v16, %v2465_v48  ;;  %v2525_v53 = vpack.c.bf16 %v2504_v17, %v2504_v17  ;;  %v4312_v17 = vstv %s1097_s0 }
0x175e   : > { %v2500_v32 = vmul.f32 0.5, %v2497_v23 }
0x1760   : > { %v2503_v60 = vmul.f32 %v2500_v32, %v2468_v0 }
0x1762   : > { %v2524_v62 = vpack.c.bf16 %v2503_v60, %v2502_v59 }
0x1764   : > { %v3372_v2 = vpop.eup %3371  ;;  %3167 = vmatprep.mubr.bf16.mxu0 %v2524_v62 }
0x1765   : > { %v554_v54 = vmul.f32 %v3372_v2, %v4251_v26  ;;  %v555_v52 = vmul.f32 %v3372_v2, %v4255_v42  ;;  %s3176_s13 = spop %3175  ;;  %3168 = vmatmul.mubr.bf16.vlgmr.msra.gmra.mxu0 %v2525_v53  ;;  %v4318_v2 = vstv %s1343_s30 }
0x1766   : > { %v1090_v63 = vstv %s3176_s13  ;;  %s3178_s26 = spop %3177 }
0x1767   : > { %v556_v1 = vsub.f32 %v4123_v33, %v554_v54  ;;  %v557_v48 = vsub.f32 %v4133_v25, %v555_v52  ;;  %3375 = vrcp.f32 %v1090_v63  ;;  %v1336_v0 = vstv %s3178_s26  ;;  %s3180_s27 = spop %3179 }
0x1768   : > { %v3374_v6 = vpop.eup %3373  ;;  %3377 = vrcp.f32 %v1336_v0  ;;  %v1540_v50 = vstv %s3180_s27 }
0x1769   : > { %v560_v26 = vmul.f32 %v4287_v27, %v556_v1  ;;  %v561_v42 = vmul.f32 %v4287_v27, %v557_v48  ;;  %v846_v4 = vmul.f32 %v3374_v6, %v4253_v21  ;;  %v847_v7 = vmul.f32 %v3374_v6, %v4257_v41 }
0x176a   : > { %v1805_v41 = vrot.slane %v4223_v44, 4  ;;  %3379 = vrcp.f32 %v1540_v50 }
0x176b   : > { %v848_v33 = vsub.f32 %v4127_v36, %v846_v4  ;;  %v849_v25 = vsub.f32 %v4139_v40, %v847_v7  ;;  %v562_v9 = vadd.f32 %v3513_v31, %v560_v26  ;;  %v563_v51 = vadd.f32 %v3509_v30, %v561_v42  ;;  %v1800_v36 = vpop.xlane.xlu1 %1799 }
0x176c   : > { %v2045_v40 = vrot.slane %v4233_v43, 4  ;;  %v1806_v20 = vadd.f32 %v1805_v41, %v4223_v44  ;;  %v2285_v30 = vrot.slane %v4238_v56, 4 }
0x176d   : > { %v853_v12 = vmul.f32 %v4295_v57, %v848_v33  ;;  %v854_v21 = vmul.f32 %v4295_v57, %v849_v25 }
0x176e   : > { %v2046_v15 = vadd.f32 %v2045_v40, %v4233_v43  ;;  %v1807_v32 = vrot.slane %v1806_v20, 2 }
0x176f   : > { %v855_v13 = vadd.f32 %v853_v12, %v562_v9  ;;  %v856_v19 = vadd.f32 %v854_v21, %v563_v51  ;;  %v1803_v62 = vpop.xlane.xlu1 %1802 }
0x1770   : > { %v2047_v63 = vrot.slane %v2046_v15, 2 }
0x1772   : > { %v2048_v4 = vadd.f32 %v2047_v63, %v2046_v15 }
0x1773   : > { %v2040_v6 = vpop.xlane.xlu1 %2039 }
0x1774   : > { %v3376_v24 = vpop.eup %3375  ;;  %v2049_v51 = vrot.slane %v2048_v4, 1 }
0x1775   : > { %v3378_v31 = vpop.eup %3377  ;;  %v1092_v23 = vmul.f32 %v3376_v24, %v4262_v39  ;;  %v1093_v16 = vmul.f32 %v3376_v24, %v4265_v55 }
0x1776   : > { %v1338_v59 = vmul.f32 %v3378_v31, %v4267_v38  ;;  %v1339_v60 = vmul.f32 %v3378_v31, %v4269_v11  ;;  %s3182_s20 = spop %3181  ;;  %v2286_v38 = vadd.f32 %v2285_v30, %v4238_v56  ;;  %v1808_v11 = vadd.f32 %v1807_v32, %v1806_v20  ;;  %v2280_v32 = vpop.xlane.xlu0 %2279 }
0x1777   : > { %v1094_v44 = vsub.f32 %v4152_v3, %v1092_v23  ;;  %v1095_v53 = vsub.f32 %v4160_v47, %v1093_v16  ;;  %v1822_v43 = vstv %s3182_s20  ;;  %v2043_v21 = vpop.xlane.xlu1 %2042  ;;  %v2050_v20 = vadd.f32 %v2049_v51, %v2048_v4 }
0x1778   : > { %v1340_v39 = vsub.f32 %v4163_v61, %v1338_v59  ;;  %v1341_v55 = vsub.f32 %v4172_v10, %v1339_v60  ;;  %3381 = vrcp.f32 %v1822_v43  ;;  %v3380_v61 = vpop.eup %3379  ;;  %v1539_v10 = vmul.f32 %v4271_v8, %v1521_v37 }
0x1779   : > { %v1099_v54 = vmul.f32 %v4312_v17, %v1094_v44  ;;  %v1100_v52 = vmul.f32 %v4312_v17, %v1095_v53  ;;  %v2287_v56 = vrot.slane %v2286_v38, 2  ;;  %v1809_v7 = vrot.slane %v1808_v11, 1 }
0x177a   : > { %v1345_v3 = vmul.f32 %v4318_v2, %v1340_v39  ;;  %s3184_s21 = spop %3183  ;;  %v1346_v48 = vmul.f32 %v4318_v2, %v1341_v55  ;;  %v1542_v33 = vmul.f32 %v3380_v61, %v4274_v49  ;;  %v1543_v25 = vmul.f32 %v3380_v61, %v1539_v10  ;;  %v2899_v61 = vld [vmem:[%s2625_s24] ss:$0 sm:$0xff] }
0x177b   : > { %v1101_v47 = vadd.f32 %v1099_v54, %v855_v13  ;;  %v1102_v1 = vadd.f32 %v1100_v52, %v856_v19  ;;  %v2062_v0 = vstv %s3184_s21  ;;  %v2288_v9 = vadd.f32 %v2287_v56, %v2286_v38  ;;  %v2283_v59 = vpop.xlane.xlu1 %2282  ;;  %v4456_v56 = vld [vmem:[#allocation14_spill] sm:$0xff] }
0x177c   : > { %3383 = vrcp.f32 %v2062_v0  ;;  %v1810_v12 = vadd.f32 %v1809_v7, %v1808_v11  ;;  %v1544_v8 = vsub.f32 %v4175_v35, %v1542_v33  ;;  %v1545_v37 = vsub.f32 %v4169_v5, %v1543_v25 }
0x177d   : > { %v4328_v31 = vadd.f32 %v1345_v3, %v1101_v47   ;;  %v4330_v30 = vadd.f32 %v1346_v48, %v1102_v1   ;;  %s3186_s2 = spop %3185  ;;  %v2289_v40 = vrot.slane %v2288_v9, 1  ;;  %v2060_v15 = vmul.f32 %v2050_v20, %v2040_v6 }
0x177e   : > { %v2302_v50 = vstv %s3186_s2  ;;  %v1820_v41 = vmul.f32 %v1810_v12, %v1800_v36  ;;  %v1821_v13 = vmul.f32 %v1810_v12, %v1803_v62  ;;  %v1546_v24 = vmul.f32 %v1544_v8, %v4287_v27 }
0x177f   : > { %v4452_v26 = vmov %v4328_v31  ;;  %v4453_v42 = vmov %v4330_v30  ;;  %3385 = vrcp.f32 %v2302_v50  ;;  %v1547_v49 = vmul.f32 %v1545_v37, %v4287_v27 }
0x1780   : > { %v2061_v23 = vmul.f32 %v2050_v20, %v2043_v21  ;;  %v2290_v36 = vadd.f32 %v2289_v40, %v2288_v9  ;;  %v1548_v44 = vadd.f32 %v3505_v29, %v1546_v24  ;;  %v2703_v12 = vstv (%p194_p5), %s2702_s25 }
0x1781   : > { %v1549_v53 = vadd.f32 %v3501_v28, %v1547_v49  ;;  %v2705_v21 = vadd.f32 (%p194_p5), %v2703_v12, %v4453_v42 }
0x1782   : > { %v2300_v39 = vmul.f32 %v2290_v36, %v2280_v32  ;;  %v2301_v55 = vmul.f32 %v2290_v36, %v2283_v59 }
0x1783   :  { %v2903_v8 = vmul.f32 (%p194_p5), -1.442695, %v2705_v21 }
0x1785   : > { %v3382_v19 = vpop.eup %3381  ;;  %3387 = vpow2.f32 (%p194_p5), %v2903_v8 }
0x1786   : > { %v1824_v31 = vmul.f32 %v3382_v19, %v1820_v41  ;;  %v1825_v30 = vmul.f32 %v3382_v19, %v1821_v13  ;;  %v2704_v13 = vadd.f32 (%p194_p5), %v2703_v12, %v4452_v26 }
0x1788   : > { %v1826_v35 = vsub.f32 %v4210_v58, %v1824_v31  ;;  %v1827_v5 = vsub.f32 %v4206_v34, %v1825_v30  ;;  %v4460_v30 = vmov %v4453_v42  ;;  %v4461_v31 = vmov %v4452_v26 }
0x1789   : > { %v3384_v16 = vpop.eup %3383  ;;  %v2902_v19 = vmul.f32 (%p194_p5), -1.442695, %v2704_v13 }
0x178a   : > { %v2064_v60 = vmul.f32 %v3384_v16, %v2060_v15  ;;  %v2065_v62 = vmul.f32 %v3384_v16, %v2061_v23  ;;  %v1828_v27 = vmul.f32 %v1826_v35, %v4295_v57  ;;  %v1829_v43 = vmul.f32 %v1827_v5, %v4295_v57 }
0x178c   : > { %v2066_v54 = vsub.f32 %v4219_v46, %v2064_v60  ;;  %v2067_v52 = vsub.f32 %v4213_v22, %v2065_v62  ;;  %v3386_v58 = vpop.eup %3385  ;;  %v1830_v34 = vadd.f32 %v1828_v27, %v1548_v44  ;;  %v1831_v38 = vadd.f32 %v1829_v43, %v1549_v53 }
0x178d   : > { %v2304_v63 = vmul.f32 %v3386_v58, %v2300_v39  ;;  %v2305_v28 = vmul.f32 %v3386_v58, %v2301_v55 }
0x178e   : > { %v2068_v11 = vmul.f32 %v2066_v54, %v4312_v17  ;;  %v2069_v29 = vmul.f32 %v2067_v52, %v4312_v17 }
0x178f   : > { %v2306_v57 = vsub.f32 %v4197_v18, %v2304_v63  ;;  %v2307_v1 = vsub.f32 %v4228_v45, %v2305_v28 }
0x1790   : > { %v2070_v3 = vadd.f32 %v2068_v11, %v1830_v34  ;;  %v2071_v47 = vadd.f32 %v2069_v29, %v1831_v38 }
0x1791   : > { %v2308_v46 = vmul.f32 %v2306_v57, %v4318_v2  ;;  %v2309_v22 = vmul.f32 %v2307_v1, %v4318_v2  ;;  %v4457_v2 = vld [vmem:[#allocation15_spill] sm:$0xff] }
0x1793   : > { %v2310_v48 = vadd.f32 %v2308_v46, %v2070_v3   ;;  %v4351_v28 = vadd.f32 %v2309_v22, %v2071_v47  }
0x1795   : > { %v4454_v0 = vmov %v4351_v28  ;;  %v4459_v29 = vmov %v2310_v48  ;;  %v2737_v37 = vadd.f32 (%p194_p5), %v2703_v12, %v2310_v48  ;;  %v2900_v48 = vld [vmem:[%s4424_s16] ss:$0 sm:$0xff] (%p194_p5) }
0x1796   : > { %v4458_v28 = vmov %v4454_v0  ;;  %v2738_v53 = vadd.f32 (%p194_p5), %v2703_v12, %v4454_v0 }
0x1797   :  { %v2904_v41 = vmul.f32 (%p194_p5), -1.442695, %v2737_v37 }
0x1799   :  { %3389 = vpow2.f32 (%p194_p5), %v2904_v41 }
0x179a   :  { %3391 = vpow2.f32 (%p194_p5), %v2902_v19 }
0x1825   : > { %v3169_v17 = vpop.f32.mrf.mxu0 }
0x1826   : > { %v2624_v10 = vadd.f32 %v3169_v17, %v4082_v14  ;;  %v2901_v17 = vld [vmem:[%s4425_s17] ss:$0 sm:$0xff] (%p194_p5) }
0x1827   : > { %v2608_v6 = vpop.f32.mrf.mxu0 }
0x1828   : > { %v4358_v24 = vadd.f32 %v2899_v61, %v2624_v10   ;;  %v2622_v45 = vadd.f32 %v2608_v6, %v4456_v56 }
0x1829   : > { %v3170_v4 = vpop.f32.mrf.mxu0 }
0x182a   : > { %v4455_v18 = vmov %v4358_v24  ;;  %v2633_v7 = vadd.f32 %v2899_v61, %v2622_v45  }
0x182b   : > { %v2611_v33 = vpop.f32.mrf.mxu0  ;;  %v4462_v24 = vmov %v4455_v18  ;;  %v2646_v9 = vsel (%p194_p5), %vm216_vm14, %v4455_v18, 0.0 }
0x182c   : > { %v2623_v25 = vadd.f32 %v2611_v33, %v4457_v2  ;;  %196 = sbr.rel (!%p194_p5) target bundleno = 367 (0x16f), region = 113  ;;  %v2639_v14 = vsel (%p194_p5), %vm209_vm13, %v2633_v7, 0.0  ;;  %2647 = vadd.xlane.f32.xlu1 (%p194_p5), %v2646_v9  ;;  %v3388_v24 = vpop.eup (%p194_p5), %3387 }
0x182d   :  { %2640 = vadd.xlane.f32.xlu0 (%p194_p5), %v2639_v14  ;;  %v2713_v23 = vadd.f32 (%p194_p5), 1.0, %v3388_v24  ;;  %v3390_v16 = vpop.eup (%p194_p5), %3389 }
0x182e   : > { %v2634_v50 = vadd.f32 %v2899_v61, %v2623_v25   ;;  %v4464_v25 = vmov %v2633_v7  ;;  %v2745_v35 = vadd.f32 (%p194_p5), 1.0, %v3390_v16  ;;  %v3392_v26 = vpop.eup (%p194_p5), %3391 }
0x182f   :  { %3393 = vrcp.f32 (%p194_p5), %v2713_v23  ;;  %v2712_v36 = vadd.f32 (%p194_p5), 1.0, %v3392_v26 }
0x1830   : > { %v4463_v27 = vmov %v2634_v50  ;;  %v2642_v51 = vsel (%p194_p5), %vm209_vm13, %v2634_v50, 0.0  ;;  %3395 = vrcp.f32 (%p194_p5), %v2745_v35 }
0x1831   :  { %2643 = vadd.xlane.f32.xlu0 %v2642_v51  ;;  %3397 = vrcp.f32 %v2712_v36  ;;  %v2905_v27 = vmul.f32 -1.442695, %v2738_v53 }
0x1833   :  { %3399 = vpow2.f32 %v2905_v27 }
0x183c   :  { %v3394_v60 = vpop.eup %3393 }
0x183d   :  { %v3396_v62 = vpop.eup %3395 }
0x183e   :  { %v3398_v44 = vpop.eup %3397 }
0x1840   :  { %v3400_v52 = vpop.eup %3399 }
0x1841   :  { %v2746_v34 = vadd.f32 1.0, %v3400_v52 }
0x1843   :  { %3401 = vrcp.f32 %v2746_v34 }
0x1850   :  { %v3402_v38 = vpop.eup %3401 }
0x18b5   :  { %v2648_v43 = vpop.xlane.xlu1 %2647 }
0x18b6   :  { %v2641_v40 = vpop.xlane.xlu0 %2640  ;;  %v2652_v39 = vmul.f32 0.03125, %v2648_v43 }
0x18b7   :  { %v2650_v20 = vmul.f32 0.03125, %v2641_v40 }
0x18b8   :  { %v2655_v55 = vsub.f32 %v4455_v18, %v2652_v39 }
0x18b9   :  { %v2653_v49 = vsub.f32 %v2633_v7, %v2650_v20 }
0x18ba   :  { %v2644_v31 = vpop.xlane.xlu0 %2643  ;;  %v2658_v54 = vmul.f32 %v2655_v55, %v2655_v55 }
0x18bb   :  { %v2651_v30 = vmul.f32 0.03125, %v2644_v31  ;;  %v2656_v15 = vmul.f32 %v2653_v49, %v2653_v49 }
0x18bc   :  { %v2665_v58 = vsel %vm216_vm14, %v2658_v54, 0.0 }
0x18bd   :  { %v2654_v32 = vsub.f32 %v2634_v50, %v2651_v30  ;;  %v2659_v42 = vsel %vm209_vm13, %v2656_v15, 0.0 }
0x18be   :  { %2660 = vadd.xlane.f32.xlu1 %v2659_v42 }
0x18bf   :  { %v2657_v59 = vmul.f32 %v2654_v32, %v2654_v32 }
0x18c1   :  { %v2662_v5 = vsel %vm209_vm13, %v2657_v59, 0.0 }
0x18c2   :  { %2663 = vadd.xlane.f32.xlu0 %v2662_v5 }
0x18cf   :  { %2722 = vrot.lane.b32.xlu1 %v3394_v60, %s3547_s4 }
0x18d3   :  { %2753 = vrot.lane.b32.xlu1 %v3396_v62, %s3547_s4 }
0x18d8   :  { %2720 = vrot.lane.b32.xlu0 %v3398_v44, %s3547_s4 }
0x18f7   :  { %2666 = vadd.xlane.f32.xlu1 %v2665_v58 }
0x1908   :  { %2755 = vrot.lane.b32.xlu1 %v3402_v38, %s3547_s4 }
0x1947   :  { %v2661_v11 = vpop.xlane.xlu1 %2660 }
0x1948   :  { %v2668_v29 = vmul.f32 0.03125, %v2661_v11 }
0x194a   :  { %v2671_v63 = vadd.f32 1e-05, %v2668_v29 }
0x194b   :  { %v2723_v28 = vpop.permute.xlu1 %2722  ;;  %v2664_v3 = vpop.xlane.xlu0 %2663 }
0x194c   :  { %3403 = vrsqrt.f32 %v2671_v63  ;;  %2729 = vst.msk [vmem:[#allocation7 + $0x7] sm:$0x1] %vm2728_vm7, %v2723_v28  ;;  %v2669_v47 = vmul.f32 0.03125, %v2664_v3 }
0x194e   :  { %v2672_v57 = vadd.f32 1e-05, %v2669_v47 }
0x194f   :  { %v2754_v1 = vpop.permute.xlu1 %2753  ;;  %v2721_v46 = vpop.permute.xlu0 %2720 }
0x1950   :  { %3405 = vrsqrt.f32 %v2672_v57  ;;  %2760 = vst.msk [vmem:[#allocation7 + $0x7] sm:$0xfe] %vm2726_vm8, %v2754_v1  ;;  %2727 = vst.msk [vmem:[#allocation7 - $0x1] sm:$0xfe] %vm2726_vm8, %v2721_v46 }
0x1959   :  { %v3404_v22 = vpop.eup %3403 }
0x195a   :  { %v2677_v0 = vmul.f32 %v3404_v22, %v2653_v49 }
0x195c   :  { %v2686_v61 = vmul.f32 %v2900_v48, %v2677_v0 }
0x195d   :  { %v3406_v10 = vpop.eup %3405 }
0x195e   :  { %v2678_v6 = vmul.f32 %v3406_v10, %v2654_v32  ;;  %v2695_v18 = vadd.f32 %v2901_v17, %v2686_v61 }
0x1960   :  { %v2687_v56 = vmul.f32 %v2900_v48, %v2678_v6  ;;  %2699 = vst.msk [vmem:[#allocation5 - $0x1] sm:$0xfe] %vm2698_vm9, %v2695_v18 }
0x1962   :  { %v2696_v45 = vadd.f32 %v2901_v17, %v2687_v56 }
0x1964   :  { %2701 = vst.msk [vmem:[#allocation5 + $0x7] sm:$0x1] %vm2700_vm10, %v2696_v45 }
0x1965   :  { %2732 = vst.msk [vmem:[#allocation5 + $0x5] sm:$0xf8] %vm2731_vm11, %v2696_v45 }
0x1980   :  { %v2667_v4 = vpop.xlane.xlu1 %2666 }
0x1981   :  { %v2670_v7 = vmul.f32 0.03125, %v2667_v4 }
0x1983   :  { %v2673_v33 = vadd.f32 1e-05, %v2670_v7 }
0x1984   :  { %v2756_v2 = vpop.permute.xlu1 %2755 }
0x1985   :  { %3407 = vrsqrt.f32 %v2673_v33  ;;  %2761 = vst.msk [vmem:[#allocation7 + $0xf] sm:$0x1] %vm2728_vm7, %v2756_v2 }
0x1986   :  { %3432 = shalt.err (!%p3429_p10)
}
0x1987   :  { %s3549_s12 = smov 128   ;;  %s3550_s15 = smov 8   ;;  %vm2733_vm12 = vcmask 256000  }
0x1988   :  { %2785 = dma.vmem_to_hbm [thread:$0]  %s2780_s10, 256, %s4427_s19, [#allocation8], %s3549_s12, %s3549_s12, %s3550_s15  }
0x1989   :  { %s3551_s1 = smov [#allocation5]  }
0x198a   :  { %s2767_s3 = sshll.u32 %s3551_s1, 4  ;;  %s2768_s3 = int_to_ptr.vmem [resolvable:$true] %s2767_s3 }
0x198b   :  { %s3441_s14 = scalar_lea.vmem %s2768_s3, 256  ;;  %p3446_p12 = scmp.lt.s32.totalorder %s2768_s3, %s2768_s3 }
0x198c   :  { %p3442_p11 = scmp.ne.s32.totalorder %s2768_s3, %s3441_s14  ;;  %p3447_p13 = scmp.lt.s32.totalorder %s3441_s14, %s3441_s14 }
0x198e   :  { %p3448_p0 = por %p3447_p13, %p3446_p12 }
0x1990   :  { %p3449_p1 = pnand %p3448_p0, %p3442_p11 }
0x1992   :  { %v3408_v25 = vpop.eup %3407 }
0x1993   :  { %v2679_v50 = vmul.f32 %v3408_v25, %v2655_v55 }
0x1995   :  { %v2688_v14 = vmul.f32 %v2900_v48, %v2679_v50 }
0x1997   :  { %v2697_v9 = vadd.f32 %v2901_v17, %v2688_v14 }
0x1999   :  { %2734 = vst.msk [vmem:[#allocation5 + $0xd] sm:$0x7] %vm2733_vm12, %v2697_v9 }
0x199a   :  { %3452 = shalt.err (!%p3449_p1)
}
0x199b   :  { %2773 = dma.vmem_to_hbm [thread:$0]  %s2768_s3, 256, %s4426_s18, [#allocation6], %s3549_s12, %s3549_s12, %s3550_s15  }
0x199c   :  { %3495 = dma.done.wait [#allocation6], 256  }
0x199d   :  { %3496 = vsyncadd [#allocation6], 4294967040 }
0x199e   :  { %3497 = dma.done.wait [#allocation8], 256  }
0x199f   :  { %3498 = vsyncadd [#allocation8], 4294967040 }
0x19a0   :  { %2792 = vsyncpa [#allocation6], 1 }
0x19a1   :  { %2793 = vsyncpa [#allocation8], 1 }

</bundles_post_ra>
